<compile_context>
chip_gen: v6e
topology: v6e:2x2x1
jax: 0.10.0
libtpu: 0.0.40
codegen_flags: <defaults>
</compile_context>

<pallas_src>
import functools

import jax
import jax.numpy as jnp
from jax import lax
from jax.experimental import pallas as pl
from jax.experimental.pallas import tpu as pltpu

BN_EPS = 4e-5                              # BatchNorm3d(eps=4e-05)
_FUSED_VMEM_BUDGET = 24 * 1024 * 1024      # keep well inside v7x's 64 MiB physical VMEM
_TILE_M = 512                              # rows per tile on the tiled fallback path


# ---------------------------------------------------------------------------
# Fully fused kernel: matmul + BN stats + BN apply + ReLU in one VMEM block.
# ---------------------------------------------------------------------------
def _fused_kernel(x_ref, w_ref, gamma_ref, beta_ref, o_ref, *, m_real):
    y = jnp.dot(x_ref[...], w_ref[...], preferred_element_type=jnp.float32)
    mean = jnp.sum(y, axis=0, keepdims=True) / m_real
    d = y - mean
    var = jnp.sum(d * d, axis=0, keepdims=True) / m_real          # biased batch variance
    scale = gamma_ref[...] * lax.rsqrt(var + BN_EPS)
    o_ref[...] = jnp.maximum(d * scale + beta_ref[...], 0.0).astype(o_ref.dtype)


def _dsconv_bn_relu_fused(x, w, gamma, beta):
    M, Cin = x.shape
    Cout = w.shape[1]
    return pl.pallas_call(
        functools.partial(_fused_kernel, m_real=float(M)),
        out_shape=jax.ShapeDtypeStruct((M, Cout), jnp.float32),
        grid=(1,),
        in_specs=[pl.BlockSpec((M, Cin), lambda i: (0, 0)),
                  pl.BlockSpec((Cin, Cout), lambda i: (0, 0)),
                  pl.BlockSpec((1, Cout), lambda i: (0, 0)),
                  pl.BlockSpec((1, Cout), lambda i: (0, 0))],
        out_specs=pl.BlockSpec((M, Cout), lambda i: (0, 0)),
        compiler_params=pltpu.CompilerParams(
            dimension_semantics=("arbitrary",),
            vmem_limit_bytes=32 * 1024 * 1024),
    )(x, w, gamma.reshape(1, Cout), beta.reshape(1, Cout))


# ---------------------------------------------------------------------------
# Tiled fallback: pass 1 = per-tile partial BN stats, pass 2 = apply BN + ReLU.
# Both passes are 'parallel' over the M axis (megacore-friendly on v7x).
# ---------------------------------------------------------------------------
def _stats_kernel(x_ref, w_ref, stats_ref):
    y = jnp.dot(x_ref[...], w_ref[...], preferred_element_type=jnp.float32)
    s = jnp.sum(y, axis=0, keepdims=True)          # (1, Cout) partial sum
    q = jnp.sum(y * y, axis=0, keepdims=True)      # (1, Cout) partial sum of squares
    row = lax.broadcasted_iota(jnp.int32, (8, y.shape[1]), 0)
    # row 0 = partial sum, row 1 = partial sum-of-squares, rows 2..7 = 0
    stats_ref[...] = jnp.where(row == 0, s, jnp.where(row == 1, q, 0.0))


def _apply_kernel(x_ref, w_ref, scale_ref, shift_ref, o_ref):
    y = jnp.dot(x_ref[...], w_ref[...], preferred_element_type=jnp.float32)
    o_ref[...] = jnp.maximum(y * scale_ref[...] + shift_ref[...], 0.0).astype(o_ref.dtype)


def _dsconv_bn_relu_tiled(x, w, gamma, beta, tile_m=_TILE_M):
    M, Cin = x.shape
    Cout = w.shape[1]
    n_tiles = pl.cdiv(M, tile_m)
    m_pad = n_tiles * tile_m
    if m_pad != M:
        # zero rows contribute nothing to the sums; we divide by the real M below
        x_p = jnp.concatenate([x, jnp.zeros((m_pad - M, Cin), x.dtype)], axis=0)
    else:
        x_p = x

    parallel = pltpu.CompilerParams(dimension_semantics=("parallel",))

    # pass 1: per-tile partial stats, each tile owns its own (8, Cout) row block
    stats = pl.pallas_call(
        _stats_kernel,
        out_shape=jax.ShapeDtypeStruct((n_tiles * 8, Cout), jnp.float32),
        grid=(n_tiles,),
        in_specs=[pl.BlockSpec((tile_m, Cin), lambda i: (i, 0)),
                  pl.BlockSpec((Cin, Cout), lambda i: (0, 0))],
        out_specs=pl.BlockSpec((8, Cout), lambda i: (i, 0)),
        compiler_params=parallel,
    )(x_p, w)

    stats = stats.reshape(n_tiles, 8, Cout)
    total = jnp.sum(stats[:, 0, :], axis=0)
    total_sq = jnp.sum(stats[:, 1, :], axis=0)
    mean = total / M
    var = jnp.maximum(total_sq / M - mean * mean, 0.0)   # clamp: cancellation can go < 0
    scale = gamma * lax.rsqrt(var + BN_EPS)
    shift = beta - mean * scale

    # pass 2: recompute the cheap matmul and apply scale/shift + ReLU
    out = pl.pallas_call(
        _apply_kernel,
        out_shape=jax.ShapeDtypeStruct((m_pad, Cout), jnp.float32),
        grid=(n_tiles,),
        in_specs=[pl.BlockSpec((tile_m, Cin), lambda i: (i, 0)),
                  pl.BlockSpec((Cin, Cout), lambda i: (0, 0)),
                  pl.BlockSpec((1, Cout), lambda i: (0, 0)),
                  pl.BlockSpec((1, Cout), lambda i: (0, 0))],
        out_specs=pl.BlockSpec((tile_m, Cout), lambda i: (i, 0)),
        compiler_params=parallel,
    )(x_p, w, scale.reshape(1, Cout), shift.reshape(1, Cout))
    return out[:M]


# ---------------------------------------------------------------------------
# DepthwiseConvBlock3D.forward (train-mode BatchNorm)
# ---------------------------------------------------------------------------
def depthwise_conv_block_3d(x_ncdhw, params, *, force_tiled=False):
    """params: dw (Cin,)           depthwise Conv3d k=1 weight (per-channel scale)
               pw (Cin, Cout)      pointwise Conv3d weight, PyTorch layout transposed
               gamma/beta (Cout,)  BatchNorm3d weight / bias."""
    # TODO(synk): only the kernel_size=1 / stride=1 / padding=0 configuration used by
    # BiFPN is implemented; a general k>1 depthwise 3-D conv would need a halo-aware
    # spatial kernel.  BatchNorm running-stat (momentum=0.9997) buffer updates are not
    # emitted; they do not affect the forward output.
    N, Cin, D, H, W = x_ncdhw.shape
    Cout = params['pw'].shape[1]
    x = jnp.transpose(x_ncdhw, (0, 2, 3, 4, 1)).reshape(-1, Cin).astype(jnp.float32)
    M = x.shape[0]

    # fold the depthwise (k=1, per-channel) weight into the pointwise matrix
    w = (params['dw'][:, None] * params['pw']).astype(jnp.float32)
    gamma = params['gamma'].astype(jnp.float32)
    beta = params['beta'].astype(jnp.float32)

    # ~2x for double buffering; use the fully fused single-block path if it fits VMEM
    est_bytes = 2 * 4 * (M * Cin + M * Cout + Cin * Cout + 2 * Cout)
    if not force_tiled and est_bytes <= _FUSED_VMEM_BUDGET:
        out = _dsconv_bn_relu_fused(x, w, gamma, beta)
    else:
        out = _dsconv_bn_relu_tiled(x, w, gamma, beta)

    return jnp.transpose(out.reshape(N, D, H, W, Cout), (0, 4, 1, 2, 3))


# ---------------------------------------------------------------------------
# Pure-JAX reference (matches PyTorch train-mode forward) for correctness checks
# ---------------------------------------------------------------------------
def _reference(x_ncdhw, params):
    x = jnp.transpose(x_ncdhw, (0, 2, 3, 4, 1)).astype(jnp.float32)
    y = jnp.matmul(x * params['dw'], params['pw'], precision=lax.Precision.HIGHEST)
    yf = y.reshape(-1, y.shape[-1])
    mean = jnp.mean(yf, axis=0)
    var = jnp.mean((yf - mean) ** 2, axis=0)                      # biased batch variance
    out = params['gamma'] * (y - mean) * lax.rsqrt(var + BN_EPS) + params['beta']
    out = jnp.maximum(out, 0.0)
    return jnp.transpose(out, (0, 4, 1, 2, 3))


if __name__ == "__main__":
    key = jax.random.PRNGKey(0)
    kx1, kx2, kdw, kpw, kb = jax.random.split(key, 5)

    Cin, Cout = 64, 128
    params = {
        'dw': 0.5 + 0.1 * jax.random.normal(kdw, (Cin,), jnp.float32),
        'pw': 0.05 * jax.random.normal(kpw, (Cin, Cout), jnp.float32),
        'gamma': jnp.ones((Cout,), jnp.float32),
        'beta': 0.1 * jax.random.normal(kb, (Cout,), jnp.float32),
    }

    # case 1: (2, 64, 8, 8, 8) -> M = 1024 rows
    x1 = jax.random.normal(kx1, (2, Cin, 8, 8, 8), jnp.float32)
    out_fused1 = depthwise_conv_block_3d(x1, params)                      # fused path
    out_tiled1 = depthwise_conv_block_3d(x1, params, force_tiled=True)    # tiled path
    ref1 = _reference(x1, params)

    # case 2: (2, 64, 6, 6, 6) -> M = 432 (exercises pl.cdiv padding on the tiled path)
    x2 = jax.random.normal(kx2, (2, Cin, 6, 6, 6), jnp.float32)
    out_fused2 = depthwise_conv_block_3d(x2, params)
    out_tiled2 = depthwise_conv_block_3d(x2, params, force_tiled=True)
    ref2 = _reference(x2, params)

    jax.block_until_ready((out_fused1, out_tiled1, out_fused2, out_tiled2, ref1, ref2))

    assert out_fused1.shape == (2, Cout, 8, 8, 8)
    assert out_fused2.shape == (2, Cout, 6, 6, 6)
    assert jnp.allclose(out_fused1, ref1, atol=2e-2, rtol=2e-2)
    assert jnp.allclose(out_tiled1, ref1, atol=2e-2, rtol=2e-2)
    assert jnp.allclose(out_fused2, ref2, atol=2e-2, rtol=2e-2)
    assert jnp.allclose(out_tiled2, ref2, atol=2e-2, rtol=2e-2)
    print("KERNEL_OK")
</pallas_src>

<mosaic_0001>
module attributes {stable_mosaic.version = 11 : i64} {
  func.func @_fused_kernel(%arg0: i32, %arg1: memref<1024x64xf32, #tpu.memory_space<vmem>>, %arg2: memref<64x128xf32, #tpu.memory_space<vmem>>, %arg3: memref<1x128xf32, #tpu.memory_space<vmem>>, %arg4: memref<1x128xf32, #tpu.memory_space<vmem>>, %arg5: memref<1024x128xf32, #tpu.memory_space<vmem>>) attributes {dimension_semantics = [#tpu.dimension_semantics<arbitrary>], iteration_bounds = array<i64: 1>, scalar_prefetch = 0 : i64, scratch_operands = 0 : i64, tpu.core_type = #tpu.core_type<tc>, window_params = [{pipeline_mode = #tpu.pipeline_mode<synchronous>, transform_indices = @transform_0, window_bounds = array<i64: 1024, 64>}, {pipeline_mode = #tpu.pipeline_mode<synchronous>, transform_indices = @transform_1, window_bounds = array<i64: 64, 128>}, {pipeline_mode = #tpu.pipeline_mode<synchronous>, transform_indices = @transform_2, window_bounds = array<i64: 1, 128>}, {pipeline_mode = #tpu.pipeline_mode<synchronous>, transform_indices = @transform_3, window_bounds = array<i64: 1, 128>}, {pipeline_mode = #tpu.pipeline_mode<synchronous>, transform_indices = @transform_4, window_bounds = array<i64: 1024, 128>}]} {
    %c0 = arith.constant 0 : index
    %c0_0 = arith.constant 0 : index
    %0 = vector.load %arg1[%c0, %c0_0] : memref<1024x64xf32, #tpu.memory_space<vmem>>, vector<1024x64xf32>
    %c0_1 = arith.constant 0 : index
    %c0_2 = arith.constant 0 : index
    %1 = vector.load %arg2[%c0_1, %c0_2] : memref<64x128xf32, #tpu.memory_space<vmem>>, vector<64x128xf32>
    %cst = arith.constant dense<0.000000e+00> : vector<1024x128xf32>
    %2 = tpu.matmul %0, %1, %cst {dimension_numbers = #tpu.dot_dimension_numbers<[1], [0], [0], [1], [0, 0, 1, 1], [], []>} : vector<1024x64xf32>, vector<64x128xf32>, vector<1024x128xf32> -> vector<1024x128xf32>
    %cst_3 = arith.constant dense<0.000000e+00> : vector<128xf32>
    %3 = vector.multi_reduction <add>, %2, %cst_3 [0] : vector<1024x128xf32> to vector<128xf32>
    %4 = vector.shape_cast %3 : vector<128xf32> to vector<1x128xf32>
    %cst_4 = arith.constant 1.024000e+03 : f32
    %5 = vector.broadcast %cst_4 : f32 to vector<1x128xf32>
    %6 = arith.divf %4, %5 : vector<1x128xf32>
    %7 = vector.broadcast %6 : vector<1x128xf32> to vector<1024x128xf32>
    %8 = arith.subf %2, %7 : vector<1024x128xf32>
    %9 = arith.mulf %8, %8 : vector<1024x128xf32>
    %cst_5 = arith.constant dense<0.000000e+00> : vector<128xf32>
    %10 = vector.multi_reduction <add>, %9, %cst_5 [0] : vector<1024x128xf32> to vector<128xf32>
    %11 = vector.shape_cast %10 : vector<128xf32> to vector<1x128xf32>
    %cst_6 = arith.constant 1.024000e+03 : f32
    %12 = vector.broadcast %cst_6 : f32 to vector<1x128xf32>
    %13 = arith.divf %11, %12 : vector<1x128xf32>
    %c0_7 = arith.constant 0 : index
    %c0_8 = arith.constant 0 : index
    %14 = vector.load %arg3[%c0_7, %c0_8] : memref<1x128xf32, #tpu.memory_space<vmem>>, vector<1x128xf32>
    %cst_9 = arith.constant 4.000000e-05 : f32
    %15 = vector.broadcast %cst_9 : f32 to vector<1x128xf32>
    %16 = arith.addf %13, %15 : vector<1x128xf32>
    %17 = math.rsqrt %16 : vector<1x128xf32>
    %18 = arith.mulf %14, %17 : vector<1x128xf32>
    %19 = vector.broadcast %18 : vector<1x128xf32> to vector<1024x128xf32>
    %20 = arith.mulf %8, %19 : vector<1024x128xf32>
    %c0_10 = arith.constant 0 : index
    %c0_11 = arith.constant 0 : index
    %21 = vector.load %arg4[%c0_10, %c0_11] : memref<1x128xf32, #tpu.memory_space<vmem>>, vector<1x128xf32>
    %22 = vector.broadcast %21 : vector<1x128xf32> to vector<1024x128xf32>
    %23 = arith.addf %20, %22 : vector<1024x128xf32>
    %cst_12 = arith.constant 0.000000e+00 : f32
    %24 = vector.broadcast %cst_12 : f32 to vector<1024x128xf32>
    %25 = arith.maximumf %23, %24 : vector<1024x128xf32>
    %c0_13 = arith.constant 0 : index
    %c0_14 = arith.constant 0 : index
    %26 = vector.load %arg5[%c0_13, %c0_14] : memref<1024x128xf32, #tpu.memory_space<vmem>>, vector<1024x128xf32>
    tpu.vector_store %arg5[%c0_13, %c0_14], %25 {strides = array<i32>} : memref<1024x128xf32, #tpu.memory_space<vmem>>, vector<1024x128xf32>,
    return
  }
  func.func @transform_0(%arg0: i32) -> (i32, i32) {
    %c0_i32 = arith.constant 0 : i32
    %c0_i32_0 = arith.constant 0 : i32
    %c0_i32_1 = arith.constant 0 : i32
    return %c0_i32, %c0_i32_0 : i32, i32
  }
  func.func @transform_1(%arg0: i32) -> (i32, i32) {
    %c0_i32 = arith.constant 0 : i32
    %c0_i32_0 = arith.constant 0 : i32
    %c0_i32_1 = arith.constant 0 : i32
    return %c0_i32, %c0_i32_0 : i32, i32
  }
  func.func @transform_2(%arg0: i32) -> (i32, i32) {
    %c0_i32 = arith.constant 0 : i32
    %c0_i32_0 = arith.constant 0 : i32
    %c0_i32_1 = arith.constant 0 : i32
    return %c0_i32, %c0_i32_0 : i32, i32
  }
  func.func @transform_3(%arg0: i32) -> (i32, i32) {
    %c0_i32 = arith.constant 0 : i32
    %c0_i32_0 = arith.constant 0 : i32
    %c0_i32_1 = arith.constant 0 : i32
    return %c0_i32, %c0_i32_0 : i32, i32
  }
  func.func @transform_4(%arg0: i32) -> (i32, i32) {
    %c0_i32 = arith.constant 0 : i32
    %c0_i32_0 = arith.constant 0 : i32
    %c0_i32_1 = arith.constant 0 : i32
    return %c0_i32, %c0_i32_0 : i32, i32
  }
}

</mosaic_0001>

<bundles_post_ra>
// kernel: tpu_custom_call.1
= control target key start
LH: loop header
LB: loop body
LE: loop exit
PB: predicated region body
PF: predicated region fallthrough
CT: control target
= control target key end

     0   :  { %vm154_vm0 = vcmask 523264   ;;  %s5710_s0 = inlined_call_operand.vmem [shape: f32[1024,64], index: 0, kind: input, shape index: {}]   ;;  %s5711_s1 = inlined_call_operand.vmem [shape: f32[64,128], index: 1, kind: input, shape index: {}]   ;;  %s5712_s2 = inlined_call_operand.vmem [shape: f32[1,128], index: 2, kind: input, shape index: {}]   ;;  %s5713_s3 = inlined_call_operand.vmem [shape: f32[1,128], index: 3, kind: input, shape index: {}]   ;;  %s5714_s4 = inlined_call_operand.hbm [shape: f32[1024,128], index: 4, kind: output, shape index: {}]  }
   0x1   :  { %v153_v0 = vld [vmem:[%s5711_s1 + $0x38] sm:$0xff]  ;;  %v152_v1 = vld [vmem:[%s5711_s1 + $0x30] sm:$0xff]  ;;  %v151_v2 = vld [vmem:[%s5711_s1 + $0x28] sm:$0xff] }
   0x2   :  { %2579 = vmatprep.subr.mxu0 %v153_v0  ;;  %2787 = vmatprep.subr.mxu1 %v153_v0  ;;  %v18_v3 = vld [vmem:[%s5710_s0] sm:$0xff]  ;;  %v149_v5 = vld [vmem:[%s5711_s1 + $0x18] sm:$0xff]  ;;  %v148_v6 = vld [vmem:[%s5711_s1 + $0x10] sm:$0xff] }
   0x3   :  { %2580 = vmatpush3.msra.mxu0 %v153_v0  ;;  %2795 = vmatpush3.msra.mxu1 %v153_v0  ;;  %v150_v4 = vld [vmem:[%s5711_s1 + $0x20] sm:$0xff]  ;;  %v147_v7 = vld [vmem:[%s5711_s1 + $0x8] sm:$0xff]  ;;  %v20_v10 = vld [vmem:[%s5710_s0 + $0x10] sm:$0xff] }
   0x4   :  { %2581 = vmatprep.subr.mxu0 %v152_v1  ;;  %2595 = vmatprep.mubr.msk.f32.mxu0 %vm154_vm0, %v18_v3  ;;  %v146_v8 = vld [vmem:[%s5711_s1] sm:$0xff]  ;;  %v19_v9 = vld [vmem:[%s5710_s0 + $0x8] sm:$0xff]  ;;  %v21_v11 = vld [vmem:[%s5710_s0 + $0x18] sm:$0xff] }
   0x5   :  { %2582 = vmatpush3.msra.mxu0 %v152_v1  ;;  %2788 = vmatprep.subr.mxu1 %v152_v1  ;;  %v22_v12 = vld [vmem:[%s5710_s0 + $0x20] sm:$0xff]  ;;  %v23_v13 = vld [vmem:[%s5710_s0 + $0x28] sm:$0xff]  ;;  %v24_v14 = vld [vmem:[%s5710_s0 + $0x30] sm:$0xff] }
   0x6   :  { %2583 = vmatprep.subr.mxu0 %v151_v2  ;;  %2796 = vmatpush3.msra.mxu1 %v152_v1  ;;  %v82_v15 = vld [vmem:[%s5710_s0 + $0x200] sm:$0xff]  ;;  %v83_v16 = vld [vmem:[%s5710_s0 + $0x208] sm:$0xff]  ;;  %v84_v17 = vld [vmem:[%s5710_s0 + $0x210] sm:$0xff] }
   0x7   :  { %2584 = vmatpush3.msra.mxu0 %v151_v2  ;;  %2789 = vmatprep.subr.mxu1 %v151_v2  ;;  %v25_v18 = vld [vmem:[%s5710_s0 + $0x38] sm:$0xff]  ;;  %v26_v19 = vld [vmem:[%s5710_s0 + $0x40] sm:$0xff]  ;;  %v27_v22 = vld [vmem:[%s5710_s0 + $0x48] sm:$0xff] }
   0x8   :  { %2585 = vmatprep.subr.mxu0 %v150_v4  ;;  %2797 = vmatpush3.msra.mxu1 %v151_v2  ;;  %v85_v20 = vld [vmem:[%s5710_s0 + $0x218] sm:$0xff]  ;;  %v86_v21 = vld [vmem:[%s5710_s0 + $0x220] sm:$0xff]  ;;  %v28_v23 = vld [vmem:[%s5710_s0 + $0x50] sm:$0xff] }
   0x9   :  { %2586 = vmatpush3.msra.mxu0 %v150_v4  ;;  %2790 = vmatprep.subr.mxu1 %v150_v4  ;;  %v87_v24 = vld [vmem:[%s5710_s0 + $0x228] sm:$0xff]  ;;  %v88_v25 = vld [vmem:[%s5710_s0 + $0x230] sm:$0xff]  ;;  %v29_v26 = vld [vmem:[%s5710_s0 + $0x58] sm:$0xff] }
   0xa   :  { %2587 = vmatprep.subr.mxu0 %v149_v5  ;;  %2798 = vmatpush3.msra.mxu1 %v150_v4  ;;  %v30_v27 = vld [vmem:[%s5710_s0 + $0x60] sm:$0xff]  ;;  %v89_v28 = vld [vmem:[%s5710_s0 + $0x238] sm:$0xff] }
   0xb   :  { %2588 = vmatpush3.msra.mxu0 %v149_v5  ;;  %2791 = vmatprep.subr.mxu1 %v149_v5 }
   0xc   :  { %2589 = vmatprep.subr.mxu0 %v148_v6  ;;  %2799 = vmatpush3.msra.mxu1 %v149_v5 }
   0xd   :  { %2590 = vmatpush3.msra.mxu0 %v148_v6  ;;  %2792 = vmatprep.subr.mxu1 %v148_v6 }
   0xe   :  { %2591 = vmatprep.subr.mxu0 %v147_v7  ;;  %2800 = vmatpush3.msra.mxu1 %v148_v6 }
   0xf   :  { %2592 = vmatpush3.msra.mxu0 %v147_v7  ;;  %2793 = vmatprep.subr.mxu1 %v147_v7 }
  0x10   :  { %2593 = vmatprep.subr.mxu0 %v146_v8  ;;  %2801 = vmatpush3.msra.mxu1 %v147_v7 }
  0x11   :  { %2594 = vmatpush3.msra.mxu0 %v146_v8  ;;  %2794 = vmatprep.subr.mxu1 %v146_v8 }
  0x12   :  { %2596 = vmatmul.mubr.msk.f32.vlgmr.msra.gmra.mxu0 %vm154_vm0, %v19_v9  ;;  %2802 = vmatpush3.msra.mxu1 %v146_v8 }
  0x13   :  { %2598 = vmatprep.mubr.msk.f32.mxu0 %vm154_vm0, %v20_v10  ;;  %2691 = vmatprep.mubr.msk.f32.mxu1 %vm154_vm0, %v82_v15 }
  0x14   :  { %2692 = vmatmul.mubr.msk.f32.vlgmr.msra.gmra.mxu1 %vm154_vm0, %v83_v16 }
  0x15   :  { %2694 = vmatprep.mubr.msk.f32.mxu1 %vm154_vm0, %v84_v17 }
  0x16   :  { %2599 = vmatmul.mubr.msk.f32.gmra.mxu0 %vm154_vm0, %v21_v11 }
  0x17   :  { %2601 = vmatprep.mubr.msk.f32.mxu0 %vm154_vm0, %v22_v12 }
  0x18   :  { %2695 = vmatmul.mubr.msk.f32.gmra.mxu1 %vm154_vm0, %v85_v20 }
  0x19   :  { %2697 = vmatprep.mubr.msk.f32.mxu1 %vm154_vm0, %v86_v21 }
  0x1a   :  { %2602 = vmatmul.mubr.msk.f32.gmra.mxu0 %vm154_vm0, %v23_v13 }
  0x1b   :  { %2604 = vmatprep.mubr.msk.f32.mxu0 %vm154_vm0, %v24_v14 }
  0x1c   :  { %2698 = vmatmul.mubr.msk.f32.gmra.mxu1 %vm154_vm0, %v87_v24 }
  0x1d   :  { %2700 = vmatprep.mubr.msk.f32.mxu1 %vm154_vm0, %v88_v25 }
  0x1e   :  { %2605 = vmatmul.mubr.msk.f32.gmra.mxu0 %vm154_vm0, %v25_v18 }
  0x1f   :  { %2607 = vmatprep.mubr.msk.f32.mxu0 %vm154_vm0, %v26_v19 }
  0x22   :  { %2608 = vmatmul.mubr.msk.f32.gmra.mxu0 %vm154_vm0, %v27_v22 }
  0x23   :  { %2610 = vmatprep.mubr.msk.f32.mxu0 %vm154_vm0, %v28_v23 }
  0x24   :  { %9 = vsyncpa [#allocation3], 0  ;;  %v90_v29 = vld [vmem:[%s5710_s0 + $0x240] sm:$0xff]  ;;  %v31_v30 = vld [vmem:[%s5710_s0 + $0x68] sm:$0xff]  ;;  %2701 = vmatmul.mubr.msk.f32.gmra.mxu1 %vm154_vm0, %v89_v28 }
  0x25   :  { %v32_v31 = vld [vmem:[%s5710_s0 + $0x70] sm:$0xff]  ;;  %2703 = vmatprep.mubr.msk.f32.mxu1 %vm154_vm0, %v90_v29  ;;  %v91_v32 = vld [vmem:[%s5710_s0 + $0x248] sm:$0xff]  ;;  %v33_v34 = vld [vmem:[%s5710_s0 + $0x78] sm:$0xff] }
  0x26   :  { %2611 = vmatmul.mubr.msk.f32.gmra.mxu0 %vm154_vm0, %v29_v26  ;;  %v92_v33 = vld [vmem:[%s5710_s0 + $0x250] sm:$0xff]  ;;  %v34_v35 = vld [vmem:[%s5710_s0 + $0x80] sm:$0xff]  ;;  %v93_v36 = vld [vmem:[%s5710_s0 + $0x258] sm:$0xff] }
  0x27   :  { %2613 = vmatprep.mubr.msk.f32.mxu0 %vm154_vm0, %v30_v27  ;;  %v94_v37 = vld [vmem:[%s5710_s0 + $0x260] sm:$0xff]  ;;  %v35_v38 = vld [vmem:[%s5710_s0 + $0x88] sm:$0xff]  ;;  %v36_v39 = vld [vmem:[%s5710_s0 + $0x90] sm:$0xff] }
  0x28   :  { %2704 = vmatmul.mubr.msk.f32.gmra.mxu1 %vm154_vm0, %v91_v32  ;;  %v95_v40 = vld [vmem:[%s5710_s0 + $0x268] sm:$0xff]  ;;  %v96_v41 = vld [vmem:[%s5710_s0 + $0x270] sm:$0xff]  ;;  %v37_v42 = vld [vmem:[%s5710_s0 + $0x98] sm:$0xff] }
  0x29   :  { %2706 = vmatprep.mubr.msk.f32.mxu1 %vm154_vm0, %v92_v33  ;;  %v38_v43 = vld [vmem:[%s5710_s0 + $0xa0] sm:$0xff]  ;;  %v97_v44 = vld [vmem:[%s5710_s0 + $0x278] sm:$0xff]  ;;  %v39_v46 = vld [vmem:[%s5710_s0 + $0xa8] sm:$0xff] }
  0x2a   :  { %2614 = vmatmul.mubr.msk.f32.gmra.mxu0 %vm154_vm0, %v31_v30  ;;  %v98_v45 = vld [vmem:[%s5710_s0 + $0x280] sm:$0xff]  ;;  %v40_v47 = vld [vmem:[%s5710_s0 + $0xb0] sm:$0xff]  ;;  %v99_v48 = vld [vmem:[%s5710_s0 + $0x288] sm:$0xff] }
  0x2b   :  { %2616 = vmatprep.mubr.msk.f32.mxu0 %vm154_vm0, %v32_v31  ;;  %v100_v49 = vld [vmem:[%s5710_s0 + $0x290] sm:$0xff]  ;;  %v41_v50 = vld [vmem:[%s5710_s0 + $0xb8] sm:$0xff]  ;;  %v42_v51 = vld [vmem:[%s5710_s0 + $0xc0] sm:$0xff] }
  0x2c   :  { %2707 = vmatmul.mubr.msk.f32.gmra.mxu1 %vm154_vm0, %v93_v36  ;;  %v101_v52 = vld [vmem:[%s5710_s0 + $0x298] sm:$0xff]  ;;  %v102_v53 = vld [vmem:[%s5710_s0 + $0x2a0] sm:$0xff]  ;;  %v43_v54 = vld [vmem:[%s5710_s0 + $0xc8] sm:$0xff] }
  0x2d   :  { %2709 = vmatprep.mubr.msk.f32.mxu1 %vm154_vm0, %v94_v37  ;;  %v44_v55 = vld [vmem:[%s5710_s0 + $0xd0] sm:$0xff]  ;;  %v103_v56 = vld [vmem:[%s5710_s0 + $0x2a8] sm:$0xff]  ;;  %v45_v58 = vld [vmem:[%s5710_s0 + $0xd8] sm:$0xff] }
  0x2e   :  { %2617 = vmatmul.mubr.msk.f32.gmra.mxu0 %vm154_vm0, %v33_v34  ;;  %v104_v57 = vld [vmem:[%s5710_s0 + $0x2b0] sm:$0xff]  ;;  %v46_v59 = vld [vmem:[%s5710_s0 + $0xe0] sm:$0xff]  ;;  %v105_v60 = vld [vmem:[%s5710_s0 + $0x2b8] sm:$0xff] }
  0x2f   :  { %2619 = vmatprep.mubr.msk.f32.mxu0 %vm154_vm0, %v34_v35  ;;  %v106_v61 = vld [vmem:[%s5710_s0 + $0x2c0] sm:$0xff]  ;;  %v47_v62 = vld [vmem:[%s5710_s0 + $0xe8] sm:$0xff]  ;;  %v48_v63 = vld [vmem:[%s5710_s0 + $0xf0] sm:$0xff] }
  0x30   :  { %2710 = vmatmul.mubr.msk.f32.gmra.mxu1 %vm154_vm0, %v95_v40  ;;  %v107_v0 = vld [vmem:[%s5710_s0 + $0x2c8] sm:$0xff]  ;;  %v108_v1 = vld [vmem:[%s5710_s0 + $0x2d0] sm:$0xff]  ;;  %v49_v2 = vld [vmem:[%s5710_s0 + $0xf8] sm:$0xff] }
  0x31   :  { %2712 = vmatprep.mubr.msk.f32.mxu1 %vm154_vm0, %v96_v41  ;;  %v50_v3 = vld [vmem:[%s5710_s0 + $0x100] sm:$0xff]  ;;  %v109_v4 = vld [vmem:[%s5710_s0 + $0x2d8] sm:$0xff]  ;;  %v51_v6 = vld [vmem:[%s5710_s0 + $0x108] sm:$0xff] }
  0x32   :  { %2620 = vmatmul.mubr.msk.f32.gmra.mxu0 %vm154_vm0, %v35_v38  ;;  %v110_v5 = vld [vmem:[%s5710_s0 + $0x2e0] sm:$0xff]  ;;  %v52_v7 = vld [vmem:[%s5710_s0 + $0x110] sm:$0xff]  ;;  %v111_v8 = vld [vmem:[%s5710_s0 + $0x2e8] sm:$0xff] }
  0x33   :  { %2622 = vmatprep.mubr.msk.f32.mxu0 %vm154_vm0, %v36_v39  ;;  %v112_v9 = vld [vmem:[%s5710_s0 + $0x2f0] sm:$0xff]  ;;  %v53_v10 = vld [vmem:[%s5710_s0 + $0x118] sm:$0xff]  ;;  %v54_v11 = vld [vmem:[%s5710_s0 + $0x120] sm:$0xff] }
  0x34   :  { %2713 = vmatmul.mubr.msk.f32.gmra.mxu1 %vm154_vm0, %v97_v44  ;;  %v113_v12 = vld [vmem:[%s5710_s0 + $0x2f8] sm:$0xff]  ;;  %v114_v13 = vld [vmem:[%s5710_s0 + $0x300] sm:$0xff]  ;;  %v55_v14 = vld [vmem:[%s5710_s0 + $0x128] sm:$0xff] }
  0x35   :  { %2715 = vmatprep.mubr.msk.f32.mxu1 %vm154_vm0, %v98_v45  ;;  %v56_v15 = vld [vmem:[%s5710_s0 + $0x130] sm:$0xff]  ;;  %v115_v16 = vld [vmem:[%s5710_s0 + $0x308] sm:$0xff]  ;;  %v57_v18 = vld [vmem:[%s5710_s0 + $0x138] sm:$0xff] }
  0x36   :  { %2623 = vmatmul.mubr.msk.f32.gmra.mxu0 %vm154_vm0, %v37_v42  ;;  %v116_v17 = vld [vmem:[%s5710_s0 + $0x310] sm:$0xff]  ;;  %v58_v19 = vld [vmem:[%s5710_s0 + $0x140] sm:$0xff]  ;;  %v117_v20 = vld [vmem:[%s5710_s0 + $0x318] sm:$0xff] }
  0x37   :  { %2625 = vmatprep.mubr.msk.f32.mxu0 %vm154_vm0, %v38_v43  ;;  %v118_v21 = vld [vmem:[%s5710_s0 + $0x320] sm:$0xff]  ;;  %v59_v22 = vld [vmem:[%s5710_s0 + $0x148] sm:$0xff]  ;;  %v60_v23 = vld [vmem:[%s5710_s0 + $0x150] sm:$0xff] }
  0x38   :  { %2716 = vmatmul.mubr.msk.f32.gmra.mxu1 %vm154_vm0, %v99_v48  ;;  %v119_v24 = vld [vmem:[%s5710_s0 + $0x328] sm:$0xff]  ;;  %v120_v25 = vld [vmem:[%s5710_s0 + $0x330] sm:$0xff]  ;;  %v61_v26 = vld [vmem:[%s5710_s0 + $0x158] sm:$0xff] }
  0x39   :  { %2718 = vmatprep.mubr.msk.f32.mxu1 %vm154_vm0, %v100_v49  ;;  %v62_v27 = vld [vmem:[%s5710_s0 + $0x160] sm:$0xff]  ;;  %v121_v28 = vld [vmem:[%s5710_s0 + $0x338] sm:$0xff]  ;;  %v63_v30 = vld [vmem:[%s5710_s0 + $0x168] sm:$0xff] }
  0x3a   :  { %2626 = vmatmul.mubr.msk.f32.gmra.mxu0 %vm154_vm0, %v39_v46  ;;  %v122_v29 = vld [vmem:[%s5710_s0 + $0x340] sm:$0xff]  ;;  %v64_v31 = vld [vmem:[%s5710_s0 + $0x170] sm:$0xff]  ;;  %v123_v32 = vld [vmem:[%s5710_s0 + $0x348] sm:$0xff] }
  0x3b   :  { %2628 = vmatprep.mubr.msk.f32.mxu0 %vm154_vm0, %v40_v47  ;;  %v124_v33 = vld [vmem:[%s5710_s0 + $0x350] sm:$0xff]  ;;  %v65_v34 = vld [vmem:[%s5710_s0 + $0x178] sm:$0xff]  ;;  %v66_v35 = vld [vmem:[%s5710_s0 + $0x180] sm:$0xff] }
  0x3c   :  { %2719 = vmatmul.mubr.msk.f32.gmra.mxu1 %vm154_vm0, %v101_v52  ;;  %v125_v36 = vld [vmem:[%s5710_s0 + $0x358] sm:$0xff]  ;;  %v126_v37 = vld [vmem:[%s5710_s0 + $0x360] sm:$0xff]  ;;  %v67_v38 = vld [vmem:[%s5710_s0 + $0x188] sm:$0xff] }
  0x3d   :  { %2721 = vmatprep.mubr.msk.f32.mxu1 %vm154_vm0, %v102_v53  ;;  %v68_v39 = vld [vmem:[%s5710_s0 + $0x190] sm:$0xff]  ;;  %v127_v40 = vld [vmem:[%s5710_s0 + $0x368] sm:$0xff]  ;;  %v69_v42 = vld [vmem:[%s5710_s0 + $0x198] sm:$0xff] }
  0x3e   :  { %2629 = vmatmul.mubr.msk.f32.gmra.mxu0 %vm154_vm0, %v41_v50  ;;  %v128_v41 = vld [vmem:[%s5710_s0 + $0x370] sm:$0xff]  ;;  %v70_v43 = vld [vmem:[%s5710_s0 + $0x1a0] sm:$0xff]  ;;  %v129_v44 = vld [vmem:[%s5710_s0 + $0x378] sm:$0xff] }
  0x3f   :  { %2631 = vmatprep.mubr.msk.f32.mxu0 %vm154_vm0, %v42_v51  ;;  %v130_v45 = vld [vmem:[%s5710_s0 + $0x380] sm:$0xff]  ;;  %v71_v46 = vld [vmem:[%s5710_s0 + $0x1a8] sm:$0xff]  ;;  %v72_v47 = vld [vmem:[%s5710_s0 + $0x1b0] sm:$0xff] }
  0x40   :  { %2722 = vmatmul.mubr.msk.f32.gmra.mxu1 %vm154_vm0, %v103_v56  ;;  %v131_v48 = vld [vmem:[%s5710_s0 + $0x388] sm:$0xff]  ;;  %v132_v49 = vld [vmem:[%s5710_s0 + $0x390] sm:$0xff]  ;;  %v73_v50 = vld [vmem:[%s5710_s0 + $0x1b8] sm:$0xff] }
  0x41   :  { %2724 = vmatprep.mubr.msk.f32.mxu1 %vm154_vm0, %v104_v57  ;;  %v74_v51 = vld [vmem:[%s5710_s0 + $0x1c0] sm:$0xff]  ;;  %v133_v52 = vld [vmem:[%s5710_s0 + $0x398] sm:$0xff]  ;;  %v135_v56 = vld [vmem:[%s5710_s0 + $0x3a8] sm:$0xff] }
  0x42   :  { %2632 = vmatmul.mubr.msk.f32.gmra.mxu0 %vm154_vm0, %v43_v54  ;;  %v134_v53 = vld [vmem:[%s5710_s0 + $0x3a0] sm:$0xff]  ;;  %v75_v54 = vld [vmem:[%s5710_s0 + $0x1c8] sm:$0xff]  ;;  %v136_v57 = vld [vmem:[%s5710_s0 + $0x3b0] sm:$0xff] }
  0x43   :  { %2634 = vmatprep.mubr.msk.f32.mxu0 %vm154_vm0, %v44_v55  ;;  %v76_v55 = vld [vmem:[%s5710_s0 + $0x1d0] sm:$0xff] }
  0x44   :  { %2725 = vmatmul.mubr.msk.f32.gmra.mxu1 %vm154_vm0, %v105_v60  ;;  %v137_v60 = vld [vmem:[%s5710_s0 + $0x3b8] sm:$0xff] }
  0x45   :  { %2727 = vmatprep.mubr.msk.f32.mxu1 %vm154_vm0, %v106_v61  ;;  %v138_v61 = vld [vmem:[%s5710_s0 + $0x3c0] sm:$0xff] }
  0x46   :  { %2635 = vmatmul.mubr.msk.f32.gmra.mxu0 %vm154_vm0, %v45_v58  ;;  %v77_v58 = vld [vmem:[%s5710_s0 + $0x1d8] sm:$0xff] }
  0x47   :  { %2637 = vmatprep.mubr.msk.f32.mxu0 %vm154_vm0, %v46_v59  ;;  %v78_v59 = vld [vmem:[%s5710_s0 + $0x1e0] sm:$0xff] }
  0x48   :  { %2728 = vmatmul.mubr.msk.f32.gmra.mxu1 %vm154_vm0, %v107_v0  ;;  %v139_v0 = vld [vmem:[%s5710_s0 + $0x3c8] sm:$0xff] }
  0x49   :  { %2730 = vmatprep.mubr.msk.f32.mxu1 %vm154_vm0, %v108_v1  ;;  %v140_v1 = vld [vmem:[%s5710_s0 + $0x3d0] sm:$0xff] }
  0x4a   :  { %2638 = vmatmul.mubr.msk.f32.gmra.mxu0 %vm154_vm0, %v47_v62  ;;  %v79_v62 = vld [vmem:[%s5710_s0 + $0x1e8] sm:$0xff] }
  0x4b   :  { %2640 = vmatprep.mubr.msk.f32.mxu0 %vm154_vm0, %v48_v63  ;;  %v80_v63 = vld [vmem:[%s5710_s0 + $0x1f0] sm:$0xff] }
  0x4c   :  { %2731 = vmatmul.mubr.msk.f32.gmra.mxu1 %vm154_vm0, %v109_v4  ;;  %v142_v4 = vld [vmem:[%s5710_s0 + $0x3e0] sm:$0xff] }
  0x4d   :  { %2733 = vmatprep.mubr.msk.f32.mxu1 %vm154_vm0, %v110_v5  ;;  %v143_v5 = vld [vmem:[%s5710_s0 + $0x3e8] sm:$0xff] }
  0x4e   :  { %2641 = vmatmul.mubr.msk.f32.gmra.mxu0 %vm154_vm0, %v49_v2  ;;  %v81_v2 = vld [vmem:[%s5710_s0 + $0x1f8] sm:$0xff] }
  0x4f   :  { %2643 = vmatprep.mubr.msk.f32.mxu0 %vm154_vm0, %v50_v3  ;;  %v141_v3 = vld [vmem:[%s5710_s0 + $0x3d8] sm:$0xff] }
  0x50   :  { %2734 = vmatmul.mubr.msk.f32.gmra.mxu1 %vm154_vm0, %v111_v8 }
  0x51   :  { %2736 = vmatprep.mubr.msk.f32.mxu1 %vm154_vm0, %v112_v9 }
  0x52   :  { %2644 = vmatmul.mubr.msk.f32.gmra.mxu0 %vm154_vm0, %v51_v6  ;;  %v144_v6 = vld [vmem:[%s5710_s0 + $0x3f0] sm:$0xff] }
  0x53   :  { %2646 = vmatprep.mubr.msk.f32.mxu0 %vm154_vm0, %v52_v7  ;;  %v145_v7 = vld [vmem:[%s5710_s0 + $0x3f8] sm:$0xff] }
  0x54   :  { %2737 = vmatmul.mubr.msk.f32.gmra.mxu1 %vm154_vm0, %v113_v12 }
  0x55   :  { %2739 = vmatprep.mubr.msk.f32.mxu1 %vm154_vm0, %v114_v13 }
  0x56   :  { %2647 = vmatmul.mubr.msk.f32.gmra.mxu0 %vm154_vm0, %v53_v10 }
  0x57   :  { %2649 = vmatprep.mubr.msk.f32.mxu0 %vm154_vm0, %v54_v11 }
  0x58   :  { %2740 = vmatmul.mubr.msk.f32.gmra.mxu1 %vm154_vm0, %v115_v16 }
  0x59   :  { %2742 = vmatprep.mubr.msk.f32.mxu1 %vm154_vm0, %v116_v17 }
  0x5a   :  { %2650 = vmatmul.mubr.msk.f32.gmra.mxu0 %vm154_vm0, %v55_v14 }
  0x5b   :  { %2652 = vmatprep.mubr.msk.f32.mxu0 %vm154_vm0, %v56_v15 }
  0x5c   :  { %2743 = vmatmul.mubr.msk.f32.gmra.mxu1 %vm154_vm0, %v117_v20 }
  0x5d   :  { %2745 = vmatprep.mubr.msk.f32.mxu1 %vm154_vm0, %v118_v21 }
  0x5e   :  { %2653 = vmatmul.mubr.msk.f32.gmra.mxu0 %vm154_vm0, %v57_v18 }
  0x5f   :  { %2655 = vmatprep.mubr.msk.f32.mxu0 %vm154_vm0, %v58_v19 }
  0x60   :  { %2746 = vmatmul.mubr.msk.f32.gmra.mxu1 %vm154_vm0, %v119_v24 }
  0x61   :  { %2748 = vmatprep.mubr.msk.f32.mxu1 %vm154_vm0, %v120_v25 }
  0x62   :  { %2656 = vmatmul.mubr.msk.f32.gmra.mxu0 %vm154_vm0, %v59_v22 }
  0x63   :  { %2658 = vmatprep.mubr.msk.f32.mxu0 %vm154_vm0, %v60_v23 }
  0x64   :  { %2749 = vmatmul.mubr.msk.f32.gmra.mxu1 %vm154_vm0, %v121_v28 }
  0x65   :  { %2751 = vmatprep.mubr.msk.f32.mxu1 %vm154_vm0, %v122_v29 }
  0x66   :  { %2659 = vmatmul.mubr.msk.f32.gmra.mxu0 %vm154_vm0, %v61_v26 }
  0x67   :  { %2661 = vmatprep.mubr.msk.f32.mxu0 %vm154_vm0, %v62_v27 }
  0x68   :  { %2752 = vmatmul.mubr.msk.f32.gmra.mxu1 %vm154_vm0, %v123_v32 }
  0x69   :  { %2754 = vmatprep.mubr.msk.f32.mxu1 %vm154_vm0, %v124_v33 }
  0x6a   :  { %2662 = vmatmul.mubr.msk.f32.gmra.mxu0 %vm154_vm0, %v63_v30 }
  0x6b   :  { %2664 = vmatprep.mubr.msk.f32.mxu0 %vm154_vm0, %v64_v31 }
  0x6c   :  { %2755 = vmatmul.mubr.msk.f32.gmra.mxu1 %vm154_vm0, %v125_v36 }
  0x6d   :  { %2757 = vmatprep.mubr.msk.f32.mxu1 %vm154_vm0, %v126_v37 }
  0x6e   :  { %2665 = vmatmul.mubr.msk.f32.gmra.mxu0 %vm154_vm0, %v65_v34 }
  0x6f   :  { %2667 = vmatprep.mubr.msk.f32.mxu0 %vm154_vm0, %v66_v35 }
  0x70   :  { %2758 = vmatmul.mubr.msk.f32.gmra.mxu1 %vm154_vm0, %v127_v40 }
  0x71   :  { %2760 = vmatprep.mubr.msk.f32.mxu1 %vm154_vm0, %v128_v41 }
  0x72   :  { %2668 = vmatmul.mubr.msk.f32.gmra.mxu0 %vm154_vm0, %v67_v38 }
  0x73   :  { %2670 = vmatprep.mubr.msk.f32.mxu0 %vm154_vm0, %v68_v39 }
  0x74   :  { %2761 = vmatmul.mubr.msk.f32.gmra.mxu1 %vm154_vm0, %v129_v44 }
  0x75   :  { %2763 = vmatprep.mubr.msk.f32.mxu1 %vm154_vm0, %v130_v45 }
  0x76   :  { %2671 = vmatmul.mubr.msk.f32.gmra.mxu0 %vm154_vm0, %v69_v42 }
  0x77   :  { %2673 = vmatprep.mubr.msk.f32.mxu0 %vm154_vm0, %v70_v43 }
  0x78   :  { %2764 = vmatmul.mubr.msk.f32.gmra.mxu1 %vm154_vm0, %v131_v48 }
  0x79   :  { %2766 = vmatprep.mubr.msk.f32.mxu1 %vm154_vm0, %v132_v49 }
  0x7a   :  { %2674 = vmatmul.mubr.msk.f32.gmra.mxu0 %vm154_vm0, %v71_v46 }
  0x7b   :  { %2676 = vmatprep.mubr.msk.f32.mxu0 %vm154_vm0, %v72_v47 }
  0x7c   :  { %2767 = vmatmul.mubr.msk.f32.gmra.mxu1 %vm154_vm0, %v133_v52 }
  0x7d   :  { %2769 = vmatprep.mubr.msk.f32.mxu1 %vm154_vm0, %v134_v53 }
  0x7e   :  { %2677 = vmatmul.mubr.msk.f32.gmra.mxu0 %vm154_vm0, %v73_v50 }
  0x7f   :  { %2679 = vmatprep.mubr.msk.f32.mxu0 %vm154_vm0, %v74_v51 }
  0x80   :  { %2770 = vmatmul.mubr.msk.f32.gmra.mxu1 %vm154_vm0, %v135_v56 }
  0x81   :  { %2772 = vmatprep.mubr.msk.f32.mxu1 %vm154_vm0, %v136_v57 }
  0x82   :  { %2680 = vmatmul.mubr.msk.f32.gmra.mxu0 %vm154_vm0, %v75_v54 }
  0x83   :  { %2682 = vmatprep.mubr.msk.f32.mxu0 %vm154_vm0, %v76_v55 }
  0x84   :  { %2773 = vmatmul.mubr.msk.f32.gmra.mxu1 %vm154_vm0, %v137_v60 }
  0x85   :  { %2775 = vmatprep.mubr.msk.f32.mxu1 %vm154_vm0, %v138_v61 }
  0x86   :  { %2683 = vmatmul.mubr.msk.f32.gmra.mxu0 %vm154_vm0, %v77_v58 }
  0x87   :  { %2685 = vmatprep.mubr.msk.f32.mxu0 %vm154_vm0, %v78_v59 }
  0x88   :  { %2776 = vmatmul.mubr.msk.f32.gmra.mxu1 %vm154_vm0, %v139_v0 }
  0x89   :  { %2778 = vmatprep.mubr.msk.f32.mxu1 %vm154_vm0, %v140_v1 }
  0x8a   :  { %2686 = vmatmul.mubr.msk.f32.gmra.mxu0 %vm154_vm0, %v79_v62 }
  0x8b   :  { %2688 = vmatprep.mubr.msk.f32.mxu0 %vm154_vm0, %v80_v63 }
  0x8c   :  { %2779 = vmatmul.mubr.msk.f32.gmra.mxu1 %vm154_vm0, %v141_v3 }
  0x8d   :  { %2781 = vmatprep.mubr.msk.f32.mxu1 %vm154_vm0, %v142_v4 }
  0x8e   :  { %2689 = vmatmul.mubr.msk.f32.gmra.mxu0 %vm154_vm0, %v81_v2 }
  0x90   :  { %2782 = vmatmul.mubr.msk.f32.gmra.mxu1 %vm154_vm0, %v143_v5 }
  0x91   :  { %2784 = vmatprep.mubr.msk.f32.mxu1 %vm154_vm0, %v144_v6 }
  0x94   :  { %2785 = vmatmul.mubr.msk.f32.gmra.mxu1 %vm154_vm0, %v145_v7 }
  0xd2   :  { %v3394_v8 = vpop.f32.mrf.mxu0 }
  0xd4   :  { %v3396_v9 = vpop.f32.mrf.mxu0  ;;  %v3417_v22 = vpop.f32.mrf.mxu1 }
  0xd5   :  { %v1244_v11 = vadd.f32 %v3394_v8, %v3396_v9  ;;  %5875 = vst [vmem:[#allocation5_spill] sm:$0xff] %v3417_v22 }
  0xd6   :  { %v3398_v10 = vpop.f32.mrf.mxu0  ;;  %v3425_v27 = vpop.f32.mrf.mxu1 }
  0xd8   :  { %v3402_v12 = vpop.f32.mrf.mxu0  ;;  %v3433_v32 = vpop.f32.mrf.mxu1 }
  0xd9   :  { %v1245_v13 = vadd.f32 %v1244_v11, %v3402_v12  ;;  %5876 = vst [vmem:[#allocation6_spill] sm:$0xff] %v3433_v32 }
  0xda   :  { %v3405_v14 = vpop.f32.mrf.mxu0  ;;  %v3441_v37 = vpop.f32.mrf.mxu1 }
  0xdb   :  { %v1246_v15 = vadd.f32 %v3398_v10, %v1245_v13 }
  0xdc   :  { %v3408_v16 = vpop.f32.mrf.mxu0  ;;  %v3449_v42 = vpop.f32.mrf.mxu1 }
  0xdd   :  { %v1247_v17 = vadd.f32 %v1246_v15, %v3408_v16  ;;  %5877 = vst [vmem:[#allocation7_spill] sm:$0xff] %v3449_v42 }
  0xde   :  { %v3411_v18 = vpop.f32.mrf.mxu0  ;;  %v3457_v47 = vpop.f32.mrf.mxu1 }
  0xdf   :  { %v1248_v19 = vadd.f32 %v3405_v14, %v1247_v17 }
  0xe0   :  { %v3414_v20 = vpop.f32.mrf.mxu0 }
  0xe1   :  { %v1249_v21 = vadd.f32 %v1248_v19, %v3414_v20 }
  0xe2   :  { %v3419_v23 = vpop.f32.mrf.mxu0 }
  0xe3   :  { %v1250_v24 = vadd.f32 %v3411_v18, %v1249_v21 }
  0xe4   :  { %v3422_v25 = vpop.f32.mrf.mxu0  ;;  %v3465_v52 = vpop.f32.mrf.mxu1 }
  0xe5   :  { %v1251_v26 = vadd.f32 %v1250_v24, %v3422_v25  ;;  %5878 = vst [vmem:[#allocation8_spill] sm:$0xff] %v3465_v52 }
  0xe6   :  { %v3427_v28 = vpop.f32.mrf.mxu0  ;;  %v3473_v57 = vpop.f32.mrf.mxu1 }
  0xe7   :  { %v1252_v29 = vadd.f32 %v3419_v23, %v1251_v26 }
  0xe8   :  { %v3430_v30 = vpop.f32.mrf.mxu0  ;;  %v3481_v62 = vpop.f32.mrf.mxu1 }
  0xe9   :  { %v1253_v31 = vadd.f32 %v1252_v29, %v3430_v30  ;;  %5881 = vst [vmem:[#allocation11_spill] sm:$0xff] %v3481_v62 }
  0xea   :  { %v3435_v33 = vpop.f32.mrf.mxu0  ;;  %v3489_v3 = vpop.f32.mrf.mxu1 }
  0xeb   :  { %v1254_v34 = vadd.f32 %v3427_v28, %v1253_v31 }
  0xec   :  { %v3438_v35 = vpop.f32.mrf.mxu0  ;;  %v3497_v11 = vpop.f32.mrf.mxu1 }
  0xed   :  { %v1255_v36 = vadd.f32 %v1254_v34, %v3438_v35  ;;  %5886 = vst [vmem:[#allocation16_spill] sm:$0xff] %v3497_v11 }
  0xee   :  { %v3443_v38 = vpop.f32.mrf.mxu0  ;;  %v3505_v21 = vpop.f32.mrf.mxu1 }
  0xef   :  { %v1256_v39 = vadd.f32 %v3435_v33, %v1255_v36 }
  0xf0   :  { %v3446_v40 = vpop.f32.mrf.mxu0  ;;  %v3513_v34 = vpop.f32.mrf.mxu1 }
  0xf1   :  { %v1257_v41 = vadd.f32 %v1256_v39, %v3446_v40  ;;  %5891 = vst [vmem:[#allocation21_spill] sm:$0xff] %v3513_v34 }
  0xf2   :  { %v3451_v43 = vpop.f32.mrf.mxu0 }
  0xf3   :  { %v1258_v44 = vadd.f32 %v3443_v38, %v1257_v41 }
  0xf4   :  { %v3454_v45 = vpop.f32.mrf.mxu0 }
  0xf5   :  { %v1259_v46 = vadd.f32 %v1258_v44, %v3454_v45 }
  0xf6   :  { %v3459_v48 = vpop.f32.mrf.mxu0 }
  0xf7   :  { %v1260_v49 = vadd.f32 %v3451_v43, %v1259_v46  ;;  %v3521_v46 = vpop.f32.mrf.mxu1 }
  0xf8   :  { %v3462_v50 = vpop.f32.mrf.mxu0 }
  0xf9   :  { %v1261_v51 = vadd.f32 %v1260_v49, %v3462_v50 }
  0xfa   :  { %v3467_v53 = vpop.f32.mrf.mxu0 }
  0xfb   :  { %v1262_v54 = vadd.f32 %v3459_v48, %v1261_v51 }
  0xfc   :  { %v3470_v55 = vpop.f32.mrf.mxu0 }
  0xfd   :  { %v1263_v56 = vadd.f32 %v1262_v54, %v3470_v55 }
  0xfe   :  { %v3475_v58 = vpop.f32.mrf.mxu0 }
  0xff   :  { %5879 = vst [vmem:[#allocation9_spill] sm:$0xff] %v3475_v58  ;;  %v1264_v59 = vadd.f32 %v3467_v53, %v1263_v56 }
 0x100   :  { %v3478_v60 = vpop.f32.mrf.mxu0 }
 0x101   :  { %5880 = vst [vmem:[#allocation10_spill] sm:$0xff] %v3478_v60  ;;  %v1265_v61 = vadd.f32 %v1264_v59, %v3478_v60  ;;  %v3529_v59 = vpop.f32.mrf.mxu1 }
 0x102   :  { %v3483_v63 = vpop.f32.mrf.mxu0  ;;  %5896 = vst [vmem:[#allocation26_spill] sm:$0xff] %v3529_v59 }
 0x103   :  { %5882 = vst [vmem:[#allocation12_spill] sm:$0xff] %v3483_v63  ;;  %v1266_v0 = vadd.f32 %v3475_v58, %v1265_v61 }
 0x104   :  { %v3486_v1 = vpop.f32.mrf.mxu0 }
 0x105   :  { %5883 = vst [vmem:[#allocation13_spill] sm:$0xff] %v3486_v1  ;;  %v1267_v2 = vadd.f32 %v1266_v0, %v3486_v1 }
 0x106   :  { %v3491_v4 = vpop.f32.mrf.mxu0 }
 0x107   :  { %5884 = vst [vmem:[#allocation14_spill] sm:$0xff] %v3491_v4  ;;  %v1268_v5 = vadd.f32 %v3483_v63, %v1267_v2 }
 0x108   :  { %v3494_v6 = vpop.f32.mrf.mxu0 }
 0x109   :  { %5885 = vst [vmem:[#allocation15_spill] sm:$0xff] %v3494_v6  ;;  %v1269_v7 = vadd.f32 %v1268_v5, %v3494_v6 }
 0x10a   :  { %v3499_v13 = vpop.f32.mrf.mxu0 }
 0x10b   :  { %5887 = vst [vmem:[#allocation17_spill] sm:$0xff] %v3499_v13  ;;  %v1270_v15 = vadd.f32 %v3491_v4, %v1269_v7  ;;  %v3537_v7 = vpop.f32.mrf.mxu1 }
 0x10c   :  { %v3502_v17 = vpop.f32.mrf.mxu0 }
 0x10d   :  { %5888 = vst [vmem:[#allocation18_spill] sm:$0xff] %v3502_v17  ;;  %v1271_v19 = vadd.f32 %v1270_v15, %v3502_v17 }
 0x10e   :  { %v3507_v24 = vpop.f32.mrf.mxu0 }
 0x10f   :  { %5889 = vst [vmem:[#allocation19_spill] sm:$0xff] %v3507_v24  ;;  %v1272_v26 = vadd.f32 %v3499_v13, %v1271_v19 }
 0x110   :  { %v3510_v29 = vpop.f32.mrf.mxu0 }
 0x111   :  { %5890 = vst [vmem:[#allocation20_spill] sm:$0xff] %v3510_v29  ;;  %v1273_v31 = vadd.f32 %v1272_v26, %v3510_v29 }
 0x112   :  { %v3515_v36 = vpop.f32.mrf.mxu0 }
 0x113   :  { %5892 = vst [vmem:[#allocation22_spill] sm:$0xff] %v3515_v36  ;;  %v1274_v39 = vadd.f32 %v3507_v24, %v1273_v31 }
 0x114   :  { %v3518_v41 = vpop.f32.mrf.mxu0 }
 0x115   :  { %5893 = vst [vmem:[#allocation23_spill] sm:$0xff] %v3518_v41  ;;  %v1275_v44 = vadd.f32 %v1274_v39, %v3518_v41  ;;  %v3545_v39 = vpop.f32.mrf.mxu1 }
 0x116   :  { %v3523_v49 = vpop.f32.mrf.mxu0  ;;  %5901 = vst [vmem:[#allocation31_spill] sm:$0xff] %v3545_v39 }
 0x117   :  { %5894 = vst [vmem:[#allocation24_spill] sm:$0xff] %v3523_v49  ;;  %v1276_v51 = vadd.f32 %v3515_v36, %v1275_v44 }
 0x118   :  { %v3526_v54 = vpop.f32.mrf.mxu0 }
 0x119   :  { %5895 = vst [vmem:[#allocation25_spill] sm:$0xff] %v3526_v54  ;;  %v1277_v56 = vadd.f32 %v1276_v51, %v3526_v54 }
 0x11a   :  { %v3531_v61 = vpop.f32.mrf.mxu0 }
 0x11b   :  { %5897 = vst [vmem:[#allocation27_spill] sm:$0xff] %v3531_v61  ;;  %v1278_v0 = vadd.f32 %v3523_v49, %v1277_v56 }
 0x11c   :  { %v3534_v2 = vpop.f32.mrf.mxu0 }
 0x11d   :  { %5898 = vst [vmem:[#allocation28_spill] sm:$0xff] %v3534_v2  ;;  %v1279_v5 = vadd.f32 %v1278_v0, %v3534_v2  ;;  %v3553_v2 = vpop.f32.mrf.mxu1 }
 0x11e   :  { %v3539_v15 = vpop.f32.mrf.mxu0 }
 0x11f   :  { %5899 = vst [vmem:[#allocation29_spill] sm:$0xff] %v3539_v15  ;;  %v1280_v19 = vadd.f32 %v3531_v61, %v1279_v5 }
 0x120   :  { %v3542_v26 = vpop.f32.mrf.mxu0 }
 0x121   :  { %5900 = vst [vmem:[#allocation30_spill] sm:$0xff] %v3542_v26  ;;  %v1281_v31 = vadd.f32 %v1280_v19, %v3542_v26  ;;  %v3561_v26 = vpop.f32.mrf.mxu1 }
 0x122   :  { %v3547_v44 = vpop.f32.mrf.mxu0  ;;  %5906 = vst [vmem:[#allocation36_spill] sm:$0xff] %v3561_v26 }
 0x123   :  { %5902 = vst [vmem:[#allocation32_spill] sm:$0xff] %v3547_v44  ;;  %v1282_v51 = vadd.f32 %v3539_v15, %v1281_v31 }
 0x124   :  { %v3550_v56 = vpop.f32.mrf.mxu0 }
 0x125   :  { %5903 = vst [vmem:[#allocation33_spill] sm:$0xff] %v3550_v56  ;;  %v1283_v0 = vadd.f32 %v1282_v51, %v3550_v56  ;;  %v3569_v56 = vpop.f32.mrf.mxu1 }
 0x126   :  { %v3555_v49 = vpop.f32.mrf.mxu0 }
 0x127   :  { %5904 = vst [vmem:[#allocation34_spill] sm:$0xff] %v3555_v49  ;;  %v1284_v5 = vadd.f32 %v3547_v44, %v1283_v0 }
 0x128   :  { %v3558_v61 = vpop.f32.mrf.mxu0 }
 0x129   :  { %5905 = vst [vmem:[#allocation35_spill] sm:$0xff] %v3558_v61  ;;  %v1285_v19 = vadd.f32 %v1284_v5, %v3558_v61  ;;  %v3577_v61 = vpop.f32.mrf.mxu1 }
 0x12a   :  { %v3563_v54 = vpop.f32.mrf.mxu0  ;;  %5911 = vst [vmem:[#allocation41_spill] sm:$0xff] %v3577_v61 }
 0x12b   :  { %5907 = vst [vmem:[#allocation37_spill] sm:$0xff] %v3563_v54  ;;  %v1286_v31 = vadd.f32 %v3555_v49, %v1285_v19 }
 0x12c   :  { %v3566_v15 = vpop.f32.mrf.mxu0 }
 0x12d   :  { %5908 = vst [vmem:[#allocation38_spill] sm:$0xff] %v3566_v15  ;;  %v1287_v51 = vadd.f32 %v1286_v31, %v3566_v15  ;;  %v3585_v15 = vpop.f32.mrf.mxu1 }
 0x12e   :  { %v3571_v36 = vpop.f32.mrf.mxu0 }
 0x12f   :  { %5909 = vst [vmem:[#allocation39_spill] sm:$0xff] %v3571_v36  ;;  %v1288_v0 = vadd.f32 %v3563_v54, %v1287_v51 }
 0x130   :  { %v3574_v44 = vpop.f32.mrf.mxu0 }
 0x131   :  { %5910 = vst [vmem:[#allocation40_spill] sm:$0xff] %v3574_v44  ;;  %v1289_v5 = vadd.f32 %v1288_v0, %v3574_v44  ;;  %v3593_v44 = vpop.f32.mrf.mxu1 }
 0x132   :  { %v3579_v41 = vpop.f32.mrf.mxu0  ;;  %5916 = vst [vmem:[#allocation46_spill] sm:$0xff] %v3593_v44 }
 0x133   :  { %5912 = vst [vmem:[#allocation42_spill] sm:$0xff] %v3579_v41  ;;  %v1290_v19 = vadd.f32 %v3571_v36, %v1289_v5 }
 0x134   :  { %v3582_v49 = vpop.f32.mrf.mxu0 }
 0x135   :  { %5913 = vst [vmem:[#allocation43_spill] sm:$0xff] %v3582_v49  ;;  %v1291_v31 = vadd.f32 %v1290_v19, %v3582_v49  ;;  %v3601_v49 = vpop.f32.mrf.mxu1 }
 0x136   :  { %v3587_v24 = vpop.f32.mrf.mxu0 }
 0x137   :  { %5914 = vst [vmem:[#allocation44_spill] sm:$0xff] %v3587_v24  ;;  %v1292_v51 = vadd.f32 %v3579_v41, %v1291_v31 }
 0x138   :  { %v3590_v54 = vpop.f32.mrf.mxu0 }
 0x139   :  { %5915 = vst [vmem:[#allocation45_spill] sm:$0xff] %v3590_v54  ;;  %v1293_v0 = vadd.f32 %v1292_v51, %v3590_v54  ;;  %v3609_v54 = vpop.f32.mrf.mxu1 }
 0x13a   :  { %v3595_v29 = vpop.f32.mrf.mxu0  ;;  %5921 = vst [vmem:[#allocation51_spill] sm:$0xff] %v3609_v54 }
 0x13b   :  { %5917 = vst [vmem:[#allocation47_spill] sm:$0xff] %v3595_v29  ;;  %v1294_v5 = vadd.f32 %v3587_v24, %v1293_v0 }
 0x13c   :  { %v3598_v36 = vpop.f32.mrf.mxu0 }
 0x13d   :  { %5918 = vst [vmem:[#allocation48_spill] sm:$0xff] %v3598_v36  ;;  %v1295_v19 = vadd.f32 %v1294_v5, %v3598_v36  ;;  %v3617_v36 = vpop.f32.mrf.mxu1 }
 0x13e   :  { %v3603_v13 = vpop.f32.mrf.mxu0 }
 0x13f   :  { %5919 = vst [vmem:[#allocation49_spill] sm:$0xff] %v3603_v13  ;;  %v1296_v31 = vadd.f32 %v3595_v29, %v1295_v19 }
 0x140   :  { %v3606_v41 = vpop.f32.mrf.mxu0 }
 0x141   :  { %5920 = vst [vmem:[#allocation50_spill] sm:$0xff] %v3606_v41  ;;  %v1297_v51 = vadd.f32 %v1296_v31, %v3606_v41  ;;  %v3625_v41 = vpop.f32.mrf.mxu1 }
 0x142   :  { %v3611_v17 = vpop.f32.mrf.mxu0  ;;  %5926 = vst [vmem:[#allocation56_spill] sm:$0xff] %v3625_v41 }
 0x143   :  { %5922 = vst [vmem:[#allocation52_spill] sm:$0xff] %v3611_v17  ;;  %v1298_v0 = vadd.f32 %v3603_v13, %v1297_v51 }
 0x144   :  { %v3614_v24 = vpop.f32.mrf.mxu0 }
 0x145   :  { %5923 = vst [vmem:[#allocation53_spill] sm:$0xff] %v3614_v24  ;;  %v1299_v5 = vadd.f32 %v1298_v0, %v3614_v24  ;;  %v3633_v24 = vpop.f32.mrf.mxu1 }
 0x146   :  { %v3619_v4 = vpop.f32.mrf.mxu0 }
 0x147   :  { %5924 = vst [vmem:[#allocation54_spill] sm:$0xff] %v3619_v4  ;;  %v1300_v19 = vadd.f32 %v3611_v17, %v1299_v5 }
 0x148   :  { %v3622_v29 = vpop.f32.mrf.mxu0 }
 0x149   :  { %5925 = vst [vmem:[#allocation55_spill] sm:$0xff] %v3622_v29  ;;  %v1301_v31 = vadd.f32 %v1300_v19, %v3622_v29  ;;  %v3641_v29 = vpop.f32.mrf.mxu1 }
 0x14a   :  { %v3627_v6 = vpop.f32.mrf.mxu0  ;;  %5930 = vst [vmem:[#allocation60_spill] sm:$0xff] %v3641_v29 }
 0x14b   :  { %5927 = vst [vmem:[#allocation57_spill] sm:$0xff] %v3627_v6  ;;  %v1302_v51 = vadd.f32 %v3619_v4, %v1301_v31  ;;  %v3645_v4 = vpop.f32.mrf.mxu1 }
 0x14c   :  { %v3630_v13 = vpop.f32.mrf.mxu0 }
 0x14d   :  { %5928 = vst [vmem:[#allocation58_spill] sm:$0xff] %v3630_v13  ;;  %v1303_v0 = vadd.f32 %v1302_v51, %v3630_v13  ;;  %v3649_v58 = vpop.f32.mrf.mxu1 }
 0x14e   :  { %v3635_v63 = vpop.f32.mrf.mxu0  ;;  %5931 = vst [vmem:[#allocation61_spill] sm:$0xff] %v3649_v58 }
 0x14f   :  { %5929 = vst [vmem:[#allocation59_spill] sm:$0xff] %v3635_v63  ;;  %v1304_v5 = vadd.f32 %v3627_v6, %v1303_v0  ;;  %v3653_v60 = vpop.f32.mrf.mxu1 }
 0x150   :  { %v3638_v17 = vpop.f32.mrf.mxu0 }
 0x151   :  { %v1305_v19 = vadd.f32 %v1304_v5, %v3638_v17 }
 0x153   :  { %v1306_v1 = vadd.f32 %v3635_v63, %v1305_v19  ;;  %v3657_v63 = vpop.f32.mrf.mxu1 }
 0x154   :  { %5932 = vst [vmem:[#allocation62_spill] sm:$0xff] %v3657_v63 }
 0x155   :  { %v1307_v31 = vadd.f32 %v1306_v1, %v3425_v27 }
 0x157   :  { %v1308_v51 = vadd.f32 %v3417_v22, %v1307_v31  ;;  %v3661_v22 = vpop.f32.mrf.mxu1 }
 0x159   :  { %v1309_v13 = vadd.f32 %v1308_v51, %v3441_v37 }
 0x15b   :  { %v1310_v0 = vadd.f32 %v3433_v32, %v1309_v13  ;;  %v3665_v32 = vpop.f32.mrf.mxu1 }
 0x15c   :  { %5933 = vst [vmem:[#allocation63_spill] sm:$0xff] %v3665_v32 }
 0x15d   :  { %v1311_v6 = vadd.f32 %v1310_v0, %v3457_v47 }
 0x15f   :  { %v1312_v5 = vadd.f32 %v3449_v42, %v1311_v6  ;;  %v3669_v42 = vpop.f32.mrf.mxu1 }
 0x161   :  { %v1313_v19 = vadd.f32 %v1312_v5, %v3473_v57 }
 0x163   :  { %v1314_v1 = vadd.f32 %v3465_v52, %v1313_v19  ;;  %v3673_v52 = vpop.f32.mrf.mxu1 }
 0x164   :  { %5934 = vst [vmem:[#allocation64_spill] sm:$0xff] %v3673_v52 }
 0x165   :  { %v1315_v31 = vadd.f32 %v1314_v1, %v3489_v3 }
 0x167   :  { %v1316_v51 = vadd.f32 %v3481_v62, %v1315_v31  ;;  %v3677_v62 = vpop.f32.mrf.mxu1 }
 0x169   :  { %v1317_v13 = vadd.f32 %v1316_v51, %v3505_v21 }
 0x16b   :  { %v1318_v0 = vadd.f32 %v3497_v11, %v1317_v13  ;;  %v3681_v11 = vpop.f32.mrf.mxu1 }
 0x16c   :  { %5935 = vst [vmem:[#allocation65_spill] sm:$0xff] %v3681_v11 }
 0x16d   :  { %v1319_v6 = vadd.f32 %v1318_v0, %v3521_v46 }
 0x16f   :  { %v1320_v5 = vadd.f32 %v3513_v34, %v1319_v6  ;;  %v3685_v34 = vpop.f32.mrf.mxu1 }
 0x171   :  { %v1321_v19 = vadd.f32 %v1320_v5, %v3537_v7 }
 0x173   :  { %v1322_v1 = vadd.f32 %v3529_v59, %v1321_v19  ;;  %v3689_v59 = vpop.f32.mrf.mxu1 }
 0x174   :  { %5936 = vst [vmem:[#allocation66_spill] sm:$0xff] %v3689_v59 }
 0x175   :  { %v1323_v31 = vadd.f32 %v1322_v1, %v3553_v2 }
 0x177   :  { %v1324_v51 = vadd.f32 %v3545_v39, %v1323_v31  ;;  %v3693_v39 = vpop.f32.mrf.mxu1 }
 0x179   :  { %v1325_v13 = vadd.f32 %v1324_v51, %v3569_v56 }
 0x17b   :  { %v1326_v0 = vadd.f32 %v3561_v26, %v1325_v13  ;;  %v3697_v26 = vpop.f32.mrf.mxu1 }
 0x17c   :  { %5937 = vst [vmem:[#allocation67_spill] sm:$0xff] %v3697_v26 }
 0x17d   :  { %v1327_v6 = vadd.f32 %v1326_v0, %v3585_v15 }
 0x17f   :  { %v1328_v5 = vadd.f32 %v3577_v61, %v1327_v6  ;;  %v3701_v61 = vpop.f32.mrf.mxu1 }
 0x181   :  { %v1329_v19 = vadd.f32 %v1328_v5, %v3601_v49 }
 0x183   :  { %v1330_v1 = vadd.f32 %v3593_v44, %v1329_v19  ;;  %v3705_v44 = vpop.f32.mrf.mxu1 }
 0x184   :  { %5938 = vst [vmem:[#allocation68_spill] sm:$0xff] %v3705_v44 }
 0x185   :  { %v1331_v31 = vadd.f32 %v1330_v1, %v3617_v36 }
 0x187   :  { %v1332_v51 = vadd.f32 %v3609_v54, %v1331_v31  ;;  %v3709_v54 = vpop.f32.mrf.mxu1 }
 0x189   :  { %v1333_v13 = vadd.f32 %v1332_v51, %v3633_v24 }
 0x18b   :  { %v1334_v0 = vadd.f32 %v3625_v41, %v1333_v13  ;;  %v3713_v41 = vpop.f32.mrf.mxu1 }
 0x18c   :  { %5939 = vst [vmem:[#allocation69_spill] sm:$0xff] %v3713_v41 }
 0x18d   :  { %v1335_v6 = vadd.f32 %v1334_v0, %v3645_v4 }
 0x18f   :  { %v1336_v5 = vadd.f32 %v3641_v29, %v1335_v6  ;;  %v3717_v29 = vpop.f32.mrf.mxu1 }
 0x190   :  { %5940 = vst [vmem:[#allocation70_spill] sm:$0xff] %v3717_v29 }
 0x191   :  { %v1337_v19 = vadd.f32 %v1336_v5, %v3653_v60 }
 0x193   :  { %v1338_v1 = vadd.f32 %v3649_v58, %v1337_v19  ;;  %v3721_v58 = vpop.f32.mrf.mxu1 }
 0x194   :  { %5941 = vst [vmem:[#allocation71_spill] sm:$0xff] %v3721_v58 }
 0x195   :  { %v1339_v31 = vadd.f32 %v1338_v1, %v3661_v22 }
 0x197   :  { %v1340_v51 = vadd.f32 %v3657_v63, %v1339_v31  ;;  %v3725_v63 = vpop.f32.mrf.mxu1 }
 0x198   :  { %5942 = vst [vmem:[#allocation72_spill] sm:$0xff] %v3725_v63 }
 0x199   :  { %v1341_v13 = vadd.f32 %v1340_v51, %v3669_v42 }
 0x19b   :  { %v1342_v0 = vadd.f32 %v3665_v32, %v1341_v13  ;;  %v3729_v32 = vpop.f32.mrf.mxu1 }
 0x19c   :  { %5943 = vst [vmem:[#allocation73_spill] sm:$0xff] %v3729_v32 }
 0x19d   :  { %v1343_v6 = vadd.f32 %v1342_v0, %v3677_v62 }
 0x19f   :  { %v1344_v5 = vadd.f32 %v3673_v52, %v1343_v6  ;;  %v3733_v52 = vpop.f32.mrf.mxu1 }
 0x1a0   :  { %5944 = vst [vmem:[#allocation74_spill] sm:$0xff] %v3733_v52 }
 0x1a1   :  { %v1345_v19 = vadd.f32 %v1344_v5, %v3685_v34 }
 0x1a3   :  { %v1346_v1 = vadd.f32 %v3681_v11, %v1345_v19  ;;  %v3737_v11 = vpop.f32.mrf.mxu1 }
 0x1a4   :  { %5945 = vst [vmem:[#allocation75_spill] sm:$0xff] %v3737_v11 }
 0x1a5   :  { %v1347_v31 = vadd.f32 %v1346_v1, %v3693_v39 }
 0x1a7   :  { %v1348_v51 = vadd.f32 %v3689_v59, %v1347_v31  ;;  %v3741_v59 = vpop.f32.mrf.mxu1 }
 0x1a8   :  { %5946 = vst [vmem:[#allocation76_spill] sm:$0xff] %v3741_v59 }
 0x1a9   :  { %v1349_v13 = vadd.f32 %v1348_v51, %v3701_v61 }
 0x1ab   :  { %v1350_v0 = vadd.f32 %v3697_v26, %v1349_v13  ;;  %v3745_v26 = vpop.f32.mrf.mxu1 }
 0x1ac   :  { %5947 = vst [vmem:[#allocation77_spill] sm:$0xff] %v3745_v26 }
 0x1ad   :  { %v1351_v6 = vadd.f32 %v1350_v0, %v3709_v54 }
 0x1af   :  { %v1352_v5 = vadd.f32 %v3705_v44, %v1351_v6  ;;  %v3749_v44 = vpop.f32.mrf.mxu1 }
 0x1b0   :  { %5948 = vst [vmem:[#allocation78_spill] sm:$0xff] %v3749_v44 }
 0x1b1   :  { %v1353_v19 = vadd.f32 %v1352_v5, %v3717_v29 }
 0x1b3   :  { %v1354_v1 = vadd.f32 %v3713_v41, %v1353_v19  ;;  %v3753_v41 = vpop.f32.mrf.mxu1 }
 0x1b4   :  { %5949 = vst [vmem:[#allocation79_spill] sm:$0xff] %v3753_v41 }
 0x1b5   :  { %v1355_v31 = vadd.f32 %v1354_v1, %v3725_v63  ;;  %v3756_v63 = vpop.f32.mrf.mxu1 }
 0x1b6   :  { %5950 = vst [vmem:[#allocation80_spill] sm:$0xff] %v3756_v63 }
 0x1b7   :  { %v1356_v51 = vadd.f32 %v3721_v58, %v1355_v31 }
 0x1b9   :  { %v1357_v13 = vadd.f32 %v1356_v51, %v3733_v52  ;;  %v3759_v51 = vpop.f32.mrf.mxu1 }
 0x1bb   :  { %v1358_v0 = vadd.f32 %v3729_v32, %v1357_v13  ;;  %v3762_v32 = vpop.f32.mrf.mxu1 }
 0x1bc   :  { %5951 = vst [vmem:[#allocation81_spill] sm:$0xff] %v3762_v32 }
 0x1bd   :  { %v1359_v6 = vadd.f32 %v1358_v0, %v3741_v59  ;;  %v3765_v59 = vpop.f32.mrf.mxu1 }
 0x1bf   :  { %v1360_v5 = vadd.f32 %v3737_v11, %v1359_v6 }
 0x1c1   :  { %v1361_v19 = vadd.f32 %v1360_v5, %v3749_v44  ;;  %v3768_v5 = vpop.f32.mrf.mxu1 }
 0x1c3   :  { %v1362_v1 = vadd.f32 %v3745_v26, %v1361_v19  ;;  %v3771_v26 = vpop.f32.mrf.mxu1 }
 0x1c5   :  { %v1363_v31 = vadd.f32 %v1362_v1, %v3756_v63  ;;  %v1235_v63 = vpop.f32.mrf.mxu1 }
 0x1c7   :  { %v1364_v13 = vadd.f32 %v3753_v41, %v1363_v31 }
 0x1c9   :  { %v1365_v0 = vadd.f32 %v1364_v13, %v3762_v32 }
 0x1cb   :  { %v1366_v6 = vadd.f32 %v3759_v51, %v1365_v0 }
 0x1cd   :  { %v1367_v19 = vadd.f32 %v1366_v6, %v3768_v5 }
 0x1cf   :  { %v1368_v1 = vadd.f32 %v3765_v59, %v1367_v19 }
 0x1d1   :  { %v1369_v44 = vadd.f32 %v1368_v1, %v1235_v63 }
 0x1d3   :  { %v1370_v31 = vadd.f32 %v3771_v26, %v1369_v44 }
 0x1d5   :  { %v1371_v41 = vrot.slane %v1370_v31, 4 }
 0x1d7   :  { %v1372_v11 = vadd.f32 %v1371_v41, %v1370_v31 }
 0x1d9   :  { %v1373_v52 = vrot.slane %v1372_v11, 2 }
 0x1db   :  { %v1374_v13 = vadd.f32 %v1373_v52, %v1372_v11 }
 0x1dd   :  { %v1375_v32 = vrot.slane %v1374_v13, 1 }
 0x1df   :  { %v1376_v58 = vadd.f32 %v1375_v32, %v1374_v13 }
 0x1e1   :  { %v3775_v29 = vmul.f32 0.0009765625, %v1376_v58 }
 0x1e3   :  { %v3778_v0 = vsub.f32 %v1235_v63, %v3775_v29  ;;  %v3782_v6 = vsub.f32 %v3396_v9, %v3775_v29  ;;  %v3786_v19 = vsub.f32 %v3394_v8, %v3775_v29  ;;  %v3790_v41 = vsub.f32 %v3402_v12, %v3775_v29 }
 0x1e4   :  { %v3798_v58 = vsub.f32 %v3398_v10, %v3775_v29  ;;  %v3802_v9 = vsub.f32 %v3408_v16, %v3775_v29  ;;  %v3808_v12 = vsub.f32 %v3405_v14, %v3775_v29  ;;  %v3814_v10 = vsub.f32 %v3414_v20, %v3775_v29 }
 0x1e5   :  { %v1507_v32 = vmul.f32 %v3782_v6, %v3782_v6  ;;  %v1508_v52 = vmul.f32 %v3786_v19, %v3786_v19  ;;  %v1509_v8 = vmul.f32 %v3790_v41, %v3790_v41  ;;  %v3820_v31 = vsub.f32 %v3411_v18, %v3775_v29 }
 0x1e6   :  { %v1510_v11 = vmul.f32 %v3798_v58, %v3798_v58  ;;  %v1511_v16 = vmul.f32 %v3802_v9, %v3802_v9  ;;  %v1512_v14 = vmul.f32 %v3808_v12, %v3808_v12  ;;  %v1513_v20 = vmul.f32 %v3814_v10, %v3814_v10 }
 0x1e7   :  { %v1635_v63 = vadd.f32 %v1508_v52, %v1507_v32  ;;  %v3826_v32 = vsub.f32 %v3422_v25, %v3775_v29  ;;  %v1514_v18 = vmul.f32 %v3820_v31, %v3820_v31 }
 0x1e9   :  { %v1636_v44 = vadd.f32 %v1635_v63, %v1509_v8  ;;  %v3832_v8 = vsub.f32 %v3419_v23, %v3775_v29  ;;  %v1515_v25 = vmul.f32 %v3826_v32, %v3826_v32 }
 0x1eb   :  { %v1637_v1 = vadd.f32 %v1636_v44, %v1510_v11  ;;  %v3838_v11 = vsub.f32 %v3430_v30, %v3775_v29  ;;  %v1516_v23 = vmul.f32 %v3832_v8, %v3832_v8 }
 0x1ed   :  { %v1638_v13 = vadd.f32 %v1637_v1, %v1511_v16  ;;  %v3844_v16 = vsub.f32 %v3427_v28, %v3775_v29  ;;  %v1517_v30 = vmul.f32 %v3838_v11, %v3838_v11 }
 0x1ef   :  { %v1639_v52 = vadd.f32 %v1638_v13, %v1512_v14  ;;  %v3850_v14 = vsub.f32 %v3438_v35, %v3775_v29  ;;  %v1518_v28 = vmul.f32 %v3844_v16, %v3844_v16 }
 0x1f1   :  { %v1640_v63 = vadd.f32 %v1639_v52, %v1513_v20  ;;  %v3856_v20 = vsub.f32 %v3435_v33, %v3775_v29  ;;  %v1519_v35 = vmul.f32 %v3850_v14, %v3850_v14 }
 0x1f3   :  { %v1641_v44 = vadd.f32 %v1640_v63, %v1514_v18  ;;  %v3862_v18 = vsub.f32 %v3446_v40, %v3775_v29  ;;  %v1520_v33 = vmul.f32 %v3856_v20, %v3856_v20 }
 0x1f5   :  { %v1642_v1 = vadd.f32 %v1641_v44, %v1515_v25  ;;  %v3868_v25 = vsub.f32 %v3443_v38, %v3775_v29  ;;  %v1521_v40 = vmul.f32 %v3862_v18, %v3862_v18 }
 0x1f7   :  { %v1643_v13 = vadd.f32 %v1642_v1, %v1516_v23  ;;  %v3874_v23 = vsub.f32 %v3454_v45, %v3775_v29  ;;  %v1522_v38 = vmul.f32 %v3868_v25, %v3868_v25 }
 0x1f9   :  { %v1644_v52 = vadd.f32 %v1643_v13, %v1517_v30  ;;  %v3880_v30 = vsub.f32 %v3451_v43, %v3775_v29  ;;  %v1523_v45 = vmul.f32 %v3874_v23, %v3874_v23 }
 0x1fb   :  { %v1645_v63 = vadd.f32 %v1644_v52, %v1518_v28  ;;  %v3886_v28 = vsub.f32 %v3462_v50, %v3775_v29  ;;  %v1524_v43 = vmul.f32 %v3880_v30, %v3880_v30 }
 0x1fd   :  { %v1646_v44 = vadd.f32 %v1645_v63, %v1519_v35  ;;  %5952 = vst [vmem:[#allocation82_spill] sm:$0xff] %v3886_v28  ;;  %v3892_v35 = vsub.f32 %v3459_v48, %v3775_v29  ;;  %v1525_v50 = vmul.f32 %v3886_v28, %v3886_v28 }
 0x1ff   :  { %v1647_v1 = vadd.f32 %v1646_v44, %v1520_v33  ;;  %5953 = vst [vmem:[#allocation83_spill] sm:$0xff] %v3892_v35  ;;  %v3898_v33 = vsub.f32 %v3470_v55, %v3775_v29  ;;  %v1526_v48 = vmul.f32 %v3892_v35, %v3892_v35 }
 0x201   :  { %v1648_v13 = vadd.f32 %v1647_v1, %v1521_v40  ;;  %5954 = vst [vmem:[#allocation84_spill] sm:$0xff] %v3898_v33  ;;  %v3904_v40 = vsub.f32 %v3467_v53, %v3775_v29  ;;  %v1527_v55 = vmul.f32 %v3898_v33, %v3898_v33 }
 0x203   :  { %v1649_v52 = vadd.f32 %v1648_v13, %v1522_v38  ;;  %5955 = vst [vmem:[#allocation85_spill] sm:$0xff] %v3904_v40  ;;  %v5956_v38 = vld [vmem:[#allocation10_spill] sm:$0xff]  ;;  %v1528_v53 = vmul.f32 %v3904_v40, %v3904_v40 }
 0x204   :  { %v3910_v13 = vsub.f32 %v5956_v38, %v3775_v29  ;;  %v5962_v38 = vld [vmem:[#allocation12_spill] sm:$0xff] }
 0x205   :  { %v1650_v63 = vadd.f32 %v1649_v52, %v1523_v45  ;;  %v5958_v52 = vld [vmem:[#allocation9_spill] sm:$0xff]  ;;  %v3928_v33 = vsub.f32 %v5962_v38, %v3775_v29  ;;  %v5968_v38 = vld [vmem:[#allocation18_spill] sm:$0xff] }
 0x206   :  { %5957 = vst [vmem:[#allocation10_spill] sm:$0xff] %v3910_v13  ;;  %v3916_v28 = vsub.f32 %v5958_v52, %v3775_v29  ;;  %v5964_v52 = vld [vmem:[#allocation15_spill] sm:$0xff] }
 0x207   :  { %v1651_v44 = vadd.f32 %v1650_v63, %v1524_v43  ;;  %v5960_v63 = vld [vmem:[#allocation13_spill] sm:$0xff]  ;;  %5963 = vst [vmem:[#allocation12_spill] sm:$0xff] %v3928_v33  ;;  %v3934_v40 = vsub.f32 %v5964_v52, %v3775_v29 }
 0x208   :  { %5959 = vst [vmem:[#allocation9_spill] sm:$0xff] %v3916_v28  ;;  %v3922_v35 = vsub.f32 %v5960_v63, %v3775_v29  ;;  %v5966_v63 = vld [vmem:[#allocation14_spill] sm:$0xff]  ;;  %v5970_v52 = vld [vmem:[#allocation17_spill] sm:$0xff] }
 0x209   :  { %v1652_v1 = vadd.f32 %v1651_v44, %v1525_v50  ;;  %v1529_v50 = vmul.f32 %v3910_v13, %v3910_v13  ;;  %5965 = vst [vmem:[#allocation15_spill] sm:$0xff] %v3934_v40  ;;  %v3940_v13 = vsub.f32 %v5966_v63, %v3775_v29  ;;  %v5972_v63 = vld [vmem:[#allocation20_spill] sm:$0xff] }
 0x20a   :  { %5961 = vst [vmem:[#allocation13_spill] sm:$0xff] %v3922_v35 }
 0x20b   :  { %v1653_v45 = vadd.f32 %v1652_v1, %v1526_v48  ;;  %v1530_v48 = vmul.f32 %v3916_v28, %v3916_v28  ;;  %5967 = vst [vmem:[#allocation14_spill] sm:$0xff] %v3940_v13  ;;  %v3946_v28 = vsub.f32 %v5968_v38, %v3775_v29  ;;  %v5974_v38 = vld [vmem:[#allocation19_spill] sm:$0xff] }
 0x20d   :  { %v1654_v43 = vadd.f32 %v1653_v45, %v1527_v55  ;;  %v1531_v55 = vmul.f32 %v3922_v35, %v3922_v35  ;;  %5969 = vst [vmem:[#allocation18_spill] sm:$0xff] %v3946_v28  ;;  %v3952_v35 = vsub.f32 %v5970_v52, %v3775_v29  ;;  %v5976_v52 = vld [vmem:[#allocation23_spill] sm:$0xff] }
 0x20f   :  { %v1655_v44 = vadd.f32 %v1654_v43, %v1528_v53  ;;  %v1532_v53 = vmul.f32 %v3928_v33, %v3928_v33  ;;  %5971 = vst [vmem:[#allocation17_spill] sm:$0xff] %v3952_v35  ;;  %v3958_v33 = vsub.f32 %v5972_v63, %v3775_v29  ;;  %v5978_v63 = vld [vmem:[#allocation22_spill] sm:$0xff] }
 0x211   :  { %v1656_v1 = vadd.f32 %v1655_v44, %v1529_v50  ;;  %v1533_v50 = vmul.f32 %v3934_v40, %v3934_v40  ;;  %5973 = vst [vmem:[#allocation20_spill] sm:$0xff] %v3958_v33  ;;  %v3964_v40 = vsub.f32 %v5974_v38, %v3775_v29  ;;  %v5980_v38 = vld [vmem:[#allocation25_spill] sm:$0xff] }
 0x213   :  { %v1657_v45 = vadd.f32 %v1656_v1, %v1530_v48  ;;  %v1534_v48 = vmul.f32 %v3940_v13, %v3940_v13  ;;  %5975 = vst [vmem:[#allocation19_spill] sm:$0xff] %v3964_v40  ;;  %v3970_v13 = vsub.f32 %v5976_v52, %v3775_v29  ;;  %v5982_v52 = vld [vmem:[#allocation24_spill] sm:$0xff] }
 0x215   :  { %v1658_v43 = vadd.f32 %v1657_v45, %v1531_v55  ;;  %v1535_v55 = vmul.f32 %v3946_v28, %v3946_v28  ;;  %5977 = vst [vmem:[#allocation23_spill] sm:$0xff] %v3970_v13  ;;  %v3976_v28 = vsub.f32 %v5978_v63, %v3775_v29  ;;  %v5984_v63 = vld [vmem:[#allocation28_spill] sm:$0xff] }
 0x217   :  { %v1659_v44 = vadd.f32 %v1658_v43, %v1532_v53  ;;  %v1536_v53 = vmul.f32 %v3952_v35, %v3952_v35  ;;  %5979 = vst [vmem:[#allocation22_spill] sm:$0xff] %v3976_v28  ;;  %v3982_v35 = vsub.f32 %v5980_v38, %v3775_v29  ;;  %v5986_v38 = vld [vmem:[#allocation27_spill] sm:$0xff] }
 0x219   :  { %v1660_v1 = vadd.f32 %v1659_v44, %v1533_v50  ;;  %v1537_v50 = vmul.f32 %v3958_v33, %v3958_v33  ;;  %5981 = vst [vmem:[#allocation25_spill] sm:$0xff] %v3982_v35  ;;  %v3988_v33 = vsub.f32 %v5982_v52, %v3775_v29  ;;  %v5988_v52 = vld [vmem:[#allocation30_spill] sm:$0xff] }
 0x21b   :  { %v1661_v45 = vadd.f32 %v1660_v1, %v1534_v48  ;;  %v1538_v48 = vmul.f32 %v3964_v40, %v3964_v40  ;;  %5983 = vst [vmem:[#allocation24_spill] sm:$0xff] %v3988_v33  ;;  %v3994_v40 = vsub.f32 %v5984_v63, %v3775_v29  ;;  %v5990_v63 = vld [vmem:[#allocation29_spill] sm:$0xff] }
 0x21d   :  { %v1662_v43 = vadd.f32 %v1661_v45, %v1535_v55  ;;  %v1539_v55 = vmul.f32 %v3970_v13, %v3970_v13  ;;  %5985 = vst [vmem:[#allocation28_spill] sm:$0xff] %v3994_v40  ;;  %v4000_v13 = vsub.f32 %v5986_v38, %v3775_v29  ;;  %v5992_v38 = vld [vmem:[#allocation33_spill] sm:$0xff] }
 0x21f   :  { %v1663_v44 = vadd.f32 %v1662_v43, %v1536_v53  ;;  %v1540_v53 = vmul.f32 %v3976_v28, %v3976_v28  ;;  %5987 = vst [vmem:[#allocation27_spill] sm:$0xff] %v4000_v13  ;;  %v4006_v28 = vsub.f32 %v5988_v52, %v3775_v29  ;;  %v5994_v52 = vld [vmem:[#allocation32_spill] sm:$0xff] }
 0x221   :  { %v1664_v1 = vadd.f32 %v1663_v44, %v1537_v50  ;;  %v1541_v50 = vmul.f32 %v3982_v35, %v3982_v35  ;;  %5989 = vst [vmem:[#allocation30_spill] sm:$0xff] %v4006_v28  ;;  %v4012_v35 = vsub.f32 %v5990_v63, %v3775_v29  ;;  %v5996_v63 = vld [vmem:[#allocation35_spill] sm:$0xff] }
 0x223   :  { %v1665_v45 = vadd.f32 %v1664_v1, %v1538_v48  ;;  %v1542_v48 = vmul.f32 %v3988_v33, %v3988_v33  ;;  %5991 = vst [vmem:[#allocation29_spill] sm:$0xff] %v4012_v35  ;;  %v4018_v33 = vsub.f32 %v5992_v38, %v3775_v29  ;;  %v5998_v38 = vld [vmem:[#allocation34_spill] sm:$0xff] }
 0x225   :  { %v1666_v43 = vadd.f32 %v1665_v45, %v1539_v55  ;;  %v1543_v55 = vmul.f32 %v3994_v40, %v3994_v40  ;;  %5993 = vst [vmem:[#allocation33_spill] sm:$0xff] %v4018_v33  ;;  %v4024_v40 = vsub.f32 %v5994_v52, %v3775_v29  ;;  %v6000_v52 = vld [vmem:[#allocation38_spill] sm:$0xff] }
 0x227   :  { %v1667_v44 = vadd.f32 %v1666_v43, %v1540_v53  ;;  %v1544_v53 = vmul.f32 %v4000_v13, %v4000_v13  ;;  %5995 = vst [vmem:[#allocation32_spill] sm:$0xff] %v4024_v40  ;;  %v4030_v13 = vsub.f32 %v5996_v63, %v3775_v29  ;;  %v6002_v63 = vld [vmem:[#allocation37_spill] sm:$0xff] }
 0x229   :  { %v1668_v1 = vadd.f32 %v1667_v44, %v1541_v50  ;;  %v1545_v50 = vmul.f32 %v4006_v28, %v4006_v28  ;;  %5997 = vst [vmem:[#allocation35_spill] sm:$0xff] %v4030_v13  ;;  %v4036_v28 = vsub.f32 %v5998_v38, %v3775_v29  ;;  %v6004_v38 = vld [vmem:[#allocation40_spill] sm:$0xff] }
 0x22b   :  { %v1669_v45 = vadd.f32 %v1668_v1, %v1542_v48  ;;  %v1546_v48 = vmul.f32 %v4012_v35, %v4012_v35  ;;  %5999 = vst [vmem:[#allocation34_spill] sm:$0xff] %v4036_v28  ;;  %v4042_v35 = vsub.f32 %v6000_v52, %v3775_v29  ;;  %v6006_v52 = vld [vmem:[#allocation39_spill] sm:$0xff] }
 0x22d   :  { %v1670_v43 = vadd.f32 %v1669_v45, %v1543_v55  ;;  %v1547_v55 = vmul.f32 %v4018_v33, %v4018_v33  ;;  %6001 = vst [vmem:[#allocation38_spill] sm:$0xff] %v4042_v35  ;;  %v4048_v33 = vsub.f32 %v6002_v63, %v3775_v29  ;;  %v6008_v63 = vld [vmem:[#allocation43_spill] sm:$0xff] }
 0x22f   :  { %v1671_v44 = vadd.f32 %v1670_v43, %v1544_v53  ;;  %v1548_v53 = vmul.f32 %v4024_v40, %v4024_v40  ;;  %6003 = vst [vmem:[#allocation37_spill] sm:$0xff] %v4048_v33  ;;  %v4054_v40 = vsub.f32 %v6004_v38, %v3775_v29  ;;  %v6010_v38 = vld [vmem:[#allocation42_spill] sm:$0xff] }
 0x231   :  { %v1672_v1 = vadd.f32 %v1671_v44, %v1545_v50  ;;  %v1549_v50 = vmul.f32 %v4030_v13, %v4030_v13  ;;  %6005 = vst [vmem:[#allocation40_spill] sm:$0xff] %v4054_v40  ;;  %v4060_v13 = vsub.f32 %v6006_v52, %v3775_v29  ;;  %v6012_v52 = vld [vmem:[#allocation45_spill] sm:$0xff] }
 0x233   :  { %v1673_v45 = vadd.f32 %v1672_v1, %v1546_v48  ;;  %v1550_v48 = vmul.f32 %v4036_v28, %v4036_v28  ;;  %6007 = vst [vmem:[#allocation39_spill] sm:$0xff] %v4060_v13  ;;  %v4066_v28 = vsub.f32 %v6008_v63, %v3775_v29  ;;  %v6014_v63 = vld [vmem:[#allocation44_spill] sm:$0xff] }
 0x235   :  { %v1674_v43 = vadd.f32 %v1673_v45, %v1547_v55  ;;  %v1551_v55 = vmul.f32 %v4042_v35, %v4042_v35  ;;  %6009 = vst [vmem:[#allocation43_spill] sm:$0xff] %v4066_v28  ;;  %v4072_v35 = vsub.f32 %v6010_v38, %v3775_v29  ;;  %v6016_v38 = vld [vmem:[#allocation48_spill] sm:$0xff] }
 0x237   :  { %v1675_v44 = vadd.f32 %v1674_v43, %v1548_v53  ;;  %v1552_v53 = vmul.f32 %v4048_v33, %v4048_v33  ;;  %6011 = vst [vmem:[#allocation42_spill] sm:$0xff] %v4072_v35  ;;  %v4078_v33 = vsub.f32 %v6012_v52, %v3775_v29  ;;  %v6018_v52 = vld [vmem:[#allocation47_spill] sm:$0xff] }
 0x239   :  { %v1676_v1 = vadd.f32 %v1675_v44, %v1549_v50  ;;  %v1553_v50 = vmul.f32 %v4054_v40, %v4054_v40  ;;  %6013 = vst [vmem:[#allocation45_spill] sm:$0xff] %v4078_v33  ;;  %v4084_v40 = vsub.f32 %v6014_v63, %v3775_v29  ;;  %v6020_v63 = vld [vmem:[#allocation50_spill] sm:$0xff] }
 0x23b   :  { %v1677_v45 = vadd.f32 %v1676_v1, %v1550_v48  ;;  %v1554_v48 = vmul.f32 %v4060_v13, %v4060_v13  ;;  %6015 = vst [vmem:[#allocation44_spill] sm:$0xff] %v4084_v40  ;;  %v4090_v13 = vsub.f32 %v6016_v38, %v3775_v29  ;;  %v6022_v38 = vld [vmem:[#allocation49_spill] sm:$0xff] }
 0x23d   :  { %v1678_v43 = vadd.f32 %v1677_v45, %v1551_v55  ;;  %v1555_v55 = vmul.f32 %v4066_v28, %v4066_v28  ;;  %6017 = vst [vmem:[#allocation48_spill] sm:$0xff] %v4090_v13  ;;  %v4096_v28 = vsub.f32 %v6018_v52, %v3775_v29  ;;  %v6024_v52 = vld [vmem:[#allocation53_spill] sm:$0xff] }
 0x23f   :  { %v1679_v44 = vadd.f32 %v1678_v43, %v1552_v53  ;;  %v1556_v53 = vmul.f32 %v4072_v35, %v4072_v35  ;;  %6019 = vst [vmem:[#allocation47_spill] sm:$0xff] %v4096_v28  ;;  %v4102_v35 = vsub.f32 %v6020_v63, %v3775_v29  ;;  %v6026_v63 = vld [vmem:[#allocation52_spill] sm:$0xff] }
 0x241   :  { %v1680_v1 = vadd.f32 %v1679_v44, %v1553_v50  ;;  %v1557_v50 = vmul.f32 %v4078_v33, %v4078_v33  ;;  %6021 = vst [vmem:[#allocation50_spill] sm:$0xff] %v4102_v35  ;;  %v4108_v33 = vsub.f32 %v6022_v38, %v3775_v29  ;;  %v6027_v38 = vld [vmem:[#allocation55_spill] sm:$0xff] }
 0x243   :  { %v1681_v45 = vadd.f32 %v1680_v1, %v1554_v48  ;;  %v1558_v48 = vmul.f32 %v4084_v40, %v4084_v40  ;;  %6023 = vst [vmem:[#allocation49_spill] sm:$0xff] %v4108_v33  ;;  %v4114_v40 = vsub.f32 %v6024_v52, %v3775_v29  ;;  %v6029_v52 = vld [vmem:[#allocation54_spill] sm:$0xff] }
 0x245   :  { %v1682_v43 = vadd.f32 %v1681_v45, %v1555_v55  ;;  %v1559_v55 = vmul.f32 %v4090_v13, %v4090_v13  ;;  %6025 = vst [vmem:[#allocation53_spill] sm:$0xff] %v4114_v40  ;;  %v4120_v13 = vsub.f32 %v6026_v63, %v3775_v29  ;;  %v6030_v63 = vld [vmem:[#allocation58_spill] sm:$0xff] }
 0x247   :  { %v1683_v44 = vadd.f32 %v1682_v43, %v1556_v53  ;;  %v1560_v53 = vmul.f32 %v4096_v28, %v4096_v28  ;;  %v4126_v28 = vsub.f32 %v6027_v38, %v3775_v29  ;;  %v6032_v38 = vld [vmem:[#allocation57_spill] sm:$0xff] }
 0x249   :  { %v1684_v1 = vadd.f32 %v1683_v44, %v1557_v50  ;;  %v1561_v50 = vmul.f32 %v4102_v35, %v4102_v35  ;;  %6028 = vst [vmem:[#allocation52_spill] sm:$0xff] %v4126_v28  ;;  %v4132_v35 = vsub.f32 %v6029_v52, %v3775_v29  ;;  %v4150_v52 = vsub.f32 %v3638_v17, %v3775_v29 }
 0x24b   :  { %v1685_v45 = vadd.f32 %v1684_v1, %v1558_v48  ;;  %v1562_v48 = vmul.f32 %v4108_v33, %v4108_v33  ;;  %v4138_v33 = vsub.f32 %v6030_v63, %v3775_v29  ;;  %6033 = vst [vmem:[#allocation54_spill] sm:$0xff] %v4150_v52  ;;  %v6034_v63 = vld [vmem:[#allocation59_spill] sm:$0xff]  ;;  %v1569_v17 = vmul.f32 %v4150_v52, %v4150_v52 }
 0x24d   :  { %v1686_v43 = vadd.f32 %v1685_v45, %v1559_v55  ;;  %v1563_v55 = vmul.f32 %v4114_v40, %v4114_v40  ;;  %6031 = vst [vmem:[#allocation55_spill] sm:$0xff] %v4138_v33  ;;  %v4144_v40 = vsub.f32 %v6032_v38, %v3775_v29  ;;  %v4162_v38 = vsub.f32 %v3425_v27, %v3775_v29 }
 0x24f   :  { %v1687_v44 = vadd.f32 %v1686_v43, %v1560_v53  ;;  %v1564_v53 = vmul.f32 %v4120_v13, %v4120_v13  ;;  %6035 = vst [vmem:[#allocation58_spill] sm:$0xff] %v4162_v38  ;;  %v1571_v27 = vmul.f32 %v4162_v38, %v4162_v38 }
 0x251   :  { %v1688_v1 = vadd.f32 %v1687_v44, %v1561_v50  ;;  %v1565_v50 = vmul.f32 %v4126_v28, %v4126_v28  ;;  %v4156_v28 = vsub.f32 %v6034_v63, %v3775_v29  ;;  %v4174_v63 = vsub.f32 %v3441_v37, %v3775_v29 }
 0x253   :  { %v1689_v45 = vadd.f32 %v1688_v1, %v1562_v48  ;;  %v1566_v48 = vmul.f32 %v4132_v35, %v4132_v35  ;;  %6037 = vst [vmem:[#allocation57_spill] sm:$0xff] %v4174_v63  ;;  %v1573_v37 = vmul.f32 %v4174_v63, %v4174_v63 }
 0x255   :  { %v1690_v43 = vadd.f32 %v1689_v45, %v1563_v55  ;;  %v1567_v55 = vmul.f32 %v4138_v33, %v4138_v33 }
 0x257   :  { %v1691_v44 = vadd.f32 %v1690_v43, %v1564_v53  ;;  %v1568_v53 = vmul.f32 %v4144_v40, %v4144_v40 }
 0x259   :  { %v1692_v1 = vadd.f32 %v1691_v44, %v1565_v50  ;;  %v6036_v44 = vld [vmem:[#allocation5_spill] sm:$0xff] }
 0x25a   :  { %v4168_v33 = vsub.f32 %v6036_v44, %v3775_v29  ;;  %v4186_v44 = vsub.f32 %v3457_v47, %v3775_v29 }
 0x25b   :  { %v1693_v45 = vadd.f32 %v1692_v1, %v1566_v48  ;;  %v1570_v48 = vmul.f32 %v4156_v28, %v4156_v28 }
 0x25c   :  { %6039 = vst [vmem:[#allocation59_spill] sm:$0xff] %v4186_v44  ;;  %v1575_v47 = vmul.f32 %v4186_v44, %v4186_v44 }
 0x25d   :  { %v1694_v43 = vadd.f32 %v1693_v45, %v1567_v55  ;;  %v6038_v45 = vld [vmem:[#allocation6_spill] sm:$0xff] }
 0x25e   :  { %v4180_v52 = vsub.f32 %v6038_v45, %v3775_v29  ;;  %v4198_v45 = vsub.f32 %v3473_v57, %v3775_v29 }
 0x25f   :  { %v1695_v50 = vadd.f32 %v1694_v43, %v1568_v53  ;;  %v1572_v53 = vmul.f32 %v4168_v33, %v4168_v33 }
 0x260   :  { %6041 = vst [vmem:[#allocation5_spill] sm:$0xff] %v4198_v45  ;;  %v1577_v57 = vmul.f32 %v4198_v45, %v4198_v45 }
 0x261   :  { %v1696_v1 = vadd.f32 %v1695_v50, %v1569_v17  ;;  %v6040_v50 = vld [vmem:[#allocation7_spill] sm:$0xff] }
 0x262   :  { %v4192_v38 = vsub.f32 %v6040_v50, %v3775_v29  ;;  %v4210_v50 = vsub.f32 %v3489_v3, %v3775_v29 }
 0x263   :  { %v1697_v55 = vadd.f32 %v1696_v1, %v1570_v48  ;;  %v1574_v48 = vmul.f32 %v4180_v52, %v4180_v52 }
 0x264   :  { %6043 = vst [vmem:[#allocation6_spill] sm:$0xff] %v4210_v50  ;;  %v1579_v3 = vmul.f32 %v4210_v50, %v4210_v50 }
 0x265   :  { %v1698_v43 = vadd.f32 %v1697_v55, %v1571_v27  ;;  %v6042_v55 = vld [vmem:[#allocation8_spill] sm:$0xff] }
 0x266   :  { %v4204_v63 = vsub.f32 %v6042_v55, %v3775_v29  ;;  %v4222_v55 = vsub.f32 %v3505_v21, %v3775_v29 }
 0x267   :  { %v1699_v17 = vadd.f32 %v1698_v43, %v1572_v53  ;;  %v1576_v53 = vmul.f32 %v4192_v38, %v4192_v38 }
 0x268   :  { %6045 = vst [vmem:[#allocation7_spill] sm:$0xff] %v4222_v55  ;;  %v1581_v21 = vmul.f32 %v4222_v55, %v4222_v55 }
 0x269   :  { %v1700_v1 = vadd.f32 %v1699_v17, %v1573_v37  ;;  %v6044_v17 = vld [vmem:[#allocation11_spill] sm:$0xff] }
 0x26a   :  { %v4216_v44 = vsub.f32 %v6044_v17, %v3775_v29  ;;  %v4234_v17 = vsub.f32 %v3521_v46, %v3775_v29 }
 0x26b   :  { %v1701_v27 = vadd.f32 %v1700_v1, %v1574_v48  ;;  %v1578_v48 = vmul.f32 %v4204_v63, %v4204_v63 }
 0x26c   :  { %6047 = vst [vmem:[#allocation8_spill] sm:$0xff] %v4234_v17  ;;  %v1583_v46 = vmul.f32 %v4234_v17, %v4234_v17 }
 0x26d   :  { %v1702_v43 = vadd.f32 %v1701_v27, %v1575_v47  ;;  %v6046_v27 = vld [vmem:[#allocation16_spill] sm:$0xff] }
 0x26e   :  { %v4228_v45 = vsub.f32 %v6046_v27, %v3775_v29  ;;  %v4246_v27 = vsub.f32 %v3537_v7, %v3775_v29 }
 0x26f   :  { %v1703_v37 = vadd.f32 %v1702_v43, %v1576_v53  ;;  %v1580_v53 = vmul.f32 %v4216_v44, %v4216_v44 }
 0x270   :  { %6049 = vst [vmem:[#allocation11_spill] sm:$0xff] %v4246_v27  ;;  %v1585_v7 = vmul.f32 %v4246_v27, %v4246_v27 }
 0x271   :  { %v1704_v1 = vadd.f32 %v1703_v37, %v1577_v57  ;;  %v6048_v37 = vld [vmem:[#allocation21_spill] sm:$0xff] }
 0x272   :  { %v4240_v50 = vsub.f32 %v6048_v37, %v3775_v29  ;;  %v4258_v37 = vsub.f32 %v3553_v2, %v3775_v29 }
 0x273   :  { %v1705_v47 = vadd.f32 %v1704_v1, %v1578_v48  ;;  %v1582_v48 = vmul.f32 %v4228_v45, %v4228_v45 }
 0x274   :  { %6051 = vst [vmem:[#allocation16_spill] sm:$0xff] %v4258_v37  ;;  %v1587_v2 = vmul.f32 %v4258_v37, %v4258_v37 }
 0x275   :  { %v1706_v43 = vadd.f32 %v1705_v47, %v1579_v3  ;;  %v6050_v47 = vld [vmem:[#allocation26_spill] sm:$0xff] }
 0x276   :  { %v4252_v55 = vsub.f32 %v6050_v47, %v3775_v29  ;;  %v4270_v47 = vsub.f32 %v3569_v56, %v3775_v29 }
 0x277   :  { %v1707_v57 = vadd.f32 %v1706_v43, %v1580_v53  ;;  %v1584_v53 = vmul.f32 %v4240_v50, %v4240_v50 }
 0x278   :  { %6053 = vst [vmem:[#allocation21_spill] sm:$0xff] %v4270_v47  ;;  %v1589_v56 = vmul.f32 %v4270_v47, %v4270_v47 }
 0x279   :  { %v1708_v1 = vadd.f32 %v1707_v57, %v1581_v21  ;;  %v6052_v57 = vld [vmem:[#allocation31_spill] sm:$0xff] }
 0x27a   :  { %v4264_v17 = vsub.f32 %v6052_v57, %v3775_v29  ;;  %v4282_v57 = vsub.f32 %v3585_v15, %v3775_v29 }
 0x27b   :  { %v1709_v3 = vadd.f32 %v1708_v1, %v1582_v48  ;;  %v1586_v48 = vmul.f32 %v4252_v55, %v4252_v55 }
 0x27c   :  { %6055 = vst [vmem:[#allocation26_spill] sm:$0xff] %v4282_v57  ;;  %v1591_v15 = vmul.f32 %v4282_v57, %v4282_v57 }
 0x27d   :  { %v1710_v43 = vadd.f32 %v1709_v3, %v1583_v46  ;;  %v6054_v3 = vld [vmem:[#allocation36_spill] sm:$0xff] }
 0x27e   :  { %v4276_v27 = vsub.f32 %v6054_v3, %v3775_v29  ;;  %v4294_v3 = vsub.f32 %v3601_v49, %v3775_v29 }
 0x27f   :  { %v1711_v21 = vadd.f32 %v1710_v43, %v1584_v53  ;;  %v1588_v53 = vmul.f32 %v4264_v17, %v4264_v17 }
 0x280   :  { %6057 = vst [vmem:[#allocation31_spill] sm:$0xff] %v4294_v3  ;;  %v1593_v49 = vmul.f32 %v4294_v3, %v4294_v3 }
 0x281   :  { %v1712_v1 = vadd.f32 %v1711_v21, %v1585_v7  ;;  %v6056_v21 = vld [vmem:[#allocation41_spill] sm:$0xff] }
 0x282   :  { %v4288_v37 = vsub.f32 %v6056_v21, %v3775_v29  ;;  %v4306_v21 = vsub.f32 %v3617_v36, %v3775_v29 }
 0x283   :  { %v1713_v46 = vadd.f32 %v1712_v1, %v1586_v48  ;;  %v1590_v48 = vmul.f32 %v4276_v27, %v4276_v27 }
 0x284   :  { %6059 = vst [vmem:[#allocation36_spill] sm:$0xff] %v4306_v21  ;;  %v1595_v36 = vmul.f32 %v4306_v21, %v4306_v21 }
 0x285   :  { %v1714_v43 = vadd.f32 %v1713_v46, %v1587_v2  ;;  %v6058_v46 = vld [vmem:[#allocation46_spill] sm:$0xff] }
 0x286   :  { %v4300_v47 = vsub.f32 %v6058_v46, %v3775_v29  ;;  %v4318_v46 = vsub.f32 %v3633_v24, %v3775_v29 }
 0x287   :  { %v1715_v7 = vadd.f32 %v1714_v43, %v1588_v53  ;;  %v1592_v53 = vmul.f32 %v4288_v37, %v4288_v37 }
 0x288   :  { %6061 = vst [vmem:[#allocation41_spill] sm:$0xff] %v4318_v46  ;;  %v1597_v24 = vmul.f32 %v4318_v46, %v4318_v46 }
 0x289   :  { %v1716_v1 = vadd.f32 %v1715_v7, %v1589_v56  ;;  %v6060_v7 = vld [vmem:[#allocation51_spill] sm:$0xff] }
 0x28a   :  { %v4312_v57 = vsub.f32 %v6060_v7, %v3775_v29  ;;  %v4330_v7 = vsub.f32 %v3645_v4, %v3775_v29 }
 0x28b   :  { %v1717_v2 = vadd.f32 %v1716_v1, %v1590_v48  ;;  %v1594_v48 = vmul.f32 %v4300_v47, %v4300_v47 }
 0x28c   :  { %6063 = vst [vmem:[#allocation46_spill] sm:$0xff] %v4330_v7  ;;  %v1599_v4 = vmul.f32 %v4330_v7, %v4330_v7 }
 0x28d   :  { %v1718_v43 = vadd.f32 %v1717_v2, %v1591_v15  ;;  %v6062_v2 = vld [vmem:[#allocation56_spill] sm:$0xff] }
 0x28e   :  { %v4324_v3 = vsub.f32 %v6062_v2, %v3775_v29  ;;  %v4342_v2 = vsub.f32 %v3653_v60, %v3775_v29 }
 0x28f   :  { %v1719_v56 = vadd.f32 %v1718_v43, %v1592_v53  ;;  %v1596_v53 = vmul.f32 %v4312_v57, %v4312_v57 }
 0x290   :  { %6065 = vst [vmem:[#allocation51_spill] sm:$0xff] %v4342_v2  ;;  %v1601_v60 = vmul.f32 %v4342_v2, %v4342_v2 }
 0x291   :  { %v1720_v1 = vadd.f32 %v1719_v56, %v1593_v49  ;;  %v6064_v56 = vld [vmem:[#allocation60_spill] sm:$0xff] }
 0x292   :  { %v4336_v21 = vsub.f32 %v6064_v56, %v3775_v29  ;;  %v4354_v56 = vsub.f32 %v3661_v22, %v3775_v29 }
 0x293   :  { %v1721_v15 = vadd.f32 %v1720_v1, %v1594_v48  ;;  %v1598_v48 = vmul.f32 %v4324_v3, %v4324_v3 }
 0x294   :  { %6067 = vst [vmem:[#allocation56_spill] sm:$0xff] %v4354_v56  ;;  %v1603_v22 = vmul.f32 %v4354_v56, %v4354_v56 }
 0x295   :  { %v1722_v43 = vadd.f32 %v1721_v15, %v1595_v36  ;;  %v6066_v15 = vld [vmem:[#allocation61_spill] sm:$0xff] }
 0x296   :  { %v4348_v46 = vsub.f32 %v6066_v15, %v3775_v29  ;;  %v4366_v15 = vsub.f32 %v3669_v42, %v3775_v29 }
 0x297   :  { %v1723_v49 = vadd.f32 %v1722_v43, %v1596_v53  ;;  %v1600_v53 = vmul.f32 %v4336_v21, %v4336_v21 }
 0x298   :  { %6069 = vst [vmem:[#allocation60_spill] sm:$0xff] %v4366_v15  ;;  %v1605_v42 = vmul.f32 %v4366_v15, %v4366_v15 }
 0x299   :  { %v1724_v1 = vadd.f32 %v1723_v49, %v1597_v24  ;;  %v6068_v49 = vld [vmem:[#allocation62_spill] sm:$0xff] }
 0x29a   :  { %v4360_v7 = vsub.f32 %v6068_v49, %v3775_v29  ;;  %v4378_v49 = vsub.f32 %v3677_v62, %v3775_v29 }
 0x29b   :  { %v1725_v36 = vadd.f32 %v1724_v1, %v1598_v48  ;;  %v1602_v48 = vmul.f32 %v4348_v46, %v4348_v46 }
 0x29c   :  { %6071 = vst [vmem:[#allocation61_spill] sm:$0xff] %v4378_v49  ;;  %v1607_v62 = vmul.f32 %v4378_v49, %v4378_v49 }
 0x29d   :  { %v1726_v43 = vadd.f32 %v1725_v36, %v1599_v4  ;;  %v6070_v36 = vld [vmem:[#allocation63_spill] sm:$0xff] }
 0x29e   :  { %v4372_v2 = vsub.f32 %v6070_v36, %v3775_v29  ;;  %v4390_v36 = vsub.f32 %v3685_v34, %v3775_v29 }
 0x29f   :  { %v1727_v24 = vadd.f32 %v1726_v43, %v1600_v53  ;;  %v1604_v53 = vmul.f32 %v4360_v7, %v4360_v7 }
 0x2a0   :  { %6073 = vst [vmem:[#allocation62_spill] sm:$0xff] %v4390_v36  ;;  %v1609_v34 = vmul.f32 %v4390_v36, %v4390_v36 }
 0x2a1   :  { %v1728_v1 = vadd.f32 %v1727_v24, %v1601_v60  ;;  %v6072_v24 = vld [vmem:[#allocation64_spill] sm:$0xff] }
 0x2a2   :  { %v4384_v56 = vsub.f32 %v6072_v24, %v3775_v29  ;;  %v4402_v24 = vsub.f32 %v3693_v39, %v3775_v29 }
 0x2a3   :  { %v1729_v4 = vadd.f32 %v1728_v1, %v1602_v48  ;;  %v1606_v48 = vmul.f32 %v4372_v2, %v4372_v2 }
 0x2a4   :  { %6075 = vst [vmem:[#allocation63_spill] sm:$0xff] %v4402_v24  ;;  %v1611_v39 = vmul.f32 %v4402_v24, %v4402_v24 }
 0x2a5   :  { %v1730_v43 = vadd.f32 %v1729_v4, %v1603_v22  ;;  %v6074_v4 = vld [vmem:[#allocation65_spill] sm:$0xff] }
 0x2a6   :  { %v4396_v15 = vsub.f32 %v6074_v4, %v3775_v29  ;;  %v4414_v4 = vsub.f32 %v3701_v61, %v3775_v29 }
 0x2a7   :  { %v1731_v60 = vadd.f32 %v1730_v43, %v1604_v53  ;;  %v1608_v53 = vmul.f32 %v4384_v56, %v4384_v56 }
 0x2a8   :  { %6078 = vst [vmem:[#allocation65_spill] sm:$0xff] %v4414_v4  ;;  %v1613_v61 = vmul.f32 %v4414_v4, %v4414_v4 }
 0x2a9   :  { %v1732_v1 = vadd.f32 %v1731_v60, %v1605_v42  ;;  %v6076_v60 = vld [vmem:[#allocation66_spill] sm:$0xff] }
 0x2aa   :  { %v4408_v49 = vsub.f32 %v6076_v60, %v3775_v29  ;;  %v4426_v60 = vsub.f32 %v3709_v54, %v3775_v29 }
 0x2ab   :  { %v1733_v22 = vadd.f32 %v1732_v1, %v1606_v48  ;;  %v1610_v48 = vmul.f32 %v4396_v15, %v4396_v15 }
 0x2ac   :  { %6077 = vst [vmem:[#allocation64_spill] sm:$0xff] %v4408_v49  ;;  %v1615_v54 = vmul.f32 %v4426_v60, %v4426_v60 }
 0x2ad   :  { %v1734_v43 = vadd.f32 %v1733_v22, %v1607_v62  ;;  %v6079_v22 = vld [vmem:[#allocation67_spill] sm:$0xff] }
 0x2ae   :  { %v4420_v36 = vsub.f32 %v6079_v22, %v3775_v29  ;;  %6081 = vst [vmem:[#allocation67_spill] sm:$0xff] %v4426_v60  ;;  %v6084_v22 = vld [vmem:[#allocation70_spill] sm:$0xff] }
 0x2af   :  { %v1735_v42 = vadd.f32 %v1734_v43, %v1608_v53  ;;  %v1612_v53 = vmul.f32 %v4408_v49, %v4408_v49  ;;  %v4438_v49 = vsub.f32 %v6084_v22, %v3775_v29  ;;  %v6090_v22 = vld [vmem:[#allocation71_spill] sm:$0xff] }
 0x2b0   :  { %6080 = vst [vmem:[#allocation66_spill] sm:$0xff] %v4420_v36  ;;  %v4456_v60 = vsub.f32 %v6090_v22, %v3775_v29  ;;  %v6096_v22 = vld [vmem:[#allocation76_spill] sm:$0xff] }
 0x2b1   :  { %v1736_v1 = vadd.f32 %v1735_v42, %v1609_v34  ;;  %v6082_v42 = vld [vmem:[#allocation68_spill] sm:$0xff]  ;;  %6085 = vst [vmem:[#allocation70_spill] sm:$0xff] %v4438_v49 }
 0x2b2   :  { %v4432_v24 = vsub.f32 %v6082_v42, %v3775_v29  ;;  %v6088_v42 = vld [vmem:[#allocation72_spill] sm:$0xff]  ;;  %6091 = vst [vmem:[#allocation71_spill] sm:$0xff] %v4456_v60 }
 0x2b3   :  { %v1737_v62 = vadd.f32 %v1736_v1, %v1610_v48  ;;  %v1614_v48 = vmul.f32 %v4420_v36, %v4420_v36  ;;  %v4450_v36 = vsub.f32 %v6088_v42, %v3775_v29  ;;  %v6094_v42 = vld [vmem:[#allocation73_spill] sm:$0xff] }
 0x2b4   :  { %6083 = vst [vmem:[#allocation68_spill] sm:$0xff] %v4432_v24 }
 0x2b5   :  { %v1738_v43 = vadd.f32 %v1737_v62, %v1611_v39  ;;  %v6086_v62 = vld [vmem:[#allocation69_spill] sm:$0xff]  ;;  %6089 = vst [vmem:[#allocation72_spill] sm:$0xff] %v4450_v36 }
 0x2b6   :  { %v4444_v4 = vsub.f32 %v6086_v62, %v3775_v29  ;;  %v6092_v62 = vld [vmem:[#allocation74_spill] sm:$0xff] }
 0x2b7   :  { %v1739_v34 = vadd.f32 %v1738_v43, %v1612_v53  ;;  %v1616_v53 = vmul.f32 %v4432_v24, %v4432_v24  ;;  %v4462_v24 = vsub.f32 %v6092_v62, %v3775_v29  ;;  %v6098_v62 = vld [vmem:[#allocation75_spill] sm:$0xff] }
 0x2b8   :  { %6087 = vst [vmem:[#allocation69_spill] sm:$0xff] %v4444_v4 }
 0x2b9   :  { %v1740_v1 = vadd.f32 %v1739_v34, %v1613_v61  ;;  %v1617_v61 = vmul.f32 %v4438_v49, %v4438_v49  ;;  %6093 = vst [vmem:[#allocation74_spill] sm:$0xff] %v4462_v24  ;;  %v4468_v49 = vsub.f32 %v6094_v42, %v3775_v29  ;;  %v6100_v42 = vld [vmem:[#allocation78_spill] sm:$0xff] }
 0x2bb   :  { %v1741_v39 = vadd.f32 %v1740_v1, %v1614_v48  ;;  %v1618_v48 = vmul.f32 %v4444_v4, %v4444_v4  ;;  %6095 = vst [vmem:[#allocation73_spill] sm:$0xff] %v4468_v49  ;;  %v4474_v4 = vsub.f32 %v6096_v22, %v3775_v29  ;;  %v6101_v22 = vld [vmem:[#allocation77_spill] sm:$0xff] }
 0x2bd   :  { %v1742_v43 = vadd.f32 %v1741_v39, %v1615_v54  ;;  %v1619_v54 = vmul.f32 %v4450_v36, %v4450_v36  ;;  %6097 = vst [vmem:[#allocation76_spill] sm:$0xff] %v4474_v4  ;;  %v4480_v36 = vsub.f32 %v6098_v62, %v3775_v29  ;;  %v6102_v62 = vld [vmem:[#allocation80_spill] sm:$0xff] }
 0x2bf   :  { %v1743_v34 = vadd.f32 %v1742_v43, %v1616_v53  ;;  %v1620_v53 = vmul.f32 %v4456_v60, %v4456_v60  ;;  %6099 = vst [vmem:[#allocation75_spill] sm:$0xff] %v4480_v36  ;;  %v4486_v60 = vsub.f32 %v6100_v42, %v3775_v29  ;;  %v6104_v42 = vld [vmem:[#allocation79_spill] sm:$0xff] }
 0x2c1   :  { %v1744_v1 = vadd.f32 %v1743_v34, %v1617_v61  ;;  %v1621_v61 = vmul.f32 %v4462_v24, %v4462_v24  ;;  %v4492_v24 = vsub.f32 %v6101_v22, %v3775_v29  ;;  %v6106_v22 = vld [vmem:[#allocation81_spill] sm:$0xff] }
 0x2c3   :  { %v1745_v39 = vadd.f32 %v1744_v1, %v1618_v48  ;;  %v1622_v48 = vmul.f32 %v4468_v49, %v4468_v49  ;;  %v4498_v49 = vsub.f32 %v6102_v62, %v3775_v29  ;;  %v4516_v62 = vsub.f32 %v3759_v51, %v3775_v29 }
 0x2c5   :  { %v1746_v43 = vadd.f32 %v1745_v39, %v1619_v54  ;;  %v1623_v54 = vmul.f32 %v4474_v4, %v4474_v4  ;;  %6103 = vst [vmem:[#allocation78_spill] sm:$0xff] %v4498_v49  ;;  %v4504_v4 = vsub.f32 %v6104_v42, %v3775_v29  ;;  %6108 = vst [vmem:[#allocation79_spill] sm:$0xff] %v4516_v62 }
 0x2c6   :  { %v4522_v42 = vsub.f32 %v3768_v5, %v3775_v29  ;;  %v1630_v51 = vmul.f32 %v4516_v62, %v4516_v62  ;;  %v4536_v5 = vsub.f32 %v3771_v26, %v3775_v29 }
 0x2c7   :  { %v1747_v34 = vadd.f32 %v1746_v43, %v1620_v53  ;;  %v1624_v53 = vmul.f32 %v4480_v36, %v4480_v36  ;;  %6105 = vst [vmem:[#allocation77_spill] sm:$0xff] %v4504_v4  ;;  %v4510_v36 = vsub.f32 %v6106_v22, %v3775_v29  ;;  %v4528_v22 = vsub.f32 %v3765_v59, %v3775_v29 }
 0x2c8   :  { %6109 = vst [vmem:[#allocation81_spill] sm:$0xff] %v4522_v42  ;;  %6111 = vst [vmem:[#allocation87_spill] sm:$0xff] %v4536_v5  ;;  %v1633_v59 = vmul.f32 %v3778_v0, %v3778_v0  ;;  %v1634_v62 = vmul.f32 %v4536_v5, %v4536_v5 }
 0x2c9   :  { %v1748_v1 = vadd.f32 %v1747_v34, %v1621_v61  ;;  %v1625_v61 = vmul.f32 %v4486_v60, %v4486_v60  ;;  %6107 = vst [vmem:[#allocation80_spill] sm:$0xff] %v4510_v36  ;;  %6110 = vst [vmem:[#allocation86_spill] sm:$0xff] %v4528_v22 }
 0x2cb   :  { %v1749_v39 = vadd.f32 %v1748_v1, %v1622_v48  ;;  %v1626_v48 = vmul.f32 %v4492_v24, %v4492_v24 }
 0x2cd   :  { %v1750_v43 = vadd.f32 %v1749_v39, %v1623_v54  ;;  %v1627_v54 = vmul.f32 %v4498_v49, %v4498_v49 }
 0x2cf   :  { %v1751_v34 = vadd.f32 %v1750_v43, %v1624_v53  ;;  %v1628_v53 = vmul.f32 %v4504_v4, %v4504_v4 }
 0x2d1   :  { %v1752_v1 = vadd.f32 %v1751_v34, %v1625_v61  ;;  %v1629_v61 = vmul.f32 %v4510_v36, %v4510_v36 }
 0x2d3   :  { %v1753_v39 = vadd.f32 %v1752_v1, %v1626_v48  ;;  %v1631_v1 = vmul.f32 %v4522_v42, %v4522_v42 }
 0x2d5   :  { %v1754_v43 = vadd.f32 %v1753_v39, %v1627_v54  ;;  %v1632_v39 = vmul.f32 %v4528_v22, %v4528_v22  ;;  %v1774_v22 = vlaneseq }
 0x2d7   :  { %v1755_v34 = vadd.f32 %v1754_v43, %v1628_v53 }
 0x2d9   :  { %v1756_v48 = vadd.f32 %v1755_v34, %v1629_v61 }
 0x2db   :  { %v1757_v54 = vadd.f32 %v1756_v48, %v1630_v51 }
 0x2dd   :  { %v1758_v53 = vadd.f32 %v1757_v54, %v1631_v1  ;;  %v1775_v1 = vshrl.u32 %v1774_v22, 7  ;;  %v1769_v54 = vld [vmem:[%s5712_s2] sm:$0x1]  ;;  %s2830_s2 = smov [#allocation2]  }
 0x2df   :  { %v1759_v43 = vadd.f32 %v1758_v53, %v1632_v39  ;;  %v1776_v39 = vsub.s32 0, %v1775_v1 }
 0x2e1   :  { %v1760_v61 = vadd.f32 %v1759_v43, %v1633_v59 }
 0x2e3   :  { %v1761_v34 = vadd.f32 %v1760_v61, %v1634_v62  ;;  %v6112_v61 = vld [vmem:[#allocation82_spill] sm:$0xff] }
 0x2e5   :  { %v1762_v36 = vrot.slane %v1761_v34, 4 }
 0x2e7   :  { %v1763_v42 = vadd.f32 %v1762_v36, %v1761_v34  ;;  %v4552_v36 = vld [vmem:[%s5713_s3] ss:$0 sm:$0xff]  ;;  %v6113_v34 = vld [vmem:[#allocation83_spill] sm:$0xff]  ;;  %s2303_s3 = sshll.u32 %s2830_s2, 4  ;;  %s5696_s3 = int_to_ptr.vmem [resolvable:$true] %s2303_s3 }
 0x2e8   :  { %s2808_s20 = scalar_lea.vmem %s5696_s3, 16384  ;;  %p2813_p1 = scmp.lt.s32.totalorder %s5696_s3, %s5696_s3 }
 0x2e9   :  { %v1764_v51 = vrot.slane %v1763_v42, 2  ;;  %p2809_p0 = scmp.ne.s32.totalorder %s5696_s3, %s2808_s20  ;;  %p2814_p2 = scmp.lt.s32.totalorder %s2808_s20, %s2808_s20 }
 0x2eb   :  { %v1765_v48 = vadd.f32 %v1764_v51, %v1763_v42  ;;  %v6114_v51 = vld [vmem:[#allocation84_spill] sm:$0xff]  ;;  %p2815_p3 = por %p2814_p2, %p2813_p1 }
 0x2ed   :  { %v1766_v4 = vrot.slane %v1765_v48, 1  ;;  %p2816_p4 = pnand %p2815_p3, %p2809_p0 }
 0x2ef   :  { %v1767_v29 = vadd.f32 %v1766_v4, %v1765_v48  ;;  %v6115_v48 = vld [vmem:[#allocation85_spill] sm:$0xff] }
 0x2f1   :  { %v1768_v26 = vmul.f32 0.0009765625, %v1767_v29  ;;  %v6116_v29 = vld [vmem:[#allocation10_spill] sm:$0xff] }
 0x2f3   :  { %v1770_v49 = vadd.f32 4e-05, %v1768_v26  ;;  %v6117_v26 = vld [vmem:[#allocation9_spill] sm:$0xff] }
 0x2f5   :  { %2806 = vrsqrt.f32 %v1770_v49 }
 0x302   :  { %v2807_v53 = vpop.eup %2806 }
 0x303   :  { %v1772_v5 = vmul.f32 %v2807_v53, %v1769_v54  ;;  %v6118_v54 = vld [vmem:[#allocation13_spill] sm:$0xff]  ;;  %v6119_v53 = vld [vmem:[#allocation12_spill] sm:$0xff] }
 0x305   :  { %v4547_v59 = vrot.slane %v1772_v5, %v1776_v39 }
 0x307   :  { %v1905_v4 = vmul.f32 %v4547_v59, %v3778_v0  ;;  %v4558_v49 = vmul.f32 %v4547_v59, %v3782_v6  ;;  %v4562_v62 = vmul.f32 %v4547_v59, %v3786_v19  ;;  %v4566_v42 = vmul.f32 %v4547_v59, %v3790_v41 }
 0x308   :  { %v4570_v22 = vmul.f32 %v4547_v59, %v3798_v58  ;;  %v4574_v5 = vmul.f32 %v4547_v59, %v3802_v9  ;;  %v4578_v0 = vmul.f32 %v4547_v59, %v3808_v12  ;;  %v4582_v6 = vmul.f32 %v4547_v59, %v3814_v10 }
 0x309   :  { %v2040_v19 = vadd.f32 %v4552_v36, %v1905_v4  ;;  %v4587_v41 = vmul.f32 %v4547_v59, %v3820_v31  ;;  %v4591_v58 = vmul.f32 %v4547_v59, %v3826_v32  ;;  %v4595_v9 = vmul.f32 %v4547_v59, %v3832_v8 }
 0x30a   :  { %v4599_v12 = vmul.f32 %v4547_v59, %v3838_v11  ;;  %v4603_v10 = vmul.f32 %v4547_v59, %v3844_v16  ;;  %v4607_v31 = vmul.f32 %v4547_v59, %v3850_v14  ;;  %v4611_v32 = vmul.f32 %v4547_v59, %v3856_v20 }
 0x30b   :  { %v2168_v43 = vmax.f32 %v2040_v19, 0.0  ;;  %v4615_v8 = vmul.f32 %v4547_v59, %v3862_v18  ;;  %v4619_v11 = vmul.f32 %v4547_v59, %v3868_v25  ;;  %v4623_v16 = vmul.f32 %v4547_v59, %v3874_v23  ;;  %v6121_v19 = vld [vmem:[#allocation15_spill] sm:$0xff] }
 0x30c   :  { %v4627_v14 = vmul.f32 %v4547_v59, %v3880_v30  ;;  %v4631_v20 = vmul.f32 %v4547_v59, %v6112_v61  ;;  %v4635_v18 = vmul.f32 %v4547_v59, %v6113_v34  ;;  %v4639_v25 = vmul.f32 %v4547_v59, %v6114_v51  ;;  %v6123_v61 = vld [vmem:[#allocation14_spill] sm:$0xff] }
 0x30d   :  { %2296 = vst [vmem:[#allocation2 + $0x3f0] sm:$0xff] %v2168_v43  ;;  %v4643_v23 = vmul.f32 %v4547_v59, %v6115_v48  ;;  %v4647_v30 = vmul.f32 %v4547_v59, %v6116_v29  ;;  %v4651_v1 = vmul.f32 %v4547_v59, %v6117_v26  ;;  %v4655_v39 = vmul.f32 %v4547_v59, %v6118_v54  ;;  %v6125_v51 = vld [vmem:[#allocation18_spill] sm:$0xff]  ;;  %v6127_v29 = vld [vmem:[#allocation17_spill] sm:$0xff]  ;;  %v6129_v54 = vld [vmem:[#allocation20_spill] sm:$0xff] }
 0x30e   :  { %v4659_v4 = vmul.f32 %v4547_v59, %v6119_v53  ;;  %v4663_v43 = vmul.f32 %v4547_v59, %v6121_v19  ;;  %v4667_v34 = vmul.f32 %v4547_v59, %v6123_v61  ;;  %v4671_v48 = vmul.f32 %v4547_v59, %v6125_v51 }
 0x30f   :  { %v4675_v26 = vmul.f32 %v4547_v59, %v6127_v29  ;;  %v4679_v53 = vmul.f32 %v4547_v59, %v6129_v54 }
 0x310   :  { %6120 = vst [vmem:[#allocation82_spill] sm:$0xff] %v4659_v4  ;;  %6122 = vst [vmem:[#allocation83_spill] sm:$0xff] %v4663_v43  ;;  %v6131_v4 = vld [vmem:[#allocation19_spill] sm:$0xff] }
 0x311   :  { %6124 = vst [vmem:[#allocation84_spill] sm:$0xff] %v4667_v34  ;;  %6126 = vst [vmem:[#allocation85_spill] sm:$0xff] %v4671_v48  ;;  %v4683_v19 = vmul.f32 %v4547_v59, %v6131_v4  ;;  %v6133_v43 = vld [vmem:[#allocation23_spill] sm:$0xff]  ;;  %v6135_v34 = vld [vmem:[#allocation22_spill] sm:$0xff] }
 0x312   :  { %6128 = vst [vmem:[#allocation10_spill] sm:$0xff] %v4675_v26  ;;  %6130 = vst [vmem:[#allocation9_spill] sm:$0xff] %v4679_v53  ;;  %v4687_v61 = vmul.f32 %v4547_v59, %v6133_v43  ;;  %v4691_v51 = vmul.f32 %v4547_v59, %v6135_v34  ;;  %v6137_v48 = vld [vmem:[#allocation25_spill] sm:$0xff]  ;;  %v6139_v26 = vld [vmem:[#allocation24_spill] sm:$0xff] }
 0x313   :  { %6132 = vst [vmem:[#allocation13_spill] sm:$0xff] %v4683_v19  ;;  %v4695_v29 = vmul.f32 %v4547_v59, %v6137_v48  ;;  %v4699_v54 = vmul.f32 %v4547_v59, %v6139_v26  ;;  %v6141_v53 = vld [vmem:[#allocation28_spill] sm:$0xff]  ;;  %v6143_v19 = vld [vmem:[#allocation27_spill] sm:$0xff] }
 0x314   :  { %6134 = vst [vmem:[#allocation12_spill] sm:$0xff] %v4687_v61  ;;  %6136 = vst [vmem:[#allocation15_spill] sm:$0xff] %v4691_v51  ;;  %v4703_v4 = vmul.f32 %v4547_v59, %v6141_v53  ;;  %v4707_v43 = vmul.f32 %v4547_v59, %v6143_v19  ;;  %v6145_v61 = vld [vmem:[#allocation30_spill] sm:$0xff]  ;;  %v6147_v51 = vld [vmem:[#allocation29_spill] sm:$0xff] }
 0x315   :  { %6138 = vst [vmem:[#allocation14_spill] sm:$0xff] %v4695_v29  ;;  %6140 = vst [vmem:[#allocation18_spill] sm:$0xff] %v4699_v54  ;;  %v4711_v34 = vmul.f32 %v4547_v59, %v6145_v61  ;;  %v4715_v48 = vmul.f32 %v4547_v59, %v6147_v51  ;;  %v6149_v29 = vld [vmem:[#allocation33_spill] sm:$0xff]  ;;  %v6151_v54 = vld [vmem:[#allocation32_spill] sm:$0xff] }
 0x316   :  { %6142 = vst [vmem:[#allocation17_spill] sm:$0xff] %v4703_v4  ;;  %6144 = vst [vmem:[#allocation20_spill] sm:$0xff] %v4707_v43  ;;  %v4719_v26 = vmul.f32 %v4547_v59, %v6149_v29  ;;  %v4723_v53 = vmul.f32 %v4547_v59, %v6151_v54  ;;  %v6153_v4 = vld [vmem:[#allocation35_spill] sm:$0xff]  ;;  %v6155_v43 = vld [vmem:[#allocation34_spill] sm:$0xff] }
 0x317   :  { %6146 = vst [vmem:[#allocation19_spill] sm:$0xff] %v4711_v34  ;;  %6148 = vst [vmem:[#allocation23_spill] sm:$0xff] %v4715_v48  ;;  %v4727_v19 = vmul.f32 %v4547_v59, %v6153_v4  ;;  %v4731_v61 = vmul.f32 %v4547_v59, %v6155_v43  ;;  %v6157_v34 = vld [vmem:[#allocation38_spill] sm:$0xff]  ;;  %v6159_v48 = vld [vmem:[#allocation37_spill] sm:$0xff] }
 0x318   :  { %6150 = vst [vmem:[#allocation22_spill] sm:$0xff] %v4719_v26  ;;  %6152 = vst [vmem:[#allocation25_spill] sm:$0xff] %v4723_v53  ;;  %v4735_v51 = vmul.f32 %v4547_v59, %v6157_v34  ;;  %v4739_v29 = vmul.f32 %v4547_v59, %v6159_v48  ;;  %v6161_v26 = vld [vmem:[#allocation40_spill] sm:$0xff]  ;;  %v6163_v53 = vld [vmem:[#allocation39_spill] sm:$0xff] }
 0x319   :  { %6154 = vst [vmem:[#allocation24_spill] sm:$0xff] %v4727_v19  ;;  %6156 = vst [vmem:[#allocation28_spill] sm:$0xff] %v4731_v61  ;;  %v4743_v54 = vmul.f32 %v4547_v59, %v6161_v26  ;;  %v4747_v4 = vmul.f32 %v4547_v59, %v6163_v53  ;;  %v6165_v19 = vld [vmem:[#allocation43_spill] sm:$0xff]  ;;  %v6167_v61 = vld [vmem:[#allocation42_spill] sm:$0xff] }
 0x31a   :  { %6158 = vst [vmem:[#allocation27_spill] sm:$0xff] %v4735_v51  ;;  %6160 = vst [vmem:[#allocation30_spill] sm:$0xff] %v4739_v29  ;;  %v4751_v43 = vmul.f32 %v4547_v59, %v6165_v19  ;;  %v4755_v34 = vmul.f32 %v4547_v59, %v6167_v61  ;;  %v6169_v51 = vld [vmem:[#allocation45_spill] sm:$0xff]  ;;  %v6171_v29 = vld [vmem:[#allocation44_spill] sm:$0xff] }
 0x31b   :  { %6162 = vst [vmem:[#allocation29_spill] sm:$0xff] %v4743_v54  ;;  %6164 = vst [vmem:[#allocation33_spill] sm:$0xff] %v4747_v4  ;;  %v4759_v48 = vmul.f32 %v4547_v59, %v6169_v51  ;;  %v4763_v26 = vmul.f32 %v4547_v59, %v6171_v29  ;;  %v6172_v54 = vld [vmem:[#allocation48_spill] sm:$0xff]  ;;  %v6174_v4 = vld [vmem:[#allocation47_spill] sm:$0xff] }
 0x31c   :  { %6166 = vst [vmem:[#allocation32_spill] sm:$0xff] %v4751_v43  ;;  %6168 = vst [vmem:[#allocation35_spill] sm:$0xff] %v4755_v34  ;;  %v4767_v53 = vmul.f32 %v4547_v59, %v6172_v54  ;;  %v4771_v19 = vmul.f32 %v4547_v59, %v6174_v4  ;;  %v6175_v43 = vld [vmem:[#allocation50_spill] sm:$0xff]  ;;  %v6177_v34 = vld [vmem:[#allocation49_spill] sm:$0xff]  ;;  %v4787_v54 = vmul.f32 %v4547_v59, %v4120_v13 }
 0x31d   :  { %6170 = vst [vmem:[#allocation34_spill] sm:$0xff] %v4759_v48  ;;  %v4775_v61 = vmul.f32 %v4547_v59, %v6175_v43  ;;  %v4779_v51 = vmul.f32 %v4547_v59, %v6177_v34  ;;  %v6178_v48 = vld [vmem:[#allocation53_spill] sm:$0xff]  ;;  %v4795_v43 = vmul.f32 %v4547_v59, %v4132_v35 }
 0x31e   :  { %6173 = vst [vmem:[#allocation38_spill] sm:$0xff] %v4767_v53  ;;  %v4783_v29 = vmul.f32 %v4547_v59, %v6178_v48  ;;  %v6180_v53 = vld [vmem:[#allocation52_spill] sm:$0xff]  ;;  %v4803_v48 = vmul.f32 %v4547_v59, %v4144_v40 }
 0x31f   :  { %6176 = vst [vmem:[#allocation37_spill] sm:$0xff] %v4775_v61  ;;  %v4791_v4 = vmul.f32 %v4547_v59, %v6180_v53  ;;  %v6182_v61 = vld [vmem:[#allocation55_spill] sm:$0xff]  ;;  %v4811_v53 = vmul.f32 %v4547_v59, %v4156_v28 }
 0x320   :  { %6179 = vst [vmem:[#allocation40_spill] sm:$0xff] %v4783_v29  ;;  %v4799_v34 = vmul.f32 %v4547_v59, %v6182_v61  ;;  %v6184_v29 = vld [vmem:[#allocation54_spill] sm:$0xff]  ;;  %v4819_v61 = vmul.f32 %v4547_v59, %v4168_v33 }
 0x321   :  { %6181 = vst [vmem:[#allocation39_spill] sm:$0xff] %v4791_v4  ;;  %v4807_v13 = vmul.f32 %v4547_v59, %v6184_v29  ;;  %v6186_v4 = vld [vmem:[#allocation58_spill] sm:$0xff]  ;;  %v4827_v29 = vmul.f32 %v4547_v59, %v4180_v52 }
 0x322   :  { %6183 = vst [vmem:[#allocation43_spill] sm:$0xff] %v4799_v34  ;;  %v4815_v35 = vmul.f32 %v4547_v59, %v6186_v4  ;;  %v6188_v34 = vld [vmem:[#allocation57_spill] sm:$0xff]  ;;  %v4835_v4 = vmul.f32 %v4547_v59, %v4192_v38 }
 0x323   :  { %6185 = vst [vmem:[#allocation42_spill] sm:$0xff] %v4807_v13  ;;  %v4823_v40 = vmul.f32 %v4547_v59, %v6188_v34  ;;  %v6190_v13 = vld [vmem:[#allocation59_spill] sm:$0xff]  ;;  %v4843_v34 = vmul.f32 %v4547_v59, %v4204_v63 }
 0x324   :  { %6187 = vst [vmem:[#allocation45_spill] sm:$0xff] %v4815_v35  ;;  %v4831_v28 = vmul.f32 %v4547_v59, %v6190_v13  ;;  %v6192_v35 = vld [vmem:[#allocation5_spill] sm:$0xff]  ;;  %v4851_v13 = vmul.f32 %v4547_v59, %v4216_v44 }
 0x325   :  { %6189 = vst [vmem:[#allocation44_spill] sm:$0xff] %v4823_v40  ;;  %v4839_v33 = vmul.f32 %v4547_v59, %v6192_v35  ;;  %v6194_v40 = vld [vmem:[#allocation6_spill] sm:$0xff]  ;;  %v4859_v35 = vmul.f32 %v4547_v59, %v4228_v45 }
 0x326   :  { %6191 = vst [vmem:[#allocation48_spill] sm:$0xff] %v4831_v28  ;;  %v4847_v52 = vmul.f32 %v4547_v59, %v6194_v40  ;;  %v6196_v28 = vld [vmem:[#allocation7_spill] sm:$0xff]  ;;  %v4867_v40 = vmul.f32 %v4547_v59, %v4240_v50 }
 0x327   :  { %6193 = vst [vmem:[#allocation47_spill] sm:$0xff] %v4839_v33  ;;  %v4855_v38 = vmul.f32 %v4547_v59, %v6196_v28  ;;  %v6198_v33 = vld [vmem:[#allocation8_spill] sm:$0xff]  ;;  %v4875_v28 = vmul.f32 %v4547_v59, %v4252_v55 }
 0x328   :  { %6195 = vst [vmem:[#allocation50_spill] sm:$0xff] %v4847_v52  ;;  %v4863_v63 = vmul.f32 %v4547_v59, %v6198_v33  ;;  %v6200_v52 = vld [vmem:[#allocation11_spill] sm:$0xff]  ;;  %v4883_v33 = vmul.f32 %v4547_v59, %v4264_v17 }
 0x329   :  { %6197 = vst [vmem:[#allocation49_spill] sm:$0xff] %v4855_v38  ;;  %v4871_v44 = vmul.f32 %v4547_v59, %v6200_v52  ;;  %v6202_v38 = vld [vmem:[#allocation16_spill] sm:$0xff]  ;;  %v4891_v52 = vmul.f32 %v4547_v59, %v4276_v27 }
 0x32a   :  { %6199 = vst [vmem:[#allocation53_spill] sm:$0xff] %v4863_v63  ;;  %v4879_v45 = vmul.f32 %v4547_v59, %v6202_v38  ;;  %v6204_v63 = vld [vmem:[#allocation21_spill] sm:$0xff]  ;;  %v4899_v38 = vmul.f32 %v4547_v59, %v4288_v37 }
 0x32b   :  { %6201 = vst [vmem:[#allocation52_spill] sm:$0xff] %v4871_v44  ;;  %v4887_v50 = vmul.f32 %v4547_v59, %v6204_v63  ;;  %v6206_v44 = vld [vmem:[#allocation26_spill] sm:$0xff]  ;;  %v4907_v63 = vmul.f32 %v4547_v59, %v4300_v47 }
 0x32c   :  { %6203 = vst [vmem:[#allocation55_spill] sm:$0xff] %v4879_v45  ;;  %v4895_v55 = vmul.f32 %v4547_v59, %v6206_v44  ;;  %v6208_v45 = vld [vmem:[#allocation31_spill] sm:$0xff]  ;;  %v4915_v44 = vmul.f32 %v4547_v59, %v4312_v57 }
 0x32d   :  { %6205 = vst [vmem:[#allocation54_spill] sm:$0xff] %v4887_v50  ;;  %v4903_v17 = vmul.f32 %v4547_v59, %v6208_v45  ;;  %v6210_v50 = vld [vmem:[#allocation36_spill] sm:$0xff]  ;;  %v4923_v45 = vmul.f32 %v4547_v59, %v4324_v3 }
 0x32e   :  { %6207 = vst [vmem:[#allocation58_spill] sm:$0xff] %v4895_v55  ;;  %v4911_v27 = vmul.f32 %v4547_v59, %v6210_v50  ;;  %v6212_v55 = vld [vmem:[#allocation41_spill] sm:$0xff]  ;;  %v4931_v50 = vmul.f32 %v4547_v59, %v4336_v21 }
 0x32f   :  { %6209 = vst [vmem:[#allocation57_spill] sm:$0xff] %v4903_v17  ;;  %v4919_v37 = vmul.f32 %v4547_v59, %v6212_v55  ;;  %v6214_v17 = vld [vmem:[#allocation46_spill] sm:$0xff]  ;;  %v4939_v55 = vmul.f32 %v4547_v59, %v4348_v46 }
 0x330   :  { %6211 = vst [vmem:[#allocation59_spill] sm:$0xff] %v4911_v27  ;;  %v4927_v47 = vmul.f32 %v4547_v59, %v6214_v17  ;;  %v6216_v27 = vld [vmem:[#allocation51_spill] sm:$0xff]  ;;  %v4947_v17 = vmul.f32 %v4547_v59, %v4360_v7 }
 0x331   :  { %6213 = vst [vmem:[#allocation5_spill] sm:$0xff] %v4919_v37  ;;  %v4935_v57 = vmul.f32 %v4547_v59, %v6216_v27  ;;  %v6218_v37 = vld [vmem:[#allocation56_spill] sm:$0xff]  ;;  %v4955_v27 = vmul.f32 %v4547_v59, %v4372_v2 }
 0x332   :  { %6215 = vst [vmem:[#allocation6_spill] sm:$0xff] %v4927_v47  ;;  %v4943_v3 = vmul.f32 %v4547_v59, %v6218_v37  ;;  %v6220_v47 = vld [vmem:[#allocation60_spill] sm:$0xff]  ;;  %v4963_v37 = vmul.f32 %v4547_v59, %v4384_v56 }
 0x333   :  { %6217 = vst [vmem:[#allocation7_spill] sm:$0xff] %v4935_v57  ;;  %v4951_v21 = vmul.f32 %v4547_v59, %v6220_v47  ;;  %6222 = vst [vmem:[#allocation16_spill] sm:$0xff] %v4955_v27  ;;  %v6223_v57 = vld [vmem:[#allocation61_spill] sm:$0xff]  ;;  %v4971_v47 = vmul.f32 %v4547_v59, %v4396_v15  ;;  %v6231_v27 = vld [vmem:[#allocation64_spill] sm:$0xff] }
 0x334   :  { %6219 = vst [vmem:[#allocation8_spill] sm:$0xff] %v4943_v3  ;;  %v4959_v46 = vmul.f32 %v4547_v59, %v6223_v57  ;;  %6225 = vst [vmem:[#allocation26_spill] sm:$0xff] %v4963_v37  ;;  %v6226_v3 = vld [vmem:[#allocation62_spill] sm:$0xff]  ;;  %v4979_v57 = vmul.f32 %v4547_v59, %v6231_v27 }
 0x335   :  { %6221 = vst [vmem:[#allocation11_spill] sm:$0xff] %v4951_v21  ;;  %v4967_v7 = vmul.f32 %v4547_v59, %v6226_v3  ;;  %6228 = vst [vmem:[#allocation36_spill] sm:$0xff] %v4971_v47  ;;  %v6229_v21 = vld [vmem:[#allocation63_spill] sm:$0xff]  ;;  %v6235_v37 = vld [vmem:[#allocation66_spill] sm:$0xff] }
 0x336   :  { %6224 = vst [vmem:[#allocation21_spill] sm:$0xff] %v4959_v46  ;;  %v4975_v2 = vmul.f32 %v4547_v59, %v6229_v21  ;;  %6232 = vst [vmem:[#allocation46_spill] sm:$0xff] %v4979_v57  ;;  %v6233_v46 = vld [vmem:[#allocation65_spill] sm:$0xff]  ;;  %v4987_v3 = vmul.f32 %v4547_v59, %v6235_v37  ;;  %v6239_v47 = vld [vmem:[#allocation68_spill] sm:$0xff] }
 0x337   :  { %6227 = vst [vmem:[#allocation31_spill] sm:$0xff] %v4967_v7  ;;  %v4983_v56 = vmul.f32 %v4547_v59, %v6233_v46  ;;  %v6237_v7 = vld [vmem:[#allocation67_spill] sm:$0xff]  ;;  %v4995_v21 = vmul.f32 %v4547_v59, %v6239_v47  ;;  %v6243_v57 = vld [vmem:[#allocation69_spill] sm:$0xff] }
 0x338   :  { %6230 = vst [vmem:[#allocation41_spill] sm:$0xff] %v4975_v2  ;;  %6236 = vst [vmem:[#allocation56_spill] sm:$0xff] %v4987_v3  ;;  %v4991_v15 = vmul.f32 %v4547_v59, %v6237_v7  ;;  %v6241_v2 = vld [vmem:[#allocation70_spill] sm:$0xff]  ;;  %v5003_v46 = vmul.f32 %v4547_v59, %v6243_v57  ;;  %v6246_v3 = vld [vmem:[#allocation71_spill] sm:$0xff] }
 0x339   :  { %6234 = vst [vmem:[#allocation51_spill] sm:$0xff] %v4983_v56  ;;  %6240 = vst [vmem:[#allocation61_spill] sm:$0xff] %v4995_v21  ;;  %v4999_v27 = vmul.f32 %v4547_v59, %v6241_v2  ;;  %v6245_v56 = vld [vmem:[#allocation72_spill] sm:$0xff]  ;;  %v5011_v7 = vmul.f32 %v4547_v59, %v6246_v3  ;;  %v6249_v21 = vld [vmem:[#allocation73_spill] sm:$0xff]  ;;  %v5031_v3 = vmul.f32 %v4547_v59, %v4486_v60 }
 0x33a   :  { %6238 = vst [vmem:[#allocation60_spill] sm:$0xff] %v4991_v15  ;;  %6244 = vst [vmem:[#allocation63_spill] sm:$0xff] %v5003_v46  ;;  %v5007_v37 = vmul.f32 %v4547_v59, %v6245_v56  ;;  %v6247_v15 = vld [vmem:[#allocation74_spill] sm:$0xff]  ;;  %v5019_v2 = vmul.f32 %v4547_v59, %v6249_v21  ;;  %v6253_v46 = vld [vmem:[#allocation75_spill] sm:$0xff] }
 0x33b   :  { %6242 = vst [vmem:[#allocation62_spill] sm:$0xff] %v4999_v27  ;;  %v5015_v47 = vmul.f32 %v4547_v59, %v6247_v15  ;;  %v6251_v27 = vld [vmem:[#allocation76_spill] sm:$0xff]  ;;  %v5027_v56 = vmul.f32 %v4547_v59, %v6253_v46  ;;  %6255 = vst [vmem:[#allocation68_spill] sm:$0xff] %v5031_v3  ;;  %v5035_v15 = vmul.f32 %v4547_v59, %v4492_v24  ;;  %v6262_v3 = vld [vmem:[#allocation81_spill] sm:$0xff] }
 0x33c   :  { %6250 = vst [vmem:[#allocation65_spill] sm:$0xff] %v5019_v2  ;;  %v5023_v57 = vmul.f32 %v4547_v59, %v6251_v27  ;;  %v6259_v2 = vld [vmem:[#allocation77_spill] sm:$0xff]  ;;  %v5055_v24 = vmul.f32 %v4547_v59, %v6262_v3  ;;  %v5075_v3 = vadd.f32 %v4552_v36, %v4566_v42  ;;  %v5095_v42 = vadd.f32 %v4552_v36, %v4587_v41 }
 0x33d   :  { %6248 = vst [vmem:[#allocation64_spill] sm:$0xff] %v5015_v47  ;;  %6254 = vst [vmem:[#allocation67_spill] sm:$0xff] %v5027_v56  ;;  %v6257_v47 = vld [vmem:[#allocation78_spill] sm:$0xff]  ;;  %v5043_v27 = vmul.f32 %v4547_v59, %v6259_v2  ;;  %v6261_v56 = vld [vmem:[#allocation79_spill] sm:$0xff]  ;;  %v5115_v41 = vadd.f32 %v4552_v36, %v4607_v31  ;;  %v5135_v31 = vadd.f32 %v4552_v36, %v4627_v14 }
 0x33e   :  { %6252 = vst [vmem:[#allocation66_spill] sm:$0xff] %v5023_v57  ;;  %6256 = vst [vmem:[#allocation70_spill] sm:$0xff] %v5035_v15  ;;  %v5039_v21 = vmul.f32 %v4547_v59, %v6257_v47  ;;  %v6260_v57 = vld [vmem:[#allocation80_spill] sm:$0xff]  ;;  %v5051_v60 = vmul.f32 %v4547_v59, %v6261_v56  ;;  %v6263_v15 = vld [vmem:[#allocation86_spill] sm:$0xff]  ;;  %v5071_v56 = vadd.f32 %v4552_v36, %v4562_v62 }
 0x33f   :  { %v5047_v46 = vmul.f32 %v4547_v59, %v6260_v57  ;;  %v5059_v47 = vmul.f32 %v4547_v59, %v6263_v15  ;;  %v5067_v57 = vadd.f32 %v4552_v36, %v4558_v49  ;;  %v5079_v15 = vadd.f32 %v4552_v36, %v4570_v22 }
 0x340   :  { %6258 = vst [vmem:[#allocation69_spill] sm:$0xff] %v5039_v21  ;;  %v6264_v21 = vld [vmem:[#allocation87_spill] sm:$0xff]  ;;  %v5087_v49 = vadd.f32 %v4552_v36, %v4578_v0  ;;  %v5091_v62 = vadd.f32 %v4552_v36, %v4582_v6  ;;  %v5099_v22 = vadd.f32 %v4552_v36, %v4591_v58  ;;  %v5107_v0 = vadd.f32 %v4552_v36, %v4599_v12 }
 0x341   :  { %v5063_v2 = vmul.f32 %v4547_v59, %v6264_v21  ;;  %v5083_v59 = vadd.f32 %v4552_v36, %v4574_v5  ;;  %v5103_v5 = vadd.f32 %v4552_v36, %v4595_v9  ;;  %v5111_v6 = vadd.f32 %v4552_v36, %v4603_v10  ;;  %v6270_v21 = vld [vmem:[#allocation82_spill] sm:$0xff] }
 0x342   :  { %v5119_v58 = vadd.f32 %v4552_v36, %v4611_v32  ;;  %v5123_v9 = vadd.f32 %v4552_v36, %v4615_v8  ;;  %v5127_v12 = vadd.f32 %v4552_v36, %v4619_v11  ;;  %v5131_v10 = vadd.f32 %v4552_v36, %v4623_v16 }
 0x343   :  { %v5139_v32 = vadd.f32 %v4552_v36, %v4631_v20  ;;  %v5143_v8 = vadd.f32 %v4552_v36, %v4635_v18  ;;  %v5147_v11 = vadd.f32 %v4552_v36, %v4639_v25  ;;  %v5151_v16 = vadd.f32 %v4552_v36, %v4643_v23 }
 0x344   :  { %v5155_v14 = vadd.f32 %v4552_v36, %v4647_v30  ;;  %v5159_v20 = vadd.f32 %v4552_v36, %v4651_v1  ;;  %v5163_v18 = vadd.f32 %v4552_v36, %v4655_v39  ;;  %v5167_v25 = vadd.f32 %v4552_v36, %v6270_v21 }
 0x345   :  { %6265 = vst [vmem:[#allocation72_spill] sm:$0xff] %v5147_v11  ;;  %6266 = vst [vmem:[#allocation71_spill] sm:$0xff] %v5151_v16  ;;  %v6272_v11 = vld [vmem:[#allocation83_spill] sm:$0xff]  ;;  %v6274_v16 = vld [vmem:[#allocation84_spill] sm:$0xff] }
 0x346   :  { %6267 = vst [vmem:[#allocation74_spill] sm:$0xff] %v5155_v14  ;;  %6268 = vst [vmem:[#allocation73_spill] sm:$0xff] %v5159_v20  ;;  %v5171_v23 = vadd.f32 %v4552_v36, %v6272_v11  ;;  %v5175_v30 = vadd.f32 %v4552_v36, %v6274_v16  ;;  %v6276_v14 = vld [vmem:[#allocation85_spill] sm:$0xff]  ;;  %v6278_v20 = vld [vmem:[#allocation10_spill] sm:$0xff] }
 0x347   :  { %6269 = vst [vmem:[#allocation76_spill] sm:$0xff] %v5163_v18  ;;  %6271 = vst [vmem:[#allocation75_spill] sm:$0xff] %v5167_v25  ;;  %v5179_v1 = vadd.f32 %v4552_v36, %v6276_v14  ;;  %v5183_v39 = vadd.f32 %v4552_v36, %v6278_v20  ;;  %v6280_v18 = vld [vmem:[#allocation9_spill] sm:$0xff] }
 0x348   :  { %6273 = vst [vmem:[#allocation78_spill] sm:$0xff] %v5171_v23  ;;  %6275 = vst [vmem:[#allocation77_spill] sm:$0xff] %v5175_v30  ;;  %v5187_v21 = vadd.f32 %v4552_v36, %v6280_v18  ;;  %v6282_v25 = vld [vmem:[#allocation13_spill] sm:$0xff]  ;;  %v6284_v23 = vld [vmem:[#allocation12_spill] sm:$0xff] }
 0x349   :  { %6277 = vst [vmem:[#allocation80_spill] sm:$0xff] %v5179_v1  ;;  %6279 = vst [vmem:[#allocation79_spill] sm:$0xff] %v5183_v39  ;;  %v5191_v11 = vadd.f32 %v4552_v36, %v6282_v25  ;;  %v5195_v16 = vadd.f32 %v4552_v36, %v6284_v23  ;;  %v6286_v30 = vld [vmem:[#allocation15_spill] sm:$0xff]  ;;  %v6288_v1 = vld [vmem:[#allocation14_spill] sm:$0xff] }
 0x34a   :  { %6281 = vst [vmem:[#allocation81_spill] sm:$0xff] %v5187_v21  ;;  %v5199_v14 = vadd.f32 %v4552_v36, %v6286_v30  ;;  %v5203_v20 = vadd.f32 %v4552_v36, %v6288_v1  ;;  %v6290_v39 = vld [vmem:[#allocation18_spill] sm:$0xff]  ;;  %v6292_v21 = vld [vmem:[#allocation17_spill] sm:$0xff] }
 0x34b   :  { %6283 = vst [vmem:[#allocation86_spill] sm:$0xff] %v5191_v11  ;;  %6285 = vst [vmem:[#allocation87_spill] sm:$0xff] %v5195_v16  ;;  %v5207_v18 = vadd.f32 %v4552_v36, %v6290_v39  ;;  %v5211_v25 = vadd.f32 %v4552_v36, %v6292_v21  ;;  %v6294_v11 = vld [vmem:[#allocation20_spill] sm:$0xff]  ;;  %v6296_v16 = vld [vmem:[#allocation19_spill] sm:$0xff] }
 0x34c   :  { %6287 = vst [vmem:[#allocation82_spill] sm:$0xff] %v5199_v14  ;;  %6289 = vst [vmem:[#allocation83_spill] sm:$0xff] %v5203_v20  ;;  %v5215_v23 = vadd.f32 %v4552_v36, %v6294_v11  ;;  %v5219_v30 = vadd.f32 %v4552_v36, %v6296_v16  ;;  %v6298_v14 = vld [vmem:[#allocation23_spill] sm:$0xff]  ;;  %v6300_v20 = vld [vmem:[#allocation22_spill] sm:$0xff] }
 0x34d   :  { %6291 = vst [vmem:[#allocation84_spill] sm:$0xff] %v5207_v18  ;;  %6293 = vst [vmem:[#allocation85_spill] sm:$0xff] %v5211_v25  ;;  %v5223_v1 = vadd.f32 %v4552_v36, %v6298_v14  ;;  %v5227_v39 = vadd.f32 %v4552_v36, %v6300_v20  ;;  %v6302_v18 = vld [vmem:[#allocation25_spill] sm:$0xff]  ;;  %v6304_v25 = vld [vmem:[#allocation24_spill] sm:$0xff] }
 0x34e   :  { %6295 = vst [vmem:[#allocation10_spill] sm:$0xff] %v5215_v23  ;;  %6297 = vst [vmem:[#allocation9_spill] sm:$0xff] %v5219_v30  ;;  %v5231_v21 = vadd.f32 %v4552_v36, %v6302_v18  ;;  %v5235_v11 = vadd.f32 %v4552_v36, %v6304_v25  ;;  %v6306_v23 = vld [vmem:[#allocation28_spill] sm:$0xff]  ;;  %v6308_v30 = vld [vmem:[#allocation27_spill] sm:$0xff] }
 0x34f   :  { %6299 = vst [vmem:[#allocation13_spill] sm:$0xff] %v5223_v1  ;;  %6301 = vst [vmem:[#allocation12_spill] sm:$0xff] %v5227_v39  ;;  %v5239_v16 = vadd.f32 %v4552_v36, %v6306_v23  ;;  %v5243_v14 = vadd.f32 %v4552_v36, %v6308_v30  ;;  %v6310_v1 = vld [vmem:[#allocation30_spill] sm:$0xff]  ;;  %v6311_v39 = vld [vmem:[#allocation29_spill] sm:$0xff] }
 0x350   :  { %6303 = vst [vmem:[#allocation15_spill] sm:$0xff] %v5231_v21  ;;  %6305 = vst [vmem:[#allocation14_spill] sm:$0xff] %v5235_v11  ;;  %v5247_v20 = vadd.f32 %v4552_v36, %v6310_v1  ;;  %v5251_v18 = vadd.f32 %v4552_v36, %v6311_v39  ;;  %v6313_v21 = vld [vmem:[#allocation33_spill] sm:$0xff]  ;;  %v6314_v11 = vld [vmem:[#allocation32_spill] sm:$0xff]  ;;  %v5271_v39 = vadd.f32 %v4552_v36, %v4763_v26 }
 0x351   :  { %6307 = vst [vmem:[#allocation18_spill] sm:$0xff] %v5239_v16  ;;  %6309 = vst [vmem:[#allocation17_spill] sm:$0xff] %v5243_v14  ;;  %v5255_v25 = vadd.f32 %v4552_v36, %v6313_v21  ;;  %v5259_v23 = vadd.f32 %v4552_v36, %v6314_v11  ;;  %v6316_v16 = vld [vmem:[#allocation35_spill] sm:$0xff]  ;;  %v6317_v14 = vld [vmem:[#allocation34_spill] sm:$0xff]  ;;  %v5279_v11 = vadd.f32 %v4552_v36, %v4771_v19 }
 0x352   :  { %6312 = vst [vmem:[#allocation20_spill] sm:$0xff] %v5251_v18  ;;  %v5263_v30 = vadd.f32 %v4552_v36, %v6316_v16  ;;  %v5267_v1 = vadd.f32 %v4552_v36, %v6317_v14  ;;  %v6319_v18 = vld [vmem:[#allocation38_spill] sm:$0xff]  ;;  %v5287_v14 = vadd.f32 %v4552_v36, %v4779_v51 }
 0x353   :  { %6315 = vst [vmem:[#allocation19_spill] sm:$0xff] %v5259_v23  ;;  %v5275_v21 = vadd.f32 %v4552_v36, %v6319_v18  ;;  %v6321_v23 = vld [vmem:[#allocation37_spill] sm:$0xff]  ;;  %v5295_v18 = vadd.f32 %v4552_v36, %v4787_v54 }
 0x354   :  { %6318 = vst [vmem:[#allocation23_spill] sm:$0xff] %v5267_v1  ;;  %v5283_v16 = vadd.f32 %v4552_v36, %v6321_v23  ;;  %v6323_v1 = vld [vmem:[#allocation40_spill] sm:$0xff]  ;;  %v5303_v23 = vadd.f32 %v4552_v36, %v4795_v43 }
 0x355   :  { %6320 = vst [vmem:[#allocation22_spill] sm:$0xff] %v5275_v21  ;;  %v5291_v26 = vadd.f32 %v4552_v36, %v6323_v1  ;;  %v6325_v21 = vld [vmem:[#allocation39_spill] sm:$0xff]  ;;  %v5311_v1 = vadd.f32 %v4552_v36, %v4803_v48 }
 0x356   :  { %6322 = vst [vmem:[#allocation25_spill] sm:$0xff] %v5283_v16  ;;  %v5299_v19 = vadd.f32 %v4552_v36, %v6325_v21  ;;  %v6327_v16 = vld [vmem:[#allocation43_spill] sm:$0xff]  ;;  %v5319_v21 = vadd.f32 %v4552_v36, %v4811_v53 }
 0x357   :  { %6324 = vst [vmem:[#allocation24_spill] sm:$0xff] %v5291_v26  ;;  %v5307_v51 = vadd.f32 %v4552_v36, %v6327_v16  ;;  %v6329_v26 = vld [vmem:[#allocation42_spill] sm:$0xff]  ;;  %v5327_v16 = vadd.f32 %v4552_v36, %v4819_v61 }
 0x358   :  { %6326 = vst [vmem:[#allocation28_spill] sm:$0xff] %v5299_v19  ;;  %v5315_v54 = vadd.f32 %v4552_v36, %v6329_v26  ;;  %v6331_v19 = vld [vmem:[#allocation45_spill] sm:$0xff]  ;;  %v5335_v26 = vadd.f32 %v4552_v36, %v4827_v29 }
 0x359   :  { %6328 = vst [vmem:[#allocation27_spill] sm:$0xff] %v5307_v51  ;;  %v5323_v43 = vadd.f32 %v4552_v36, %v6331_v19  ;;  %v6333_v51 = vld [vmem:[#allocation44_spill] sm:$0xff]  ;;  %v5343_v19 = vadd.f32 %v4552_v36, %v4835_v4 }
 0x35a   :  { %6330 = vst [vmem:[#allocation30_spill] sm:$0xff] %v5315_v54  ;;  %v5331_v48 = vadd.f32 %v4552_v36, %v6333_v51  ;;  %v6335_v54 = vld [vmem:[#allocation48_spill] sm:$0xff]  ;;  %v5351_v51 = vadd.f32 %v4552_v36, %v4843_v34 }
 0x35b   :  { %6332 = vst [vmem:[#allocation29_spill] sm:$0xff] %v5323_v43  ;;  %v5339_v53 = vadd.f32 %v4552_v36, %v6335_v54  ;;  %v6337_v43 = vld [vmem:[#allocation47_spill] sm:$0xff]  ;;  %v5359_v54 = vadd.f32 %v4552_v36, %v4851_v13 }
 0x35c   :  { %6334 = vst [vmem:[#allocation33_spill] sm:$0xff] %v5331_v48  ;;  %v5347_v61 = vadd.f32 %v4552_v36, %v6337_v43  ;;  %v6339_v48 = vld [vmem:[#allocation50_spill] sm:$0xff]  ;;  %v5367_v43 = vadd.f32 %v4552_v36, %v4859_v35 }
 0x35d   :  { %6336 = vst [vmem:[#allocation32_spill] sm:$0xff] %v5339_v53  ;;  %v5355_v29 = vadd.f32 %v4552_v36, %v6339_v48  ;;  %v6341_v53 = vld [vmem:[#allocation49_spill] sm:$0xff]  ;;  %v5375_v48 = vadd.f32 %v4552_v36, %v4867_v40 }
 0x35e   :  { %6338 = vst [vmem:[#allocation35_spill] sm:$0xff] %v5347_v61  ;;  %v5363_v4 = vadd.f32 %v4552_v36, %v6341_v53  ;;  %v6343_v61 = vld [vmem:[#allocation53_spill] sm:$0xff]  ;;  %v5383_v53 = vadd.f32 %v4552_v36, %v4875_v28 }
 0x35f   :  { %6340 = vst [vmem:[#allocation34_spill] sm:$0xff] %v5355_v29  ;;  %v5371_v34 = vadd.f32 %v4552_v36, %v6343_v61  ;;  %v6345_v29 = vld [vmem:[#allocation52_spill] sm:$0xff]  ;;  %v5391_v61 = vadd.f32 %v4552_v36, %v4883_v33 }
 0x360   :  { %6342 = vst [vmem:[#allocation38_spill] sm:$0xff] %v5363_v4  ;;  %v5379_v13 = vadd.f32 %v4552_v36, %v6345_v29  ;;  %v6347_v4 = vld [vmem:[#allocation55_spill] sm:$0xff]  ;;  %v5399_v29 = vadd.f32 %v4552_v36, %v4891_v52 }
 0x361   :  { %6344 = vst [vmem:[#allocation37_spill] sm:$0xff] %v5371_v34  ;;  %v5387_v35 = vadd.f32 %v4552_v36, %v6347_v4  ;;  %v6349_v34 = vld [vmem:[#allocation54_spill] sm:$0xff]  ;;  %v5407_v4 = vadd.f32 %v4552_v36, %v4899_v38 }
 0x362   :  { %6346 = vst [vmem:[#allocation40_spill] sm:$0xff] %v5379_v13  ;;  %v5395_v40 = vadd.f32 %v4552_v36, %v6349_v34  ;;  %v6351_v13 = vld [vmem:[#allocation58_spill] sm:$0xff]  ;;  %v5415_v34 = vadd.f32 %v4552_v36, %v4907_v63 }
 0x363   :  { %6348 = vst [vmem:[#allocation39_spill] sm:$0xff] %v5387_v35  ;;  %v5403_v28 = vadd.f32 %v4552_v36, %v6351_v13  ;;  %v6353_v35 = vld [vmem:[#allocation57_spill] sm:$0xff]  ;;  %v5423_v13 = vadd.f32 %v4552_v36, %v4915_v44 }
 0x364   :  { %6350 = vst [vmem:[#allocation43_spill] sm:$0xff] %v5395_v40  ;;  %v5411_v33 = vadd.f32 %v4552_v36, %v6353_v35  ;;  %v6355_v40 = vld [vmem:[#allocation59_spill] sm:$0xff]  ;;  %v5431_v35 = vadd.f32 %v4552_v36, %v4923_v45 }
 0x365   :  { %6352 = vst [vmem:[#allocation42_spill] sm:$0xff] %v5403_v28  ;;  %v5419_v52 = vadd.f32 %v4552_v36, %v6355_v40  ;;  %v6357_v28 = vld [vmem:[#allocation5_spill] sm:$0xff]  ;;  %v5439_v40 = vadd.f32 %v4552_v36, %v4931_v50 }
 0x366   :  { %6354 = vst [vmem:[#allocation45_spill] sm:$0xff] %v5411_v33  ;;  %v5427_v38 = vadd.f32 %v4552_v36, %v6357_v28  ;;  %v6359_v33 = vld [vmem:[#allocation6_spill] sm:$0xff]  ;;  %v5447_v28 = vadd.f32 %v4552_v36, %v4939_v55 }
 0x367   :  { %6356 = vst [vmem:[#allocation44_spill] sm:$0xff] %v5419_v52  ;;  %v5435_v63 = vadd.f32 %v4552_v36, %v6359_v33  ;;  %6361 = vst [vmem:[#allocation50_spill] sm:$0xff] %v5439_v40  ;;  %v6362_v52 = vld [vmem:[#allocation7_spill] sm:$0xff]  ;;  %v5455_v33 = vadd.f32 %v4552_v36, %v4947_v17  ;;  %v6370_v40 = vld [vmem:[#allocation16_spill] sm:$0xff] }
 0x368   :  { %6358 = vst [vmem:[#allocation48_spill] sm:$0xff] %v5427_v38  ;;  %v5443_v44 = vadd.f32 %v4552_v36, %v6362_v52  ;;  %6364 = vst [vmem:[#allocation53_spill] sm:$0xff] %v5447_v28  ;;  %v6365_v38 = vld [vmem:[#allocation8_spill] sm:$0xff]  ;;  %v5463_v52 = vadd.f32 %v4552_v36, %v6370_v40  ;;  %v6374_v28 = vld [vmem:[#allocation26_spill] sm:$0xff] }
 0x369   :  { %6360 = vst [vmem:[#allocation47_spill] sm:$0xff] %v5435_v63  ;;  %v5451_v45 = vadd.f32 %v4552_v36, %v6365_v38  ;;  %6367 = vst [vmem:[#allocation55_spill] sm:$0xff] %v5455_v33  ;;  %v6368_v63 = vld [vmem:[#allocation11_spill] sm:$0xff]  ;;  %v5471_v38 = vadd.f32 %v4552_v36, %v6374_v28  ;;  %v6378_v33 = vld [vmem:[#allocation36_spill] sm:$0xff] }
 0x36a   :  { %6363 = vst [vmem:[#allocation49_spill] sm:$0xff] %v5443_v44  ;;  %v5459_v50 = vadd.f32 %v4552_v36, %v6368_v63  ;;  %6371 = vst [vmem:[#allocation58_spill] sm:$0xff] %v5463_v52  ;;  %v6372_v44 = vld [vmem:[#allocation21_spill] sm:$0xff]  ;;  %v5479_v63 = vadd.f32 %v4552_v36, %v6378_v33  ;;  %v6382_v52 = vld [vmem:[#allocation46_spill] sm:$0xff] }
 0x36b   :  { %6366 = vst [vmem:[#allocation52_spill] sm:$0xff] %v5451_v45  ;;  %v5467_v55 = vadd.f32 %v4552_v36, %v6372_v44  ;;  %6375 = vst [vmem:[#allocation59_spill] sm:$0xff] %v5471_v38  ;;  %v6376_v45 = vld [vmem:[#allocation31_spill] sm:$0xff]  ;;  %v5487_v44 = vadd.f32 %v4552_v36, %v6382_v52  ;;  %v6385_v38 = vld [vmem:[#allocation56_spill] sm:$0xff] }
 0x36c   :  { %6369 = vst [vmem:[#allocation54_spill] sm:$0xff] %v5459_v50  ;;  %v5475_v17 = vadd.f32 %v4552_v36, %v6376_v45  ;;  %6379 = vst [vmem:[#allocation6_spill] sm:$0xff] %v5479_v63  ;;  %v6380_v50 = vld [vmem:[#allocation41_spill] sm:$0xff]  ;;  %v5495_v45 = vadd.f32 %v4552_v36, %v6385_v38  ;;  %v5515_v38 = vadd.f32 %v4552_v36, %v5007_v37 }
 0x36d   :  { %6373 = vst [vmem:[#allocation57_spill] sm:$0xff] %v5467_v55  ;;  %v5483_v40 = vadd.f32 %v4552_v36, %v6380_v50  ;;  %6383 = vst [vmem:[#allocation8_spill] sm:$0xff] %v5487_v44  ;;  %v6384_v55 = vld [vmem:[#allocation51_spill] sm:$0xff]  ;;  %v6388_v63 = vld [vmem:[#allocation61_spill] sm:$0xff] }
 0x36e   :  { %6377 = vst [vmem:[#allocation5_spill] sm:$0xff] %v5475_v17  ;;  %v5491_v28 = vadd.f32 %v4552_v36, %v6384_v55  ;;  %v6386_v17 = vld [vmem:[#allocation60_spill] sm:$0xff]  ;;  %v5503_v50 = vadd.f32 %v4552_v36, %v6388_v63  ;;  %v6392_v44 = vld [vmem:[#allocation63_spill] sm:$0xff]  ;;  %6394 = vst [vmem:[#allocation31_spill] sm:$0xff] %v5515_v38 }
 0x36f   :  { %6381 = vst [vmem:[#allocation7_spill] sm:$0xff] %v5483_v40  ;;  %v5499_v33 = vadd.f32 %v4552_v36, %v6386_v17  ;;  %v6390_v40 = vld [vmem:[#allocation62_spill] sm:$0xff]  ;;  %v5511_v55 = vadd.f32 %v4552_v36, %v6392_v44  ;;  %v5519_v17 = vadd.f32 %v4552_v36, %v5011_v7  ;;  %v6401_v38 = vld [vmem:[#allocation68_spill] sm:$0xff] }
 0x370   :  { %6389 = vst [vmem:[#allocation16_spill] sm:$0xff] %v5503_v50  ;;  %v5507_v52 = vadd.f32 %v4552_v36, %v6390_v40  ;;  %v6398_v50 = vld [vmem:[#allocation65_spill] sm:$0xff]  ;;  %v5539_v7 = vadd.f32 %v4552_v36, %v6401_v38  ;;  %v5559_v38 = vadd.f32 %v4552_v36, %v5051_v60  ;;  %v2045_v60 = vmax.f32 %v5079_v15, 0.0 }
 0x371   :  { %6387 = vst [vmem:[#allocation11_spill] sm:$0xff] %v5499_v33  ;;  %6393 = vst [vmem:[#allocation26_spill] sm:$0xff] %v5511_v55  ;;  %v6396_v33 = vld [vmem:[#allocation64_spill] sm:$0xff]  ;;  %v5527_v40 = vadd.f32 %v4552_v36, %v6398_v50  ;;  %v6400_v55 = vld [vmem:[#allocation67_spill] sm:$0xff]  ;;  %v2056_v15 = vmax.f32 %v5123_v9, 0.0 }
 0x372   :  { %6391 = vst [vmem:[#allocation21_spill] sm:$0xff] %v5507_v52  ;;  %6395 = vst [vmem:[#allocation36_spill] sm:$0xff] %v5519_v17  ;;  %v5523_v63 = vadd.f32 %v4552_v36, %v6396_v33  ;;  %v6399_v52 = vld [vmem:[#allocation66_spill] sm:$0xff]  ;;  %v5535_v37 = vadd.f32 %v4552_v36, %v6400_v55  ;;  %v5555_v55 = vadd.f32 %v4552_v36, %v5047_v46  ;;  %v2043_v46 = vmax.f32 %v5071_v56, 0.0 }
 0x373   :  { %v5531_v44 = vadd.f32 %v4552_v36, %v6399_v52  ;;  %v6402_v17 = vld [vmem:[#allocation70_spill] sm:$0xff]  ;;  %v5551_v52 = vadd.f32 %v4552_v36, %v5043_v27  ;;  %6406 = vst [vmem:[#allocation56_spill] sm:$0xff] %v5559_v38  ;;  %v5571_v27 = vadd.f32 %v4552_v36, %v5063_v2  ;;  %v2046_v38 = vmax.f32 %v5083_v59, 0.0  ;;  %2173 = vst [vmem:[#allocation2 + $0x18] sm:$0xff] %v2045_v60 }
 0x374   :  { %6397 = vst [vmem:[#allocation41_spill] sm:$0xff] %v5523_v63  ;;  %v5543_v33 = vadd.f32 %v4552_v36, %v6402_v17  ;;  %v6403_v63 = vld [vmem:[#allocation69_spill] sm:$0xff]  ;;  %6405 = vst [vmem:[#allocation51_spill] sm:$0xff] %v5555_v55  ;;  %v5563_v17 = vadd.f32 %v4552_v36, %v5055_v24  ;;  %v2044_v55 = vmax.f32 %v5075_v3, 0.0  ;;  %v2047_v24 = vmax.f32 %v5087_v49, 0.0 }
 0x375   :  { %v5547_v50 = vadd.f32 %v4552_v36, %v6403_v63  ;;  %6404 = vst [vmem:[#allocation46_spill] sm:$0xff] %v5551_v52  ;;  %v5567_v63 = vadd.f32 %v4552_v36, %v5059_v47  ;;  %v2042_v52 = vmax.f32 %v5067_v57, 0.0  ;;  %v2049_v47 = vmax.f32 %v5095_v42, 0.0  ;;  %2171 = vst [vmem:[#allocation2 + $0x8] sm:$0xff] %v2043_v46  ;;  %v6417_v46 = vld [vmem:[#allocation80_spill] sm:$0xff] }
 0x376   :  { %6407 = vst [vmem:[#allocation60_spill] sm:$0xff] %v5563_v17  ;;  %v2048_v17 = vmax.f32 %v5091_v62, 0.0  ;;  %v2051_v36 = vmax.f32 %v5103_v5, 0.0  ;;  %v2052_v2 = vmax.f32 %v5107_v0, 0.0  ;;  %2172 = vst [vmem:[#allocation2 + $0x10] sm:$0xff] %v2044_v55  ;;  %v2053_v57 = vmax.f32 %v5111_v6, 0.0 }
 0x377   :  { %6408 = vst [vmem:[#allocation61_spill] sm:$0xff] %v5567_v63  ;;  %v2050_v63 = vmax.f32 %v5099_v22, 0.0  ;;  %2170 = vst [vmem:[#allocation2] sm:$0xff] %v2042_v52  ;;  %v2054_v56 = vmax.f32 %v5115_v41, 0.0  ;;  %v2055_v3 = vmax.f32 %v5119_v58, 0.0  ;;  %v2057_v59 = vmax.f32 %v5127_v12, 0.0 }
 0x378   :  { %2174 = vst [vmem:[#allocation2 + $0x20] sm:$0xff] %v2046_v38  ;;  %2175 = vst [vmem:[#allocation2 + $0x28] sm:$0xff] %v2047_v24  ;;  %v2058_v49 = vmax.f32 %v5131_v10, 0.0  ;;  %v2059_v62 = vmax.f32 %v5135_v31, 0.0  ;;  %v2060_v42 = vmax.f32 %v5139_v32, 0.0  ;;  %v2061_v22 = vmax.f32 %v5143_v8, 0.0 }
 0x379   :  { %2176 = vst [vmem:[#allocation2 + $0x30] sm:$0xff] %v2048_v17  ;;  %2177 = vst [vmem:[#allocation2 + $0x38] sm:$0xff] %v2049_v47  ;;  %v6409_v5 = vld [vmem:[#allocation72_spill] sm:$0xff]  ;;  %v6410_v6 = vld [vmem:[#allocation71_spill] sm:$0xff]  ;;  %v2070_v60 = vmax.f32 %v6417_v46, 0.0 }
 0x37a   :  { %2178 = vst [vmem:[#allocation2 + $0x40] sm:$0xff] %v2050_v63  ;;  %2179 = vst [vmem:[#allocation2 + $0x48] sm:$0xff] %v2051_v36  ;;  %v2062_v0 = vmax.f32 %v6409_v5, 0.0  ;;  %v2063_v41 = vmax.f32 %v6410_v6, 0.0  ;;  %v6411_v58 = vld [vmem:[#allocation74_spill] sm:$0xff]  ;;  %v6412_v12 = vld [vmem:[#allocation73_spill] sm:$0xff] }
 0x37b   :  { %2180 = vst [vmem:[#allocation2 + $0x50] sm:$0xff] %v2052_v2  ;;  %v2064_v9 = vmax.f32 %v6411_v58, 0.0  ;;  %2181 = vst [vmem:[#allocation2 + $0x58] sm:$0xff] %v2053_v57  ;;  %v2065_v10 = vmax.f32 %v6412_v12, 0.0  ;;  %v6413_v31 = vld [vmem:[#allocation76_spill] sm:$0xff]  ;;  %v6414_v52 = vld [vmem:[#allocation75_spill] sm:$0xff] }
 0x37c   :  { %2182 = vst [vmem:[#allocation2 + $0x60] sm:$0xff] %v2054_v56  ;;  %2183 = vst [vmem:[#allocation2 + $0x68] sm:$0xff] %v2055_v3  ;;  %v2066_v32 = vmax.f32 %v6413_v31, 0.0  ;;  %v2067_v55 = vmax.f32 %v6414_v52, 0.0  ;;  %v6415_v38 = vld [vmem:[#allocation78_spill] sm:$0xff]  ;;  %v6416_v8 = vld [vmem:[#allocation77_spill] sm:$0xff] }
 0x37d   :  { %2184 = vst [vmem:[#allocation2 + $0x70] sm:$0xff] %v2056_v15  ;;  %v2068_v17 = vmax.f32 %v6415_v38, 0.0  ;;  %2185 = vst [vmem:[#allocation2 + $0x78] sm:$0xff] %v2057_v59  ;;  %v2069_v63 = vmax.f32 %v6416_v8, 0.0  ;;  %v6418_v24 = vld [vmem:[#allocation79_spill] sm:$0xff]  ;;  %v6419_v36 = vld [vmem:[#allocation81_spill] sm:$0xff] }
 0x37e   :  { %2186 = vst [vmem:[#allocation2 + $0x80] sm:$0xff] %v2058_v49  ;;  %2187 = vst [vmem:[#allocation2 + $0x88] sm:$0xff] %v2059_v62  ;;  %v2071_v47 = vmax.f32 %v6418_v24, 0.0  ;;  %v2072_v2 = vmax.f32 %v6419_v36, 0.0  ;;  %v6420_v57 = vld [vmem:[#allocation86_spill] sm:$0xff]  ;;  %v6421_v3 = vld [vmem:[#allocation87_spill] sm:$0xff] }
 0x37f   :  { %2188 = vst [vmem:[#allocation2 + $0x90] sm:$0xff] %v2060_v42  ;;  %2189 = vst [vmem:[#allocation2 + $0x98] sm:$0xff] %v2061_v22  ;;  %v2073_v56 = vmax.f32 %v6420_v57, 0.0  ;;  %v2074_v15 = vmax.f32 %v6421_v3, 0.0  ;;  %v6422_v59 = vld [vmem:[#allocation82_spill] sm:$0xff]  ;;  %v6423_v62 = vld [vmem:[#allocation83_spill] sm:$0xff] }
 0x380   :  { %2190 = vst [vmem:[#allocation2 + $0xa0] sm:$0xff] %v2062_v0  ;;  %2191 = vst [vmem:[#allocation2 + $0xa8] sm:$0xff] %v2063_v41  ;;  %v2075_v49 = vmax.f32 %v6422_v59, 0.0  ;;  %v2076_v42 = vmax.f32 %v6423_v62, 0.0  ;;  %v6424_v5 = vld [vmem:[#allocation84_spill] sm:$0xff]  ;;  %v6425_v58 = vld [vmem:[#allocation85_spill] sm:$0xff] }
 0x381   :  { %2192 = vst [vmem:[#allocation2 + $0xb0] sm:$0xff] %v2064_v9  ;;  %2193 = vst [vmem:[#allocation2 + $0xb8] sm:$0xff] %v2065_v10  ;;  %v2077_v6 = vmax.f32 %v6424_v5, 0.0  ;;  %v2078_v12 = vmax.f32 %v6425_v58, 0.0  ;;  %v6426_v22 = vld [vmem:[#allocation10_spill] sm:$0xff]  ;;  %v6427_v41 = vld [vmem:[#allocation9_spill] sm:$0xff] }
 0x382   :  { %2194 = vst [vmem:[#allocation2 + $0xc0] sm:$0xff] %v2066_v32  ;;  %2195 = vst [vmem:[#allocation2 + $0xc8] sm:$0xff] %v2067_v55  ;;  %v2079_v0 = vmax.f32 %v6426_v22, 0.0  ;;  %v2080_v9 = vmax.f32 %v6427_v41, 0.0  ;;  %v6428_v31 = vld [vmem:[#allocation13_spill] sm:$0xff]  ;;  %v6429_v38 = vld [vmem:[#allocation12_spill] sm:$0xff] }
 0x383   :  { %2196 = vst [vmem:[#allocation2 + $0xd0] sm:$0xff] %v2068_v17  ;;  %2197 = vst [vmem:[#allocation2 + $0xd8] sm:$0xff] %v2069_v63  ;;  %v2081_v52 = vmax.f32 %v6428_v31, 0.0  ;;  %v2082_v8 = vmax.f32 %v6429_v38, 0.0  ;;  %v6430_v10 = vld [vmem:[#allocation15_spill] sm:$0xff]  ;;  %v6431_v55 = vld [vmem:[#allocation14_spill] sm:$0xff] }
 0x384   :  { %2198 = vst [vmem:[#allocation2 + $0xe0] sm:$0xff] %v2070_v60  ;;  %2199 = vst [vmem:[#allocation2 + $0xe8] sm:$0xff] %v2071_v47  ;;  %v2083_v32 = vmax.f32 %v6430_v10, 0.0  ;;  %v2084_v17 = vmax.f32 %v6431_v55, 0.0  ;;  %v6432_v46 = vld [vmem:[#allocation18_spill] sm:$0xff]  ;;  %v6433_v36 = vld [vmem:[#allocation17_spill] sm:$0xff] }
 0x385   :  { %2200 = vst [vmem:[#allocation2 + $0xf0] sm:$0xff] %v2072_v2  ;;  %2201 = vst [vmem:[#allocation2 + $0xf8] sm:$0xff] %v2073_v56  ;;  %v2085_v24 = vmax.f32 %v6432_v46, 0.0  ;;  %v2086_v57 = vmax.f32 %v6433_v36, 0.0  ;;  %v2087_v63 = vmax.f32 %v5247_v20, 0.0  ;;  %v6434_v60 = vld [vmem:[#allocation20_spill] sm:$0xff] }
 0x386   :  { %2202 = vst [vmem:[#allocation2 + $0x100] sm:$0xff] %v2074_v15  ;;  %2203 = vst [vmem:[#allocation2 + $0x108] sm:$0xff] %v2075_v49  ;;  %v2088_v47 = vmax.f32 %v6434_v60, 0.0  ;;  %v2089_v2 = vmax.f32 %v5255_v25, 0.0  ;;  %v6435_v3 = vld [vmem:[#allocation19_spill] sm:$0xff]  ;;  %v2091_v56 = vmax.f32 %v5263_v30, 0.0 }
 0x387   :  { %2204 = vst [vmem:[#allocation2 + $0x110] sm:$0xff] %v2076_v42  ;;  %2205 = vst [vmem:[#allocation2 + $0x118] sm:$0xff] %v2077_v6  ;;  %v2090_v59 = vmax.f32 %v6435_v3, 0.0  ;;  %v6436_v15 = vld [vmem:[#allocation23_spill] sm:$0xff]  ;;  %v2093_v20 = vmax.f32 %v5271_v39, 0.0  ;;  %v6437_v62 = vld [vmem:[#allocation22_spill] sm:$0xff] }
 0x388   :  { %2206 = vst [vmem:[#allocation2 + $0x120] sm:$0xff] %v2078_v12  ;;  %2207 = vst [vmem:[#allocation2 + $0x128] sm:$0xff] %v2079_v0  ;;  %v2092_v49 = vmax.f32 %v6436_v15, 0.0  ;;  %v2094_v42 = vmax.f32 %v6437_v62, 0.0  ;;  %v2095_v5 = vmax.f32 %v5279_v11, 0.0  ;;  %v6438_v6 = vld [vmem:[#allocation25_spill] sm:$0xff] }
 0x389   :  { %2208 = vst [vmem:[#allocation2 + $0x130] sm:$0xff] %v2080_v9  ;;  %2209 = vst [vmem:[#allocation2 + $0x138] sm:$0xff] %v2081_v52  ;;  %v2096_v58 = vmax.f32 %v6438_v6, 0.0  ;;  %v2097_v25 = vmax.f32 %v5287_v14, 0.0  ;;  %v6439_v30 = vld [vmem:[#allocation24_spill] sm:$0xff]  ;;  %v2099_v22 = vmax.f32 %v5295_v18, 0.0 }
 0x38a   :  { %2210 = vst [vmem:[#allocation2 + $0x140] sm:$0xff] %v2082_v8  ;;  %2211 = vst [vmem:[#allocation2 + $0x148] sm:$0xff] %v2083_v32  ;;  %v2098_v12 = vmax.f32 %v6439_v30, 0.0  ;;  %v6440_v0 = vld [vmem:[#allocation28_spill] sm:$0xff]  ;;  %v2101_v39 = vmax.f32 %v5303_v23, 0.0  ;;  %v6441_v11 = vld [vmem:[#allocation27_spill] sm:$0xff] }
 0x38b   :  { %2212 = vst [vmem:[#allocation2 + $0x150] sm:$0xff] %v2084_v17  ;;  %2213 = vst [vmem:[#allocation2 + $0x158] sm:$0xff] %v2085_v24  ;;  %v2100_v41 = vmax.f32 %v6440_v0, 0.0  ;;  %v2102_v9 = vmax.f32 %v6441_v11, 0.0  ;;  %v2103_v31 = vmax.f32 %v5311_v1, 0.0  ;;  %v6442_v52 = vld [vmem:[#allocation30_spill] sm:$0xff] }
 0x38c   :  { %2214 = vst [vmem:[#allocation2 + $0x160] sm:$0xff] %v2086_v57  ;;  %2215 = vst [vmem:[#allocation2 + $0x168] sm:$0xff] %v2087_v63  ;;  %v2104_v38 = vmax.f32 %v6442_v52, 0.0  ;;  %v2105_v14 = vmax.f32 %v5319_v21, 0.0  ;;  %v6443_v18 = vld [vmem:[#allocation29_spill] sm:$0xff]  ;;  %v2107_v10 = vmax.f32 %v5327_v16, 0.0 }
 0x38d   :  { %2216 = vst [vmem:[#allocation2 + $0x170] sm:$0xff] %v2088_v47  ;;  %2217 = vst [vmem:[#allocation2 + $0x178] sm:$0xff] %v2089_v2  ;;  %v2106_v8 = vmax.f32 %v6443_v18, 0.0  ;;  %v6444_v32 = vld [vmem:[#allocation33_spill] sm:$0xff]  ;;  %v2109_v23 = vmax.f32 %v5335_v26, 0.0  ;;  %v6445_v1 = vld [vmem:[#allocation32_spill] sm:$0xff] }
 0x38e   :  { %2218 = vst [vmem:[#allocation2 + $0x180] sm:$0xff] %v2090_v59  ;;  %2219 = vst [vmem:[#allocation2 + $0x188] sm:$0xff] %v2091_v56  ;;  %v2108_v55 = vmax.f32 %v6444_v32, 0.0  ;;  %v2110_v17 = vmax.f32 %v6445_v1, 0.0  ;;  %v2111_v46 = vmax.f32 %v5343_v19, 0.0  ;;  %v6446_v24 = vld [vmem:[#allocation35_spill] sm:$0xff] }
 0x38f   :  { %2220 = vst [vmem:[#allocation2 + $0x190] sm:$0xff] %v2092_v49  ;;  %2221 = vst [vmem:[#allocation2 + $0x198] sm:$0xff] %v2093_v20  ;;  %v2112_v36 = vmax.f32 %v6446_v24, 0.0  ;;  %v2113_v21 = vmax.f32 %v5351_v51, 0.0  ;;  %v6447_v16 = vld [vmem:[#allocation34_spill] sm:$0xff]  ;;  %v2115_v63 = vmax.f32 %v5359_v54, 0.0 }
 0x390   :  { %2222 = vst [vmem:[#allocation2 + $0x1a0] sm:$0xff] %v2094_v42  ;;  %2223 = vst [vmem:[#allocation2 + $0x1a8] sm:$0xff] %v2095_v5  ;;  %v2114_v57 = vmax.f32 %v6447_v16, 0.0  ;;  %v6448_v60 = vld [vmem:[#allocation38_spill] sm:$0xff]  ;;  %v2117_v26 = vmax.f32 %v5367_v43, 0.0  ;;  %v6449_v19 = vld [vmem:[#allocation37_spill] sm:$0xff] }
 0x391   :  { %2224 = vst [vmem:[#allocation2 + $0x1b0] sm:$0xff] %v2096_v58  ;;  %2225 = vst [vmem:[#allocation2 + $0x1b8] sm:$0xff] %v2097_v25  ;;  %v2116_v47 = vmax.f32 %v6448_v60, 0.0  ;;  %v2118_v2 = vmax.f32 %v6449_v19, 0.0  ;;  %v2119_v3 = vmax.f32 %v5375_v48, 0.0  ;;  %v6450_v59 = vld [vmem:[#allocation40_spill] sm:$0xff] }
 0x392   :  { %2226 = vst [vmem:[#allocation2 + $0x1c0] sm:$0xff] %v2098_v12  ;;  %2227 = vst [vmem:[#allocation2 + $0x1c8] sm:$0xff] %v2099_v22  ;;  %v2120_v56 = vmax.f32 %v6450_v59, 0.0  ;;  %v2121_v51 = vmax.f32 %v5383_v53, 0.0  ;;  %v6451_v54 = vld [vmem:[#allocation39_spill] sm:$0xff]  ;;  %v2123_v49 = vmax.f32 %v5391_v61, 0.0 }
 0x393   :  { %2228 = vst [vmem:[#allocation2 + $0x1d0] sm:$0xff] %v2100_v41  ;;  %2229 = vst [vmem:[#allocation2 + $0x1d8] sm:$0xff] %v2101_v39  ;;  %v2122_v15 = vmax.f32 %v6451_v54, 0.0  ;;  %v6452_v20 = vld [vmem:[#allocation43_spill] sm:$0xff]  ;;  %v2125_v43 = vmax.f32 %v5399_v29, 0.0  ;;  %v6453_v48 = vld [vmem:[#allocation42_spill] sm:$0xff] }
 0x394   :  { %2230 = vst [vmem:[#allocation2 + $0x1e0] sm:$0xff] %v2102_v9  ;;  %2231 = vst [vmem:[#allocation2 + $0x1e8] sm:$0xff] %v2103_v31  ;;  %v2124_v62 = vmax.f32 %v6452_v20, 0.0  ;;  %v2126_v42 = vmax.f32 %v6453_v48, 0.0  ;;  %v2127_v5 = vmax.f32 %v5407_v4, 0.0  ;;  %v6454_v6 = vld [vmem:[#allocation45_spill] sm:$0xff] }
 0x395   :  { %2232 = vst [vmem:[#allocation2 + $0x1f0] sm:$0xff] %v2104_v38  ;;  %2233 = vst [vmem:[#allocation2 + $0x1f8] sm:$0xff] %v2105_v14  ;;  %v2128_v58 = vmax.f32 %v6454_v6, 0.0  ;;  %v2129_v53 = vmax.f32 %v5415_v34, 0.0  ;;  %v6455_v61 = vld [vmem:[#allocation44_spill] sm:$0xff]  ;;  %v2131_v30 = vmax.f32 %v5423_v13, 0.0 }
 0x396   :  { %2234 = vst [vmem:[#allocation2 + $0x200] sm:$0xff] %v2106_v8  ;;  %2235 = vst [vmem:[#allocation2 + $0x208] sm:$0xff] %v2107_v10  ;;  %v2130_v25 = vmax.f32 %v6455_v61, 0.0  ;;  %v6456_v12 = vld [vmem:[#allocation48_spill] sm:$0xff]  ;;  %v2133_v29 = vmax.f32 %v5431_v35, 0.0  ;;  %v6457_v4 = vld [vmem:[#allocation47_spill] sm:$0xff] }
 0x397   :  { %2236 = vst [vmem:[#allocation2 + $0x210] sm:$0xff] %v2108_v55  ;;  %2237 = vst [vmem:[#allocation2 + $0x218] sm:$0xff] %v2109_v23  ;;  %v2132_v22 = vmax.f32 %v6456_v12, 0.0  ;;  %v2134_v0 = vmax.f32 %v6457_v4, 0.0  ;;  %v6458_v41 = vld [vmem:[#allocation50_spill] sm:$0xff]  ;;  %v6459_v11 = vld [vmem:[#allocation49_spill] sm:$0xff] }
 0x398   :  { %2238 = vst [vmem:[#allocation2 + $0x220] sm:$0xff] %v2110_v17  ;;  %2239 = vst [vmem:[#allocation2 + $0x228] sm:$0xff] %v2111_v46  ;;  %v2135_v39 = vmax.f32 %v6458_v41, 0.0  ;;  %v2136_v9 = vmax.f32 %v6459_v11, 0.0  ;;  %v6460_v34 = vld [vmem:[#allocation53_spill] sm:$0xff]  ;;  %v6461_v31 = vld [vmem:[#allocation52_spill] sm:$0xff] }
 0x399   :  { %2240 = vst [vmem:[#allocation2 + $0x230] sm:$0xff] %v2112_v36  ;;  %2241 = vst [vmem:[#allocation2 + $0x238] sm:$0xff] %v2113_v21  ;;  %v2137_v13 = vmax.f32 %v6460_v34, 0.0  ;;  %v2138_v52 = vmax.f32 %v6461_v31, 0.0  ;;  %v6462_v38 = vld [vmem:[#allocation55_spill] sm:$0xff]  ;;  %v6463_v18 = vld [vmem:[#allocation54_spill] sm:$0xff] }
 0x39a   :  { %2242 = vst [vmem:[#allocation2 + $0x240] sm:$0xff] %v2114_v57  ;;  %2243 = vst [vmem:[#allocation2 + $0x248] sm:$0xff] %v2115_v63  ;;  %v2139_v14 = vmax.f32 %v6462_v38, 0.0  ;;  %v2140_v8 = vmax.f32 %v6463_v18, 0.0  ;;  %v6464_v35 = vld [vmem:[#allocation58_spill] sm:$0xff]  ;;  %v6465_v32 = vld [vmem:[#allocation57_spill] sm:$0xff] }
 0x39b   :  { %2244 = vst [vmem:[#allocation2 + $0x250] sm:$0xff] %v2116_v47  ;;  %2245 = vst [vmem:[#allocation2 + $0x258] sm:$0xff] %v2117_v26  ;;  %v2141_v10 = vmax.f32 %v6464_v35, 0.0  ;;  %v2142_v55 = vmax.f32 %v6465_v32, 0.0  ;;  %v6466_v23 = vld [vmem:[#allocation59_spill] sm:$0xff]  ;;  %v6467_v17 = vld [vmem:[#allocation5_spill] sm:$0xff] }
 0x39c   :  { %2246 = vst [vmem:[#allocation2 + $0x260] sm:$0xff] %v2118_v2  ;;  %2247 = vst [vmem:[#allocation2 + $0x268] sm:$0xff] %v2119_v3  ;;  %v2143_v1 = vmax.f32 %v6466_v23, 0.0  ;;  %v2144_v46 = vmax.f32 %v6467_v17, 0.0  ;;  %v6468_v24 = vld [vmem:[#allocation6_spill] sm:$0xff]  ;;  %v6469_v21 = vld [vmem:[#allocation7_spill] sm:$0xff] }
 0x39d   :  { %2248 = vst [vmem:[#allocation2 + $0x270] sm:$0xff] %v2120_v56  ;;  %2249 = vst [vmem:[#allocation2 + $0x278] sm:$0xff] %v2121_v51  ;;  %v2145_v36 = vmax.f32 %v6468_v24, 0.0  ;;  %v2146_v16 = vmax.f32 %v6469_v21, 0.0  ;;  %v6470_v57 = vld [vmem:[#allocation8_spill] sm:$0xff]  ;;  %v2148_v60 = vmax.f32 %v5491_v28, 0.0 }
 0x39e   :  { %2250 = vst [vmem:[#allocation2 + $0x280] sm:$0xff] %v2122_v15  ;;  %2251 = vst [vmem:[#allocation2 + $0x288] sm:$0xff] %v2123_v49  ;;  %v2147_v63 = vmax.f32 %v6470_v57, 0.0  ;;  %v2149_v47 = vmax.f32 %v5495_v45, 0.0  ;;  %v6471_v26 = vld [vmem:[#allocation11_spill] sm:$0xff]  ;;  %v6472_v2 = vld [vmem:[#allocation16_spill] sm:$0xff] }
 0x39f   :  { %2252 = vst [vmem:[#allocation2 + $0x290] sm:$0xff] %v2124_v62  ;;  %2253 = vst [vmem:[#allocation2 + $0x298] sm:$0xff] %v2125_v43  ;;  %v2150_v19 = vmax.f32 %v6471_v26, 0.0  ;;  %v2151_v3 = vmax.f32 %v6472_v2, 0.0  ;;  %v6473_v59 = vld [vmem:[#allocation21_spill] sm:$0xff]  ;;  %v6474_v51 = vld [vmem:[#allocation26_spill] sm:$0xff] }
 0x3a0   :  { %2254 = vst [vmem:[#allocation2 + $0x2a0] sm:$0xff] %v2126_v42  ;;  %2255 = vst [vmem:[#allocation2 + $0x2a8] sm:$0xff] %v2127_v5  ;;  %v2152_v56 = vmax.f32 %v6473_v59, 0.0  ;;  %v2153_v28 = vmax.f32 %v6474_v51, 0.0  ;;  %v6475_v54 = vld [vmem:[#allocation31_spill] sm:$0xff]  ;;  %v6476_v49 = vld [vmem:[#allocation36_spill] sm:$0xff] }
 0x3a1   :  { %2256 = vst [vmem:[#allocation2 + $0x2b0] sm:$0xff] %v2128_v58  ;;  %2257 = vst [vmem:[#allocation2 + $0x2b8] sm:$0xff] %v2129_v53  ;;  %v2154_v15 = vmax.f32 %v6475_v54, 0.0  ;;  %v2155_v20 = vmax.f32 %v6476_v49, 0.0  ;;  %v6477_v62 = vld [vmem:[#allocation41_spill] sm:$0xff]  ;;  %v2157_v43 = vmax.f32 %v5527_v40, 0.0 }
 0x3a2   :  { %2258 = vst [vmem:[#allocation2 + $0x2c0] sm:$0xff] %v2130_v25  ;;  %2259 = vst [vmem:[#allocation2 + $0x2c8] sm:$0xff] %v2131_v30  ;;  %v2156_v45 = vmax.f32 %v6477_v62, 0.0  ;;  %v2158_v48 = vmax.f32 %v5531_v44, 0.0  ;;  %v2159_v42 = vmax.f32 %v5535_v37, 0.0  ;;  %v2160_v5 = vmax.f32 %v5539_v7, 0.0 }
 0x3a3   :  { %2260 = vst [vmem:[#allocation2 + $0x2d0] sm:$0xff] %v2132_v22  ;;  %2261 = vst [vmem:[#allocation2 + $0x2d8] sm:$0xff] %v2133_v29  ;;  %v2161_v6 = vmax.f32 %v5543_v33, 0.0  ;;  %v2162_v58 = vmax.f32 %v5547_v50, 0.0  ;;  %v6478_v53 = vld [vmem:[#allocation46_spill] sm:$0xff]  ;;  %v6479_v25 = vld [vmem:[#allocation51_spill] sm:$0xff] }
 0x3a4   :  { %2262 = vst [vmem:[#allocation2 + $0x2e0] sm:$0xff] %v2134_v0  ;;  %2263 = vst [vmem:[#allocation2 + $0x2e8] sm:$0xff] %v2135_v39  ;;  %v2163_v61 = vmax.f32 %v6478_v53, 0.0  ;;  %v2164_v30 = vmax.f32 %v6479_v25, 0.0  ;;  %v6480_v40 = vld [vmem:[#allocation56_spill] sm:$0xff]  ;;  %v6482_v12 = vld [vmem:[#allocation61_spill] sm:$0xff] }
 0x3a5   :  { %2264 = vst [vmem:[#allocation2 + $0x2f0] sm:$0xff] %v2136_v9  ;;  %2265 = vst [vmem:[#allocation2 + $0x2f8] sm:$0xff] %v2137_v13  ;;  %v2165_v44 = vmax.f32 %v6480_v40, 0.0  ;;  %v6481_v37 = vld [vmem:[#allocation60_spill] sm:$0xff]  ;;  %v2167_v33 = vmax.f32 %v6482_v12, 0.0  ;;  %v2169_v50 = vmax.f32 %v5571_v27, 0.0 }
 0x3a6   :  { %2266 = vst [vmem:[#allocation2 + $0x300] sm:$0xff] %v2138_v52  ;;  %2267 = vst [vmem:[#allocation2 + $0x308] sm:$0xff] %v2139_v14  ;;  %v2166_v7 = vmax.f32 %v6481_v37, 0.0 }
 0x3a7   :  { %2268 = vst [vmem:[#allocation2 + $0x310] sm:$0xff] %v2140_v8  ;;  %2269 = vst [vmem:[#allocation2 + $0x318] sm:$0xff] %v2141_v10 }
 0x3a8   :  { %2270 = vst [vmem:[#allocation2 + $0x320] sm:$0xff] %v2142_v55  ;;  %2271 = vst [vmem:[#allocation2 + $0x328] sm:$0xff] %v2143_v1 }
 0x3a9   :  { %2272 = vst [vmem:[#allocation2 + $0x330] sm:$0xff] %v2144_v46  ;;  %2273 = vst [vmem:[#allocation2 + $0x338] sm:$0xff] %v2145_v36 }
 0x3aa   :  { %2274 = vst [vmem:[#allocation2 + $0x340] sm:$0xff] %v2146_v16  ;;  %2275 = vst [vmem:[#allocation2 + $0x348] sm:$0xff] %v2147_v63 }
 0x3ab   :  { %2276 = vst [vmem:[#allocation2 + $0x350] sm:$0xff] %v2148_v60  ;;  %2277 = vst [vmem:[#allocation2 + $0x358] sm:$0xff] %v2149_v47 }
 0x3ac   :  { %2278 = vst [vmem:[#allocation2 + $0x360] sm:$0xff] %v2150_v19  ;;  %2279 = vst [vmem:[#allocation2 + $0x368] sm:$0xff] %v2151_v3 }
 0x3ad   :  { %2280 = vst [vmem:[#allocation2 + $0x370] sm:$0xff] %v2152_v56  ;;  %2281 = vst [vmem:[#allocation2 + $0x378] sm:$0xff] %v2153_v28 }
 0x3ae   :  { %2282 = vst [vmem:[#allocation2 + $0x380] sm:$0xff] %v2154_v15  ;;  %2283 = vst [vmem:[#allocation2 + $0x388] sm:$0xff] %v2155_v20 }
 0x3af   :  { %2284 = vst [vmem:[#allocation2 + $0x390] sm:$0xff] %v2156_v45  ;;  %2285 = vst [vmem:[#allocation2 + $0x398] sm:$0xff] %v2157_v43 }
 0x3b0   :  { %2286 = vst [vmem:[#allocation2 + $0x3a0] sm:$0xff] %v2158_v48  ;;  %2287 = vst [vmem:[#allocation2 + $0x3a8] sm:$0xff] %v2159_v42 }
 0x3b1   :  { %2288 = vst [vmem:[#allocation2 + $0x3b0] sm:$0xff] %v2160_v5  ;;  %2289 = vst [vmem:[#allocation2 + $0x3b8] sm:$0xff] %v2161_v6 }
 0x3b2   :  { %2290 = vst [vmem:[#allocation2 + $0x3c0] sm:$0xff] %v2162_v58  ;;  %2291 = vst [vmem:[#allocation2 + $0x3c8] sm:$0xff] %v2163_v61 }
 0x3b3   :  { %2292 = vst [vmem:[#allocation2 + $0x3d0] sm:$0xff] %v2164_v30  ;;  %2293 = vst [vmem:[#allocation2 + $0x3d8] sm:$0xff] %v2165_v44 }
 0x3b4   :  { %2294 = vst [vmem:[#allocation2 + $0x3e0] sm:$0xff] %v2166_v7  ;;  %2295 = vst [vmem:[#allocation2 + $0x3e8] sm:$0xff] %v2167_v33 }
 0x3b5   :  { %2297 = vst [vmem:[#allocation2 + $0x3f8] sm:$0xff] %v2169_v50 }
 0x3b6   :  { %2819 = shalt.err (!%p2816_p4)
}
 0x3b7   :  { %s2831_s21 = smov 128   ;;  %s2832_s22 = smov 8  }
 0x3b8   :  { %2309 = dma.vmem_to_hbm [thread:$0]  %s5696_s3, 16384, %s5714_s4, [#allocation3], %s2831_s21, %s2831_s21, %s2832_s22  }
 0x3b9   :  { %2828 = dma.done.wait [#allocation3], 16384  }
 0x3ba   :  { %2829 = vsyncadd [#allocation3], 4294950912 }
 0x3bb   :  { %2313 = vsyncpa [#allocation3], 1 }

</bundles_post_ra>
